<compile_context>
chip_gen: v7x
topology: tpu7x:2x2x1
jax: 0.10.0
libtpu: 0.0.40
codegen_flags: <defaults>
</compile_context>

<pallas_src>
import functools

import numpy as np
import jax
import jax.numpy as jnp
from jax.experimental import pallas as pl
from jax.experimental.pallas import tpu as pltpu


# The 8 (ky, kx) taps of a 3x3 window, center (1, 1) excluded.
# TODO(synk): utils.gen9DirWeight was not provided; assume the standard 8-direction
# center-difference 3x3 kernels (+1 at neighbor i, -1 at center). LayerConv2d squares
# the conv output, so the sign convention is irrelevant to the result.
_DIRS = tuple((i // 3, i % 3) for i in range(9) if i != 4)


def _self_seg_kernel(lg_ref, tg_ref, out_ref, *, n, c, h, w, reduce_mode):
    """Fused SelfSegLoss forward.

    lg_ref / tg_ref: (n, c, h+2, w+2) f32, spatially zero-padded (conv padding=1).
    out_ref:         (1, 1) f32 scalar loss.
    """
    neg = jnp.float32(-jnp.inf)
    pos = jnp.float32(jnp.inf)

    # Center taps, hoisted (loaded once per channel).
    lg_c = [lg_ref[:, ci, 1:1 + h, 1:1 + w] for ci in range(c)]
    tg_c = [tg_ref[:, ci, 1:1 + h, 1:1 + w] for ci in range(c)]

    if reduce_mode == "minmax":
        din_acc = jnp.full((n, h, w), neg, jnp.float32)    # running max over ~b
        dout_acc = jnp.full((n, h, w), pos, jnp.float32)   # running min over  b
    else:
        din_sum = jnp.zeros((n, h, w), jnp.float32)
        din_cnt = jnp.zeros((n, h, w), jnp.float32)
        dout_sum = jnp.zeros((n, h, w), jnp.float32)
        dout_cnt = jnp.zeros((n, h, w), jnp.float32)

    # 8 directional "convolutions": (x_center - x_neighbor)^2 summed over channels.
    for ky, kx in _DIRS:
        d = jnp.zeros((n, h, w), jnp.float32)
        z = jnp.zeros((n, h, w), jnp.float32)
        for ci in range(c):
            dl = lg_c[ci] - lg_ref[:, ci, ky:ky + h, kx:kx + w]
            dt = tg_c[ci] - tg_ref[:, ci, ky:ky + h, kx:kx + w]
            d = d + dl * dl
            z = z + dt * dt
        b = z > 0.5

        if reduce_mode == "minmax":
            din_acc = jnp.maximum(din_acc, jnp.where(b, neg, d))
            dout_acc = jnp.minimum(dout_acc, jnp.where(b, d, pos))
        else:
            b_f = b.astype(jnp.float32)
            if reduce_mode == "mean":
                din_sum = din_sum + jnp.where(b, 0.0, d)
                dout_sum = dout_sum + jnp.where(b, d, 0.0)
            else:  # 'expmean'
                dp = d + 1.0
                din_sum = din_sum + jnp.where(b, 0.0, dp * jnp.sqrt(dp))
                dout_sum = dout_sum + jnp.where(b, 1.0 / (d + 0.1), 0.0)
            din_cnt = din_cnt + (1.0 - b_f)
            dout_cnt = dout_cnt + b_f

    # Single deferred cross-lane reduction + scalar epilogue.
    if reduce_mode == "minmax":
        val = 10.0 + jnp.max(din_acc) - jnp.min(dout_acc)
    else:
        val = (10.0
               + jnp.sum(din_sum) / jnp.sum(din_cnt)
               - jnp.sum(dout_sum) / jnp.sum(dout_cnt))
    out_ref[...] = jnp.maximum(val, 0.0).astype(jnp.float32).reshape(1, 1)


def self_seg_loss(logits, target, reduce_mode="minmax"):
    """Pallas implementation of SelfSegLoss.forward."""
    assert logits.shape == target.shape, (logits.shape, target.shape)
    n, c, h, w = logits.shape
    pad = ((0, 0), (0, 0), (1, 1), (1, 1))
    # TODO(synk): PyTorch computes Z with target.double(); TPU computes in float32.
    lg = jnp.pad(logits.astype(jnp.float32), pad)   # conv padding=1 halo
    tg = jnp.pad(target.astype(jnp.float32), pad)

    out = pl.pallas_call(
        functools.partial(_self_seg_kernel, n=n, c=c, h=h, w=w,
                          reduce_mode=reduce_mode),
        out_shape=jax.ShapeDtypeStruct((1, 1), jnp.float32),
        in_specs=[
            pl.BlockSpec(memory_space=pltpu.MemorySpace.VMEM),
            pl.BlockSpec(memory_space=pltpu.MemorySpace.VMEM),
        ],
        out_specs=pl.BlockSpec(memory_space=pltpu.MemorySpace.VMEM),
    )(lg, tg)
    return out[0, 0]


# ----------------------- plain-JAX reference (independent path) -----------------------

def _gen_dir_weights():
    ws = []
    for i in range(9):
        if i == 4:
            continue
        k = np.zeros((3, 3), np.float32)
        k[i // 3, i % 3] = 1.0
        k[1, 1] = -1.0
        ws.append(k)
    return jnp.asarray(np.stack(ws))                # (8, 3, 3)


def _layer_conv2d_ref(x, w):
    n, c, h, wd = x.shape
    outs = []
    for f in range(w.shape[0]):
        wk = w[f].reshape(1, 1, 3, 3)
        acc = jnp.zeros((n, h, wd), jnp.float32)
        for ci in range(c):
            conv = jax.lax.conv_general_dilated(
                x[:, ci:ci + 1].astype(jnp.float32), wk,
                window_strides=(1, 1), padding=((1, 1), (1, 1)),
                dimension_numbers=("NCHW", "OIHW", "NCHW"))[:, 0]
            acc = acc + conv * conv
        outs.append(acc)
    return jnp.stack(outs, axis=1)                  # (n, 8, h, w)


def self_seg_loss_ref(logits, target, reduce_mode="minmax"):
    w = _gen_dir_weights()
    D = _layer_conv2d_ref(logits, w)
    Z = _layer_conv2d_ref(target, w)
    b = Z > 0.5
    nb = jnp.logical_not(b)
    if reduce_mode == "minmax":
        din_max = jnp.max(jnp.where(nb, D, -jnp.inf))
        dout_min = jnp.min(jnp.where(b, D, jnp.inf))
        return jnp.maximum(10.0 + din_max - dout_min, 0.0)
    if reduce_mode == "mean":
        din_mean = jnp.sum(jnp.where(nb, D, 0.0)) / jnp.sum(nb)
        dout_mean = jnp.sum(jnp.where(b, D, 0.0)) / jnp.sum(b)
        return jnp.maximum(10.0 + din_mean - dout_mean, 0.0)
    din_mean = jnp.sum(jnp.where(nb, (D + 1.0) ** 1.5, 0.0)) / jnp.sum(nb)
    dout_mean = jnp.sum(jnp.where(b, 1.0 / (D + 0.1), 0.0)) / jnp.sum(b)
    return jnp.maximum(10.0 + din_mean - dout_mean, 0.0)


if __name__ == "__main__":
    key = jax.random.PRNGKey(0)
    n, c, h, w = 2, 4, 16, 16

    logits = jax.random.normal(key, (n, c, h, w), dtype=jnp.float32)
    # Piecewise-constant "segmentation" target: boundary pixels give Z > 0.5 (b=True),
    # flat regions give Z = 0 (b=False), so both index sets are non-empty
    # (PyTorch would error on an empty boolean selection).
    target = jnp.zeros((n, c, h, w), jnp.float32).at[:, :, 4:12, 4:12].set(1.0)

    for mode in ("minmax", "mean", "expmean"):
        out = jax.block_until_ready(self_seg_loss(logits, target, reduce_mode=mode))
        ref = jax.block_until_ready(self_seg_loss_ref(logits, target, reduce_mode=mode))
        assert jnp.allclose(out, ref, rtol=1e-4, atol=1e-4), (mode, out, ref)

    print("KERNEL_OK")
</pallas_src>

<mosaic_0001>
module attributes {stable_mosaic.version = 11 : i64} {
  func.func @_self_seg_kernel(%arg0: memref<2x4x18x18xf32, #tpu.memory_space<vmem>>, %arg1: memref<2x4x18x18xf32, #tpu.memory_space<vmem>>, %arg2: memref<1x1xf32, #tpu.memory_space<vmem>>) attributes {dimension_semantics = [], scalar_prefetch = 0 : i64, scratch_operands = 0 : i64, tpu.core_type = #tpu.core_type<tc>} {
    %c0 = arith.constant 0 : index
    %c0_0 = arith.constant 0 : index
    %c1 = arith.constant 1 : index
    %c1_1 = arith.constant 1 : index
    %0 = vector.load %arg0[%c0, %c0_0, %c1, %c1_1] : memref<2x4x18x18xf32, #tpu.memory_space<vmem>>, vector<2x1x16x16xf32>
    %1 = vector.shape_cast %0 : vector<2x1x16x16xf32> to vector<2x16x16xf32>
    %c0_2 = arith.constant 0 : index
    %c1_3 = arith.constant 1 : index
    %c1_4 = arith.constant 1 : index
    %c1_5 = arith.constant 1 : index
    %2 = vector.load %arg0[%c0_2, %c1_3, %c1_4, %c1_5] : memref<2x4x18x18xf32, #tpu.memory_space<vmem>>, vector<2x1x16x16xf32>
    %3 = vector.shape_cast %2 : vector<2x1x16x16xf32> to vector<2x16x16xf32>
    %c0_6 = arith.constant 0 : index
    %c2 = arith.constant 2 : index
    %c1_7 = arith.constant 1 : index
    %c1_8 = arith.constant 1 : index
    %4 = vector.load %arg0[%c0_6, %c2, %c1_7, %c1_8] : memref<2x4x18x18xf32, #tpu.memory_space<vmem>>, vector<2x1x16x16xf32>
    %5 = vector.shape_cast %4 : vector<2x1x16x16xf32> to vector<2x16x16xf32>
    %c0_9 = arith.constant 0 : index
    %c3 = arith.constant 3 : index
    %c1_10 = arith.constant 1 : index
    %c1_11 = arith.constant 1 : index
    %6 = vector.load %arg0[%c0_9, %c3, %c1_10, %c1_11] : memref<2x4x18x18xf32, #tpu.memory_space<vmem>>, vector<2x1x16x16xf32>
    %7 = vector.shape_cast %6 : vector<2x1x16x16xf32> to vector<2x16x16xf32>
    %c0_12 = arith.constant 0 : index
    %c0_13 = arith.constant 0 : index
    %c1_14 = arith.constant 1 : index
    %c1_15 = arith.constant 1 : index
    %8 = vector.load %arg1[%c0_12, %c0_13, %c1_14, %c1_15] : memref<2x4x18x18xf32, #tpu.memory_space<vmem>>, vector<2x1x16x16xf32>
    %9 = vector.shape_cast %8 : vector<2x1x16x16xf32> to vector<2x16x16xf32>
    %c0_16 = arith.constant 0 : index
    %c1_17 = arith.constant 1 : index
    %c1_18 = arith.constant 1 : index
    %c1_19 = arith.constant 1 : index
    %10 = vector.load %arg1[%c0_16, %c1_17, %c1_18, %c1_19] : memref<2x4x18x18xf32, #tpu.memory_space<vmem>>, vector<2x1x16x16xf32>
    %11 = vector.shape_cast %10 : vector<2x1x16x16xf32> to vector<2x16x16xf32>
    %c0_20 = arith.constant 0 : index
    %c2_21 = arith.constant 2 : index
    %c1_22 = arith.constant 1 : index
    %c1_23 = arith.constant 1 : index
    %12 = vector.load %arg1[%c0_20, %c2_21, %c1_22, %c1_23] : memref<2x4x18x18xf32, #tpu.memory_space<vmem>>, vector<2x1x16x16xf32>
    %13 = vector.shape_cast %12 : vector<2x1x16x16xf32> to vector<2x16x16xf32>
    %c0_24 = arith.constant 0 : index
    %c3_25 = arith.constant 3 : index
    %c1_26 = arith.constant 1 : index
    %c1_27 = arith.constant 1 : index
    %14 = vector.load %arg1[%c0_24, %c3_25, %c1_26, %c1_27] : memref<2x4x18x18xf32, #tpu.memory_space<vmem>>, vector<2x1x16x16xf32>
    %15 = vector.shape_cast %14 : vector<2x1x16x16xf32> to vector<2x16x16xf32>
    %cst = arith.constant 0xFF800000 : f32
    %16 = vector.broadcast %cst : f32 to vector<2x16x16xf32>
    %cst_28 = arith.constant 0x7F800000 : f32
    %17 = vector.broadcast %cst_28 : f32 to vector<2x16x16xf32>
    %cst_29 = arith.constant 0.000000e+00 : f32
    %18 = vector.broadcast %cst_29 : f32 to vector<2x16x16xf32>
    %cst_30 = arith.constant 0.000000e+00 : f32
    %19 = vector.broadcast %cst_30 : f32 to vector<2x16x16xf32>
    %c0_31 = arith.constant 0 : index
    %c0_32 = arith.constant 0 : index
    %c0_33 = arith.constant 0 : index
    %c0_34 = arith.constant 0 : index
    %20 = vector.load %arg0[%c0_31, %c0_32, %c0_33, %c0_34] : memref<2x4x18x18xf32, #tpu.memory_space<vmem>>, vector<2x1x16x16xf32>
    %21 = vector.shape_cast %20 : vector<2x1x16x16xf32> to vector<2x16x16xf32>
    %22 = arith.subf %1, %21 : vector<2x16x16xf32>
    %c0_35 = arith.constant 0 : index
    %c0_36 = arith.constant 0 : index
    %c0_37 = arith.constant 0 : index
    %c0_38 = arith.constant 0 : index
    %23 = vector.load %arg1[%c0_35, %c0_36, %c0_37, %c0_38] : memref<2x4x18x18xf32, #tpu.memory_space<vmem>>, vector<2x1x16x16xf32>
    %24 = vector.shape_cast %23 : vector<2x1x16x16xf32> to vector<2x16x16xf32>
    %25 = arith.subf %9, %24 : vector<2x16x16xf32>
    %26 = arith.mulf %22, %22 : vector<2x16x16xf32>
    %27 = arith.addf %18, %26 : vector<2x16x16xf32>
    %28 = arith.mulf %25, %25 : vector<2x16x16xf32>
    %29 = arith.addf %19, %28 : vector<2x16x16xf32>
    %c0_39 = arith.constant 0 : index
    %c1_40 = arith.constant 1 : index
    %c0_41 = arith.constant 0 : index
    %c0_42 = arith.constant 0 : index
    %30 = vector.load %arg0[%c0_39, %c1_40, %c0_41, %c0_42] : memref<2x4x18x18xf32, #tpu.memory_space<vmem>>, vector<2x1x16x16xf32>
    %31 = vector.shape_cast %30 : vector<2x1x16x16xf32> to vector<2x16x16xf32>
    %32 = arith.subf %3, %31 : vector<2x16x16xf32>
    %c0_43 = arith.constant 0 : index
    %c1_44 = arith.constant 1 : index
    %c0_45 = arith.constant 0 : index
    %c0_46 = arith.constant 0 : index
    %33 = vector.load %arg1[%c0_43, %c1_44, %c0_45, %c0_46] : memref<2x4x18x18xf32, #tpu.memory_space<vmem>>, vector<2x1x16x16xf32>
    %34 = vector.shape_cast %33 : vector<2x1x16x16xf32> to vector<2x16x16xf32>
    %35 = arith.subf %11, %34 : vector<2x16x16xf32>
    %36 = arith.mulf %32, %32 : vector<2x16x16xf32>
    %37 = arith.addf %27, %36 : vector<2x16x16xf32>
    %38 = arith.mulf %35, %35 : vector<2x16x16xf32>
    %39 = arith.addf %29, %38 : vector<2x16x16xf32>
    %c0_47 = arith.constant 0 : index
    %c2_48 = arith.constant 2 : index
    %c0_49 = arith.constant 0 : index
    %c0_50 = arith.constant 0 : index
    %40 = vector.load %arg0[%c0_47, %c2_48, %c0_49, %c0_50] : memref<2x4x18x18xf32, #tpu.memory_space<vmem>>, vector<2x1x16x16xf32>
    %41 = vector.shape_cast %40 : vector<2x1x16x16xf32> to vector<2x16x16xf32>
    %42 = arith.subf %5, %41 : vector<2x16x16xf32>
    %c0_51 = arith.constant 0 : index
    %c2_52 = arith.constant 2 : index
    %c0_53 = arith.constant 0 : index
    %c0_54 = arith.constant 0 : index
    %43 = vector.load %arg1[%c0_51, %c2_52, %c0_53, %c0_54] : memref<2x4x18x18xf32, #tpu.memory_space<vmem>>, vector<2x1x16x16xf32>
    %44 = vector.shape_cast %43 : vector<2x1x16x16xf32> to vector<2x16x16xf32>
    %45 = arith.subf %13, %44 : vector<2x16x16xf32>
    %46 = arith.mulf %42, %42 : vector<2x16x16xf32>
    %47 = arith.addf %37, %46 : vector<2x16x16xf32>
    %48 = arith.mulf %45, %45 : vector<2x16x16xf32>
    %49 = arith.addf %39, %48 : vector<2x16x16xf32>
    %c0_55 = arith.constant 0 : index
    %c3_56 = arith.constant 3 : index
    %c0_57 = arith.constant 0 : index
    %c0_58 = arith.constant 0 : index
    %50 = vector.load %arg0[%c0_55, %c3_56, %c0_57, %c0_58] : memref<2x4x18x18xf32, #tpu.memory_space<vmem>>, vector<2x1x16x16xf32>
    %51 = vector.shape_cast %50 : vector<2x1x16x16xf32> to vector<2x16x16xf32>
    %52 = arith.subf %7, %51 : vector<2x16x16xf32>
    %c0_59 = arith.constant 0 : index
    %c3_60 = arith.constant 3 : index
    %c0_61 = arith.constant 0 : index
    %c0_62 = arith.constant 0 : index
    %53 = vector.load %arg1[%c0_59, %c3_60, %c0_61, %c0_62] : memref<2x4x18x18xf32, #tpu.memory_space<vmem>>, vector<2x1x16x16xf32>
    %54 = vector.shape_cast %53 : vector<2x1x16x16xf32> to vector<2x16x16xf32>
    %55 = arith.subf %15, %54 : vector<2x16x16xf32>
    %56 = arith.mulf %52, %52 : vector<2x16x16xf32>
    %57 = arith.addf %47, %56 : vector<2x16x16xf32>
    %58 = arith.mulf %55, %55 : vector<2x16x16xf32>
    %59 = arith.addf %49, %58 : vector<2x16x16xf32>
    %cst_63 = arith.constant 5.000000e-01 : f32
    %60 = vector.broadcast %cst_63 : f32 to vector<2x16x16xf32>
    %61 = arith.cmpf ogt, %59, %60 : vector<2x16x16xf32>
    %cst_64 = arith.constant 0xFF800000 : f32
    %62 = vector.broadcast %cst_64 : f32 to vector<2x16x16xf32>
    %63 = arith.select %61, %62, %57 : vector<2x16x16xi1>, vector<2x16x16xf32>
    %64 = arith.maximumf %16, %63 : vector<2x16x16xf32>
    %cst_65 = arith.constant 0x7F800000 : f32
    %65 = vector.broadcast %cst_65 : f32 to vector<2x16x16xf32>
    %66 = arith.select %61, %57, %65 : vector<2x16x16xi1>, vector<2x16x16xf32>
    %67 = arith.minimumf %17, %66 : vector<2x16x16xf32>
    %cst_66 = arith.constant 0.000000e+00 : f32
    %68 = vector.broadcast %cst_66 : f32 to vector<2x16x16xf32>
    %cst_67 = arith.constant 0.000000e+00 : f32
    %69 = vector.broadcast %cst_67 : f32 to vector<2x16x16xf32>
    %c0_68 = arith.constant 0 : index
    %c0_69 = arith.constant 0 : index
    %c0_70 = arith.constant 0 : index
    %c1_71 = arith.constant 1 : index
    %70 = vector.load %arg0[%c0_68, %c0_69, %c0_70, %c1_71] : memref<2x4x18x18xf32, #tpu.memory_space<vmem>>, vector<2x1x16x16xf32>
    %71 = vector.shape_cast %70 : vector<2x1x16x16xf32> to vector<2x16x16xf32>
    %72 = arith.subf %1, %71 : vector<2x16x16xf32>
    %c0_72 = arith.constant 0 : index
    %c0_73 = arith.constant 0 : index
    %c0_74 = arith.constant 0 : index
    %c1_75 = arith.constant 1 : index
    %73 = vector.load %arg1[%c0_72, %c0_73, %c0_74, %c1_75] : memref<2x4x18x18xf32, #tpu.memory_space<vmem>>, vector<2x1x16x16xf32>
    %74 = vector.shape_cast %73 : vector<2x1x16x16xf32> to vector<2x16x16xf32>
    %75 = arith.subf %9, %74 : vector<2x16x16xf32>
    %76 = arith.mulf %72, %72 : vector<2x16x16xf32>
    %77 = arith.addf %68, %76 : vector<2x16x16xf32>
    %78 = arith.mulf %75, %75 : vector<2x16x16xf32>
    %79 = arith.addf %69, %78 : vector<2x16x16xf32>
    %c0_76 = arith.constant 0 : index
    %c1_77 = arith.constant 1 : index
    %c0_78 = arith.constant 0 : index
    %c1_79 = arith.constant 1 : index
    %80 = vector.load %arg0[%c0_76, %c1_77, %c0_78, %c1_79] : memref<2x4x18x18xf32, #tpu.memory_space<vmem>>, vector<2x1x16x16xf32>
    %81 = vector.shape_cast %80 : vector<2x1x16x16xf32> to vector<2x16x16xf32>
    %82 = arith.subf %3, %81 : vector<2x16x16xf32>
    %c0_80 = arith.constant 0 : index
    %c1_81 = arith.constant 1 : index
    %c0_82 = arith.constant 0 : index
    %c1_83 = arith.constant 1 : index
    %83 = vector.load %arg1[%c0_80, %c1_81, %c0_82, %c1_83] : memref<2x4x18x18xf32, #tpu.memory_space<vmem>>, vector<2x1x16x16xf32>
    %84 = vector.shape_cast %83 : vector<2x1x16x16xf32> to vector<2x16x16xf32>
    %85 = arith.subf %11, %84 : vector<2x16x16xf32>
    %86 = arith.mulf %82, %82 : vector<2x16x16xf32>
    %87 = arith.addf %77, %86 : vector<2x16x16xf32>
    %88 = arith.mulf %85, %85 : vector<2x16x16xf32>
    %89 = arith.addf %79, %88 : vector<2x16x16xf32>
    %c0_84 = arith.constant 0 : index
    %c2_85 = arith.constant 2 : index
    %c0_86 = arith.constant 0 : index
    %c1_87 = arith.constant 1 : index
    %90 = vector.load %arg0[%c0_84, %c2_85, %c0_86, %c1_87] : memref<2x4x18x18xf32, #tpu.memory_space<vmem>>, vector<2x1x16x16xf32>
    %91 = vector.shape_cast %90 : vector<2x1x16x16xf32> to vector<2x16x16xf32>
    %92 = arith.subf %5, %91 : vector<2x16x16xf32>
    %c0_88 = arith.constant 0 : index
    %c2_89 = arith.constant 2 : index
    %c0_90 = arith.constant 0 : index
    %c1_91 = arith.constant 1 : index
    %93 = vector.load %arg1[%c0_88, %c2_89, %c0_90, %c1_91] : memref<2x4x18x18xf32, #tpu.memory_space<vmem>>, vector<2x1x16x16xf32>
    %94 = vector.shape_cast %93 : vector<2x1x16x16xf32> to vector<2x16x16xf32>
    %95 = arith.subf %13, %94 : vector<2x16x16xf32>
    %96 = arith.mulf %92, %92 : vector<2x16x16xf32>
    %97 = arith.addf %87, %96 : vector<2x16x16xf32>
    %98 = arith.mulf %95, %95 : vector<2x16x16xf32>
    %99 = arith.addf %89, %98 : vector<2x16x16xf32>
    %c0_92 = arith.constant 0 : index
    %c3_93 = arith.constant 3 : index
    %c0_94 = arith.constant 0 : index
    %c1_95 = arith.constant 1 : index
    %100 = vector.load %arg0[%c0_92, %c3_93, %c0_94, %c1_95] : memref<2x4x18x18xf32, #tpu.memory_space<vmem>>, vector<2x1x16x16xf32>
    %101 = vector.shape_cast %100 : vector<2x1x16x16xf32> to vector<2x16x16xf32>
    %102 = arith.subf %7, %101 : vector<2x16x16xf32>
    %c0_96 = arith.constant 0 : index
    %c3_97 = arith.constant 3 : index
    %c0_98 = arith.constant 0 : index
    %c1_99 = arith.constant 1 : index
    %103 = vector.load %arg1[%c0_96, %c3_97, %c0_98, %c1_99] : memref<2x4x18x18xf32, #tpu.memory_space<vmem>>, vector<2x1x16x16xf32>
    %104 = vector.shape_cast %103 : vector<2x1x16x16xf32> to vector<2x16x16xf32>
    %105 = arith.subf %15, %104 : vector<2x16x16xf32>
    %106 = arith.mulf %102, %102 : vector<2x16x16xf32>
    %107 = arith.addf %97, %106 : vector<2x16x16xf32>
    %108 = arith.mulf %105, %105 : vector<2x16x16xf32>
    %109 = arith.addf %99, %108 : vector<2x16x16xf32>
    %cst_100 = arith.constant 5.000000e-01 : f32
    %110 = vector.broadcast %cst_100 : f32 to vector<2x16x16xf32>
    %111 = arith.cmpf ogt, %109, %110 : vector<2x16x16xf32>
    %cst_101 = arith.constant 0xFF800000 : f32
    %112 = vector.broadcast %cst_101 : f32 to vector<2x16x16xf32>
    %113 = arith.select %111, %112, %107 : vector<2x16x16xi1>, vector<2x16x16xf32>
    %114 = arith.maximumf %64, %113 : vector<2x16x16xf32>
    %cst_102 = arith.constant 0x7F800000 : f32
    %115 = vector.broadcast %cst_102 : f32 to vector<2x16x16xf32>
    %116 = arith.select %111, %107, %115 : vector<2x16x16xi1>, vector<2x16x16xf32>
    %117 = arith.minimumf %67, %116 : vector<2x16x16xf32>
    %cst_103 = arith.constant 0.000000e+00 : f32
    %118 = vector.broadcast %cst_103 : f32 to vector<2x16x16xf32>
    %cst_104 = arith.constant 0.000000e+00 : f32
    %119 = vector.broadcast %cst_104 : f32 to vector<2x16x16xf32>
    %c0_105 = arith.constant 0 : index
    %c0_106 = arith.constant 0 : index
    %c0_107 = arith.constant 0 : index
    %c2_108 = arith.constant 2 : index
    %120 = vector.load %arg0[%c0_105, %c0_106, %c0_107, %c2_108] : memref<2x4x18x18xf32, #tpu.memory_space<vmem>>, vector<2x1x16x16xf32>
    %121 = vector.shape_cast %120 : vector<2x1x16x16xf32> to vector<2x16x16xf32>
    %122 = arith.subf %1, %121 : vector<2x16x16xf32>
    %c0_109 = arith.constant 0 : index
    %c0_110 = arith.constant 0 : index
    %c0_111 = arith.constant 0 : index
    %c2_112 = arith.constant 2 : index
    %123 = vector.load %arg1[%c0_109, %c0_110, %c0_111, %c2_112] : memref<2x4x18x18xf32, #tpu.memory_space<vmem>>, vector<2x1x16x16xf32>
    %124 = vector.shape_cast %123 : vector<2x1x16x16xf32> to vector<2x16x16xf32>
    %125 = arith.subf %9, %124 : vector<2x16x16xf32>
    %126 = arith.mulf %122, %122 : vector<2x16x16xf32>
    %127 = arith.addf %118, %126 : vector<2x16x16xf32>
    %128 = arith.mulf %125, %125 : vector<2x16x16xf32>
    %129 = arith.addf %119, %128 : vector<2x16x16xf32>
    %c0_113 = arith.constant 0 : index
    %c1_114 = arith.constant 1 : index
    %c0_115 = arith.constant 0 : index
    %c2_116 = arith.constant 2 : index
    %130 = vector.load %arg0[%c0_113, %c1_114, %c0_115, %c2_116] : memref<2x4x18x18xf32, #tpu.memory_space<vmem>>, vector<2x1x16x16xf32>
    %131 = vector.shape_cast %130 : vector<2x1x16x16xf32> to vector<2x16x16xf32>
    %132 = arith.subf %3, %131 : vector<2x16x16xf32>
    %c0_117 = arith.constant 0 : index
    %c1_118 = arith.constant 1 : index
    %c0_119 = arith.constant 0 : index
    %c2_120 = arith.constant 2 : index
    %133 = vector.load %arg1[%c0_117, %c1_118, %c0_119, %c2_120] : memref<2x4x18x18xf32, #tpu.memory_space<vmem>>, vector<2x1x16x16xf32>
    %134 = vector.shape_cast %133 : vector<2x1x16x16xf32> to vector<2x16x16xf32>
    %135 = arith.subf %11, %134 : vector<2x16x16xf32>
    %136 = arith.mulf %132, %132 : vector<2x16x16xf32>
    %137 = arith.addf %127, %136 : vector<2x16x16xf32>
    %138 = arith.mulf %135, %135 : vector<2x16x16xf32>
    %139 = arith.addf %129, %138 : vector<2x16x16xf32>
    %c0_121 = arith.constant 0 : index
    %c2_122 = arith.constant 2 : index
    %c0_123 = arith.constant 0 : index
    %c2_124 = arith.constant 2 : index
    %140 = vector.load %arg0[%c0_121, %c2_122, %c0_123, %c2_124] : memref<2x4x18x18xf32, #tpu.memory_space<vmem>>, vector<2x1x16x16xf32>
    %141 = vector.shape_cast %140 : vector<2x1x16x16xf32> to vector<2x16x16xf32>
    %142 = arith.subf %5, %141 : vector<2x16x16xf32>
    %c0_125 = arith.constant 0 : index
    %c2_126 = arith.constant 2 : index
    %c0_127 = arith.constant 0 : index
    %c2_128 = arith.constant 2 : index
    %143 = vector.load %arg1[%c0_125, %c2_126, %c0_127, %c2_128] : memref<2x4x18x18xf32, #tpu.memory_space<vmem>>, vector<2x1x16x16xf32>
    %144 = vector.shape_cast %143 : vector<2x1x16x16xf32> to vector<2x16x16xf32>
    %145 = arith.subf %13, %144 : vector<2x16x16xf32>
    %146 = arith.mulf %142, %142 : vector<2x16x16xf32>
    %147 = arith.addf %137, %146 : vector<2x16x16xf32>
    %148 = arith.mulf %145, %145 : vector<2x16x16xf32>
    %149 = arith.addf %139, %148 : vector<2x16x16xf32>
    %c0_129 = arith.constant 0 : index
    %c3_130 = arith.constant 3 : index
    %c0_131 = arith.constant 0 : index
    %c2_132 = arith.constant 2 : index
    %150 = vector.load %arg0[%c0_129, %c3_130, %c0_131, %c2_132] : memref<2x4x18x18xf32, #tpu.memory_space<vmem>>, vector<2x1x16x16xf32>
    %151 = vector.shape_cast %150 : vector<2x1x16x16xf32> to vector<2x16x16xf32>
    %152 = arith.subf %7, %151 : vector<2x16x16xf32>
    %c0_133 = arith.constant 0 : index
    %c3_134 = arith.constant 3 : index
    %c0_135 = arith.constant 0 : index
    %c2_136 = arith.constant 2 : index
    %153 = vector.load %arg1[%c0_133, %c3_134, %c0_135, %c2_136] : memref<2x4x18x18xf32, #tpu.memory_space<vmem>>, vector<2x1x16x16xf32>
    %154 = vector.shape_cast %153 : vector<2x1x16x16xf32> to vector<2x16x16xf32>
    %155 = arith.subf %15, %154 : vector<2x16x16xf32>
    %156 = arith.mulf %152, %152 : vector<2x16x16xf32>
    %157 = arith.addf %147, %156 : vector<2x16x16xf32>
    %158 = arith.mulf %155, %155 : vector<2x16x16xf32>
    %159 = arith.addf %149, %158 : vector<2x16x16xf32>
    %cst_137 = arith.constant 5.000000e-01 : f32
    %160 = vector.broadcast %cst_137 : f32 to vector<2x16x16xf32>
    %161 = arith.cmpf ogt, %159, %160 : vector<2x16x16xf32>
    %cst_138 = arith.constant 0xFF800000 : f32
    %162 = vector.broadcast %cst_138 : f32 to vector<2x16x16xf32>
    %163 = arith.select %161, %162, %157 : vector<2x16x16xi1>, vector<2x16x16xf32>
    %164 = arith.maximumf %114, %163 : vector<2x16x16xf32>
    %cst_139 = arith.constant 0x7F800000 : f32
    %165 = vector.broadcast %cst_139 : f32 to vector<2x16x16xf32>
    %166 = arith.select %161, %157, %165 : vector<2x16x16xi1>, vector<2x16x16xf32>
    %167 = arith.minimumf %117, %166 : vector<2x16x16xf32>
    %cst_140 = arith.constant 0.000000e+00 : f32
    %168 = vector.broadcast %cst_140 : f32 to vector<2x16x16xf32>
    %cst_141 = arith.constant 0.000000e+00 : f32
    %169 = vector.broadcast %cst_141 : f32 to vector<2x16x16xf32>
    %c0_142 = arith.constant 0 : index
    %c0_143 = arith.constant 0 : index
    %c1_144 = arith.constant 1 : index
    %c0_145 = arith.constant 0 : index
    %170 = vector.load %arg0[%c0_142, %c0_143, %c1_144, %c0_145] : memref<2x4x18x18xf32, #tpu.memory_space<vmem>>, vector<2x1x16x16xf32>
    %171 = vector.shape_cast %170 : vector<2x1x16x16xf32> to vector<2x16x16xf32>
    %172 = arith.subf %1, %171 : vector<2x16x16xf32>
    %c0_146 = arith.constant 0 : index
    %c0_147 = arith.constant 0 : index
    %c1_148 = arith.constant 1 : index
    %c0_149 = arith.constant 0 : index
    %173 = vector.load %arg1[%c0_146, %c0_147, %c1_148, %c0_149] : memref<2x4x18x18xf32, #tpu.memory_space<vmem>>, vector<2x1x16x16xf32>
    %174 = vector.shape_cast %173 : vector<2x1x16x16xf32> to vector<2x16x16xf32>
    %175 = arith.subf %9, %174 : vector<2x16x16xf32>
    %176 = arith.mulf %172, %172 : vector<2x16x16xf32>
    %177 = arith.addf %168, %176 : vector<2x16x16xf32>
    %178 = arith.mulf %175, %175 : vector<2x16x16xf32>
    %179 = arith.addf %169, %178 : vector<2x16x16xf32>
    %c0_150 = arith.constant 0 : index
    %c1_151 = arith.constant 1 : index
    %c1_152 = arith.constant 1 : index
    %c0_153 = arith.constant 0 : index
    %180 = vector.load %arg0[%c0_150, %c1_151, %c1_152, %c0_153] : memref<2x4x18x18xf32, #tpu.memory_space<vmem>>, vector<2x1x16x16xf32>
    %181 = vector.shape_cast %180 : vector<2x1x16x16xf32> to vector<2x16x16xf32>
    %182 = arith.subf %3, %181 : vector<2x16x16xf32>
    %c0_154 = arith.constant 0 : index
    %c1_155 = arith.constant 1 : index
    %c1_156 = arith.constant 1 : index
    %c0_157 = arith.constant 0 : index
    %183 = vector.load %arg1[%c0_154, %c1_155, %c1_156, %c0_157] : memref<2x4x18x18xf32, #tpu.memory_space<vmem>>, vector<2x1x16x16xf32>
    %184 = vector.shape_cast %183 : vector<2x1x16x16xf32> to vector<2x16x16xf32>
    %185 = arith.subf %11, %184 : vector<2x16x16xf32>
    %186 = arith.mulf %182, %182 : vector<2x16x16xf32>
    %187 = arith.addf %177, %186 : vector<2x16x16xf32>
    %188 = arith.mulf %185, %185 : vector<2x16x16xf32>
    %189 = arith.addf %179, %188 : vector<2x16x16xf32>
    %c0_158 = arith.constant 0 : index
    %c2_159 = arith.constant 2 : index
    %c1_160 = arith.constant 1 : index
    %c0_161 = arith.constant 0 : index
    %190 = vector.load %arg0[%c0_158, %c2_159, %c1_160, %c0_161] : memref<2x4x18x18xf32, #tpu.memory_space<vmem>>, vector<2x1x16x16xf32>
    %191 = vector.shape_cast %190 : vector<2x1x16x16xf32> to vector<2x16x16xf32>
    %192 = arith.subf %5, %191 : vector<2x16x16xf32>
    %c0_162 = arith.constant 0 : index
    %c2_163 = arith.constant 2 : index
    %c1_164 = arith.constant 1 : index
    %c0_165 = arith.constant 0 : index
    %193 = vector.load %arg1[%c0_162, %c2_163, %c1_164, %c0_165] : memref<2x4x18x18xf32, #tpu.memory_space<vmem>>, vector<2x1x16x16xf32>
    %194 = vector.shape_cast %193 : vector<2x1x16x16xf32> to vector<2x16x16xf32>
    %195 = arith.subf %13, %194 : vector<2x16x16xf32>
    %196 = arith.mulf %192, %192 : vector<2x16x16xf32>
    %197 = arith.addf %187, %196 : vector<2x16x16xf32>
    %198 = arith.mulf %195, %195 : vector<2x16x16xf32>
    %199 = arith.addf %189, %198 : vector<2x16x16xf32>
    %c0_166 = arith.constant 0 : index
    %c3_167 = arith.constant 3 : index
    %c1_168 = arith.constant 1 : index
    %c0_169 = arith.constant 0 : index
    %200 = vector.load %arg0[%c0_166, %c3_167, %c1_168, %c0_169] : memref<2x4x18x18xf32, #tpu.memory_space<vmem>>, vector<2x1x16x16xf32>
    %201 = vector.shape_cast %200 : vector<2x1x16x16xf32> to vector<2x16x16xf32>
    %202 = arith.subf %7, %201 : vector<2x16x16xf32>
    %c0_170 = arith.constant 0 : index
    %c3_171 = arith.constant 3 : index
    %c1_172 = arith.constant 1 : index
    %c0_173 = arith.constant 0 : index
    %203 = vector.load %arg1[%c0_170, %c3_171, %c1_172, %c0_173] : memref<2x4x18x18xf32, #tpu.memory_space<vmem>>, vector<2x1x16x16xf32>
    %204 = vector.shape_cast %203 : vector<2x1x16x16xf32> to vector<2x16x16xf32>
    %205 = arith.subf %15, %204 : vector<2x16x16xf32>
    %206 = arith.mulf %202, %202 : vector<2x16x16xf32>
    %207 = arith.addf %197, %206 : vector<2x16x16xf32>
    %208 = arith.mulf %205, %205 : vector<2x16x16xf32>
    %209 = arith.addf %199, %208 : vector<2x16x16xf32>
    %cst_174 = arith.constant 5.000000e-01 : f32
    %210 = vector.broadcast %cst_174 : f32 to vector<2x16x16xf32>
    %211 = arith.cmpf ogt, %209, %210 : vector<2x16x16xf32>
    %cst_175 = arith.constant 0xFF800000 : f32
    %212 = vector.broadcast %cst_175 : f32 to vector<2x16x16xf32>
    %213 = arith.select %211, %212, %207 : vector<2x16x16xi1>, vector<2x16x16xf32>
    %214 = arith.maximumf %164, %213 : vector<2x16x16xf32>
    %cst_176 = arith.constant 0x7F800000 : f32
    %215 = vector.broadcast %cst_176 : f32 to vector<2x16x16xf32>
    %216 = arith.select %211, %207, %215 : vector<2x16x16xi1>, vector<2x16x16xf32>
    %217 = arith.minimumf %167, %216 : vector<2x16x16xf32>
    %cst_177 = arith.constant 0.000000e+00 : f32
    %218 = vector.broadcast %cst_177 : f32 to vector<2x16x16xf32>
    %cst_178 = arith.constant 0.000000e+00 : f32
    %219 = vector.broadcast %cst_178 : f32 to vector<2x16x16xf32>
    %c0_179 = arith.constant 0 : index
    %c0_180 = arith.constant 0 : index
    %c1_181 = arith.constant 1 : index
    %c2_182 = arith.constant 2 : index
    %220 = vector.load %arg0[%c0_179, %c0_180, %c1_181, %c2_182] : memref<2x4x18x18xf32, #tpu.memory_space<vmem>>, vector<2x1x16x16xf32>
    %221 = vector.shape_cast %220 : vector<2x1x16x16xf32> to vector<2x16x16xf32>
    %222 = arith.subf %1, %221 : vector<2x16x16xf32>
    %c0_183 = arith.constant 0 : index
    %c0_184 = arith.constant 0 : index
    %c1_185 = arith.constant 1 : index
    %c2_186 = arith.constant 2 : index
    %223 = vector.load %arg1[%c0_183, %c0_184, %c1_185, %c2_186] : memref<2x4x18x18xf32, #tpu.memory_space<vmem>>, vector<2x1x16x16xf32>
    %224 = vector.shape_cast %223 : vector<2x1x16x16xf32> to vector<2x16x16xf32>
    %225 = arith.subf %9, %224 : vector<2x16x16xf32>
    %226 = arith.mulf %222, %222 : vector<2x16x16xf32>
    %227 = arith.addf %218, %226 : vector<2x16x16xf32>
    %228 = arith.mulf %225, %225 : vector<2x16x16xf32>
    %229 = arith.addf %219, %228 : vector<2x16x16xf32>
    %c0_187 = arith.constant 0 : index
    %c1_188 = arith.constant 1 : index
    %c1_189 = arith.constant 1 : index
    %c2_190 = arith.constant 2 : index
    %230 = vector.load %arg0[%c0_187, %c1_188, %c1_189, %c2_190] : memref<2x4x18x18xf32, #tpu.memory_space<vmem>>, vector<2x1x16x16xf32>
    %231 = vector.shape_cast %230 : vector<2x1x16x16xf32> to vector<2x16x16xf32>
    %232 = arith.subf %3, %231 : vector<2x16x16xf32>
    %c0_191 = arith.constant 0 : index
    %c1_192 = arith.constant 1 : index
    %c1_193 = arith.constant 1 : index
    %c2_194 = arith.constant 2 : index
    %233 = vector.load %arg1[%c0_191, %c1_192, %c1_193, %c2_194] : memref<2x4x18x18xf32, #tpu.memory_space<vmem>>, vector<2x1x16x16xf32>
    %234 = vector.shape_cast %233 : vector<2x1x16x16xf32> to vector<2x16x16xf32>
    %235 = arith.subf %11, %234 : vector<2x16x16xf32>
    %236 = arith.mulf %232, %232 : vector<2x16x16xf32>
    %237 = arith.addf %227, %236 : vector<2x16x16xf32>
    %238 = arith.mulf %235, %235 : vector<2x16x16xf32>
    %239 = arith.addf %229, %238 : vector<2x16x16xf32>
    %c0_195 = arith.constant 0 : index
    %c2_196 = arith.constant 2 : index
    %c1_197 = arith.constant 1 : index
    %c2_198 = arith.constant 2 : index
    %240 = vector.load %arg0[%c0_195, %c2_196, %c1_197, %c2_198] : memref<2x4x18x18xf32, #tpu.memory_space<vmem>>, vector<2x1x16x16xf32>
    %241 = vector.shape_cast %240 : vector<2x1x16x16xf32> to vector<2x16x16xf32>
    %242 = arith.subf %5, %241 : vector<2x16x16xf32>
    %c0_199 = arith.constant 0 : index
    %c2_200 = arith.constant 2 : index
    %c1_201 = arith.constant 1 : index
    %c2_202 = arith.constant 2 : index
    %243 = vector.load %arg1[%c0_199, %c2_200, %c1_201, %c2_202] : memref<2x4x18x18xf32, #tpu.memory_space<vmem>>, vector<2x1x16x16xf32>
    %244 = vector.shape_cast %243 : vector<2x1x16x16xf32> to vector<2x16x16xf32>
    %245 = arith.subf %13, %244 : vector<2x16x16xf32>
    %246 = arith.mulf %242, %242 : vector<2x16x16xf32>
    %247 = arith.addf %237, %246 : vector<2x16x16xf32>
    %248 = arith.mulf %245, %245 : vector<2x16x16xf32>
    %249 = arith.addf %239, %248 : vector<2x16x16xf32>
    %c0_203 = arith.constant 0 : index
    %c3_204 = arith.constant 3 : index
    %c1_205 = arith.constant 1 : index
    %c2_206 = arith.constant 2 : index
    %250 = vector.load %arg0[%c0_203, %c3_204, %c1_205, %c2_206] : memref<2x4x18x18xf32, #tpu.memory_space<vmem>>, vector<2x1x16x16xf32>
    %251 = vector.shape_cast %250 : vector<2x1x16x16xf32> to vector<2x16x16xf32>
    %252 = arith.subf %7, %251 : vector<2x16x16xf32>
    %c0_207 = arith.constant 0 : index
    %c3_208 = arith.constant 3 : index
    %c1_209 = arith.constant 1 : index
    %c2_210 = arith.constant 2 : index
    %253 = vector.load %arg1[%c0_207, %c3_208, %c1_209, %c2_210] : memref<2x4x18x18xf32, #tpu.memory_space<vmem>>, vector<2x1x16x16xf32>
    %254 = vector.shape_cast %253 : vector<2x1x16x16xf32> to vector<2x16x16xf32>
    %255 = arith.subf %15, %254 : vector<2x16x16xf32>
    %256 = arith.mulf %252, %252 : vector<2x16x16xf32>
    %257 = arith.addf %247, %256 : vector<2x16x16xf32>
    %258 = arith.mulf %255, %255 : vector<2x16x16xf32>
    %259 = arith.addf %249, %258 : vector<2x16x16xf32>
    %cst_211 = arith.constant 5.000000e-01 : f32
    %260 = vector.broadcast %cst_211 : f32 to vector<2x16x16xf32>
    %261 = arith.cmpf ogt, %259, %260 : vector<2x16x16xf32>
    %cst_212 = arith.constant 0xFF800000 : f32
    %262 = vector.broadcast %cst_212 : f32 to vector<2x16x16xf32>
    %263 = arith.select %261, %262, %257 : vector<2x16x16xi1>, vector<2x16x16xf32>
    %264 = arith.maximumf %214, %263 : vector<2x16x16xf32>
    %cst_213 = arith.constant 0x7F800000 : f32
    %265 = vector.broadcast %cst_213 : f32 to vector<2x16x16xf32>
    %266 = arith.select %261, %257, %265 : vector<2x16x16xi1>, vector<2x16x16xf32>
    %267 = arith.minimumf %217, %266 : vector<2x16x16xf32>
    %cst_214 = arith.constant 0.000000e+00 : f32
    %268 = vector.broadcast %cst_214 : f32 to vector<2x16x16xf32>
    %cst_215 = arith.constant 0.000000e+00 : f32
    %269 = vector.broadcast %cst_215 : f32 to vector<2x16x16xf32>
    %c0_216 = arith.constant 0 : index
    %c0_217 = arith.constant 0 : index
    %c2_218 = arith.constant 2 : index
    %c0_219 = arith.constant 0 : index
    %270 = vector.load %arg0[%c0_216, %c0_217, %c2_218, %c0_219] : memref<2x4x18x18xf32, #tpu.memory_space<vmem>>, vector<2x1x16x16xf32>
    %271 = vector.shape_cast %270 : vector<2x1x16x16xf32> to vector<2x16x16xf32>
    %272 = arith.subf %1, %271 : vector<2x16x16xf32>
    %c0_220 = arith.constant 0 : index
    %c0_221 = arith.constant 0 : index
    %c2_222 = arith.constant 2 : index
    %c0_223 = arith.constant 0 : index
    %273 = vector.load %arg1[%c0_220, %c0_221, %c2_222, %c0_223] : memref<2x4x18x18xf32, #tpu.memory_space<vmem>>, vector<2x1x16x16xf32>
    %274 = vector.shape_cast %273 : vector<2x1x16x16xf32> to vector<2x16x16xf32>
    %275 = arith.subf %9, %274 : vector<2x16x16xf32>
    %276 = arith.mulf %272, %272 : vector<2x16x16xf32>
    %277 = arith.addf %268, %276 : vector<2x16x16xf32>
    %278 = arith.mulf %275, %275 : vector<2x16x16xf32>
    %279 = arith.addf %269, %278 : vector<2x16x16xf32>
    %c0_224 = arith.constant 0 : index
    %c1_225 = arith.constant 1 : index
    %c2_226 = arith.constant 2 : index
    %c0_227 = arith.constant 0 : index
    %280 = vector.load %arg0[%c0_224, %c1_225, %c2_226, %c0_227] : memref<2x4x18x18xf32, #tpu.memory_space<vmem>>, vector<2x1x16x16xf32>
    %281 = vector.shape_cast %280 : vector<2x1x16x16xf32> to vector<2x16x16xf32>
    %282 = arith.subf %3, %281 : vector<2x16x16xf32>
    %c0_228 = arith.constant 0 : index
    %c1_229 = arith.constant 1 : index
    %c2_230 = arith.constant 2 : index
    %c0_231 = arith.constant 0 : index
    %283 = vector.load %arg1[%c0_228, %c1_229, %c2_230, %c0_231] : memref<2x4x18x18xf32, #tpu.memory_space<vmem>>, vector<2x1x16x16xf32>
    %284 = vector.shape_cast %283 : vector<2x1x16x16xf32> to vector<2x16x16xf32>
    %285 = arith.subf %11, %284 : vector<2x16x16xf32>
    %286 = arith.mulf %282, %282 : vector<2x16x16xf32>
    %287 = arith.addf %277, %286 : vector<2x16x16xf32>
    %288 = arith.mulf %285, %285 : vector<2x16x16xf32>
    %289 = arith.addf %279, %288 : vector<2x16x16xf32>
    %c0_232 = arith.constant 0 : index
    %c2_233 = arith.constant 2 : index
    %c2_234 = arith.constant 2 : index
    %c0_235 = arith.constant 0 : index
    %290 = vector.load %arg0[%c0_232, %c2_233, %c2_234, %c0_235] : memref<2x4x18x18xf32, #tpu.memory_space<vmem>>, vector<2x1x16x16xf32>
    %291 = vector.shape_cast %290 : vector<2x1x16x16xf32> to vector<2x16x16xf32>
    %292 = arith.subf %5, %291 : vector<2x16x16xf32>
    %c0_236 = arith.constant 0 : index
    %c2_237 = arith.constant 2 : index
    %c2_238 = arith.constant 2 : index
    %c0_239 = arith.constant 0 : index
    %293 = vector.load %arg1[%c0_236, %c2_237, %c2_238, %c0_239] : memref<2x4x18x18xf32, #tpu.memory_space<vmem>>, vector<2x1x16x16xf32>
    %294 = vector.shape_cast %293 : vector<2x1x16x16xf32> to vector<2x16x16xf32>
    %295 = arith.subf %13, %294 : vector<2x16x16xf32>
    %296 = arith.mulf %292, %292 : vector<2x16x16xf32>
    %297 = arith.addf %287, %296 : vector<2x16x16xf32>
    %298 = arith.mulf %295, %295 : vector<2x16x16xf32>
    %299 = arith.addf %289, %298 : vector<2x16x16xf32>
    %c0_240 = arith.constant 0 : index
    %c3_241 = arith.constant 3 : index
    %c2_242 = arith.constant 2 : index
    %c0_243 = arith.constant 0 : index
    %300 = vector.load %arg0[%c0_240, %c3_241, %c2_242, %c0_243] : memref<2x4x18x18xf32, #tpu.memory_space<vmem>>, vector<2x1x16x16xf32>
    %301 = vector.shape_cast %300 : vector<2x1x16x16xf32> to vector<2x16x16xf32>
    %302 = arith.subf %7, %301 : vector<2x16x16xf32>
    %c0_244 = arith.constant 0 : index
    %c3_245 = arith.constant 3 : index
    %c2_246 = arith.constant 2 : index
    %c0_247 = arith.constant 0 : index
    %303 = vector.load %arg1[%c0_244, %c3_245, %c2_246, %c0_247] : memref<2x4x18x18xf32, #tpu.memory_space<vmem>>, vector<2x1x16x16xf32>
    %304 = vector.shape_cast %303 : vector<2x1x16x16xf32> to vector<2x16x16xf32>
    %305 = arith.subf %15, %304 : vector<2x16x16xf32>
    %306 = arith.mulf %302, %302 : vector<2x16x16xf32>
    %307 = arith.addf %297, %306 : vector<2x16x16xf32>
    %308 = arith.mulf %305, %305 : vector<2x16x16xf32>
    %309 = arith.addf %299, %308 : vector<2x16x16xf32>
    %cst_248 = arith.constant 5.000000e-01 : f32
    %310 = vector.broadcast %cst_248 : f32 to vector<2x16x16xf32>
    %311 = arith.cmpf ogt, %309, %310 : vector<2x16x16xf32>
    %cst_249 = arith.constant 0xFF800000 : f32
    %312 = vector.broadcast %cst_249 : f32 to vector<2x16x16xf32>
    %313 = arith.select %311, %312, %307 : vector<2x16x16xi1>, vector<2x16x16xf32>
    %314 = arith.maximumf %264, %313 : vector<2x16x16xf32>
    %cst_250 = arith.constant 0x7F800000 : f32
    %315 = vector.broadcast %cst_250 : f32 to vector<2x16x16xf32>
    %316 = arith.select %311, %307, %315 : vector<2x16x16xi1>, vector<2x16x16xf32>
    %317 = arith.minimumf %267, %316 : vector<2x16x16xf32>
    %cst_251 = arith.constant 0.000000e+00 : f32
    %318 = vector.broadcast %cst_251 : f32 to vector<2x16x16xf32>
    %cst_252 = arith.constant 0.000000e+00 : f32
    %319 = vector.broadcast %cst_252 : f32 to vector<2x16x16xf32>
    %c0_253 = arith.constant 0 : index
    %c0_254 = arith.constant 0 : index
    %c2_255 = arith.constant 2 : index
    %c1_256 = arith.constant 1 : index
    %320 = vector.load %arg0[%c0_253, %c0_254, %c2_255, %c1_256] : memref<2x4x18x18xf32, #tpu.memory_space<vmem>>, vector<2x1x16x16xf32>
    %321 = vector.shape_cast %320 : vector<2x1x16x16xf32> to vector<2x16x16xf32>
    %322 = arith.subf %1, %321 : vector<2x16x16xf32>
    %c0_257 = arith.constant 0 : index
    %c0_258 = arith.constant 0 : index
    %c2_259 = arith.constant 2 : index
    %c1_260 = arith.constant 1 : index
    %323 = vector.load %arg1[%c0_257, %c0_258, %c2_259, %c1_260] : memref<2x4x18x18xf32, #tpu.memory_space<vmem>>, vector<2x1x16x16xf32>
    %324 = vector.shape_cast %323 : vector<2x1x16x16xf32> to vector<2x16x16xf32>
    %325 = arith.subf %9, %324 : vector<2x16x16xf32>
    %326 = arith.mulf %322, %322 : vector<2x16x16xf32>
    %327 = arith.addf %318, %326 : vector<2x16x16xf32>
    %328 = arith.mulf %325, %325 : vector<2x16x16xf32>
    %329 = arith.addf %319, %328 : vector<2x16x16xf32>
    %c0_261 = arith.constant 0 : index
    %c1_262 = arith.constant 1 : index
    %c2_263 = arith.constant 2 : index
    %c1_264 = arith.constant 1 : index
    %330 = vector.load %arg0[%c0_261, %c1_262, %c2_263, %c1_264] : memref<2x4x18x18xf32, #tpu.memory_space<vmem>>, vector<2x1x16x16xf32>
    %331 = vector.shape_cast %330 : vector<2x1x16x16xf32> to vector<2x16x16xf32>
    %332 = arith.subf %3, %331 : vector<2x16x16xf32>
    %c0_265 = arith.constant 0 : index
    %c1_266 = arith.constant 1 : index
    %c2_267 = arith.constant 2 : index
    %c1_268 = arith.constant 1 : index
    %333 = vector.load %arg1[%c0_265, %c1_266, %c2_267, %c1_268] : memref<2x4x18x18xf32, #tpu.memory_space<vmem>>, vector<2x1x16x16xf32>
    %334 = vector.shape_cast %333 : vector<2x1x16x16xf32> to vector<2x16x16xf32>
    %335 = arith.subf %11, %334 : vector<2x16x16xf32>
    %336 = arith.mulf %332, %332 : vector<2x16x16xf32>
    %337 = arith.addf %327, %336 : vector<2x16x16xf32>
    %338 = arith.mulf %335, %335 : vector<2x16x16xf32>
    %339 = arith.addf %329, %338 : vector<2x16x16xf32>
    %c0_269 = arith.constant 0 : index
    %c2_270 = arith.constant 2 : index
    %c2_271 = arith.constant 2 : index
    %c1_272 = arith.constant 1 : index
    %340 = vector.load %arg0[%c0_269, %c2_270, %c2_271, %c1_272] : memref<2x4x18x18xf32, #tpu.memory_space<vmem>>, vector<2x1x16x16xf32>
    %341 = vector.shape_cast %340 : vector<2x1x16x16xf32> to vector<2x16x16xf32>
    %342 = arith.subf %5, %341 : vector<2x16x16xf32>
    %c0_273 = arith.constant 0 : index
    %c2_274 = arith.constant 2 : index
    %c2_275 = arith.constant 2 : index
    %c1_276 = arith.constant 1 : index
    %343 = vector.load %arg1[%c0_273, %c2_274, %c2_275, %c1_276] : memref<2x4x18x18xf32, #tpu.memory_space<vmem>>, vector<2x1x16x16xf32>
    %344 = vector.shape_cast %343 : vector<2x1x16x16xf32> to vector<2x16x16xf32>
    %345 = arith.subf %13, %344 : vector<2x16x16xf32>
    %346 = arith.mulf %342, %342 : vector<2x16x16xf32>
    %347 = arith.addf %337, %346 : vector<2x16x16xf32>
    %348 = arith.mulf %345, %345 : vector<2x16x16xf32>
    %349 = arith.addf %339, %348 : vector<2x16x16xf32>
    %c0_277 = arith.constant 0 : index
    %c3_278 = arith.constant 3 : index
    %c2_279 = arith.constant 2 : index
    %c1_280 = arith.constant 1 : index
    %350 = vector.load %arg0[%c0_277, %c3_278, %c2_279, %c1_280] : memref<2x4x18x18xf32, #tpu.memory_space<vmem>>, vector<2x1x16x16xf32>
    %351 = vector.shape_cast %350 : vector<2x1x16x16xf32> to vector<2x16x16xf32>
    %352 = arith.subf %7, %351 : vector<2x16x16xf32>
    %c0_281 = arith.constant 0 : index
    %c3_282 = arith.constant 3 : index
    %c2_283 = arith.constant 2 : index
    %c1_284 = arith.constant 1 : index
    %353 = vector.load %arg1[%c0_281, %c3_282, %c2_283, %c1_284] : memref<2x4x18x18xf32, #tpu.memory_space<vmem>>, vector<2x1x16x16xf32>
    %354 = vector.shape_cast %353 : vector<2x1x16x16xf32> to vector<2x16x16xf32>
    %355 = arith.subf %15, %354 : vector<2x16x16xf32>
    %356 = arith.mulf %352, %352 : vector<2x16x16xf32>
    %357 = arith.addf %347, %356 : vector<2x16x16xf32>
    %358 = arith.mulf %355, %355 : vector<2x16x16xf32>
    %359 = arith.addf %349, %358 : vector<2x16x16xf32>
    %cst_285 = arith.constant 5.000000e-01 : f32
    %360 = vector.broadcast %cst_285 : f32 to vector<2x16x16xf32>
    %361 = arith.cmpf ogt, %359, %360 : vector<2x16x16xf32>
    %cst_286 = arith.constant 0xFF800000 : f32
    %362 = vector.broadcast %cst_286 : f32 to vector<2x16x16xf32>
    %363 = arith.select %361, %362, %357 : vector<2x16x16xi1>, vector<2x16x16xf32>
    %364 = arith.maximumf %314, %363 : vector<2x16x16xf32>
    %cst_287 = arith.constant 0x7F800000 : f32
    %365 = vector.broadcast %cst_287 : f32 to vector<2x16x16xf32>
    %366 = arith.select %361, %357, %365 : vector<2x16x16xi1>, vector<2x16x16xf32>
    %367 = arith.minimumf %317, %366 : vector<2x16x16xf32>
    %cst_288 = arith.constant 0.000000e+00 : f32
    %368 = vector.broadcast %cst_288 : f32 to vector<2x16x16xf32>
    %cst_289 = arith.constant 0.000000e+00 : f32
    %369 = vector.broadcast %cst_289 : f32 to vector<2x16x16xf32>
    %c0_290 = arith.constant 0 : index
    %c0_291 = arith.constant 0 : index
    %c2_292 = arith.constant 2 : index
    %c2_293 = arith.constant 2 : index
    %370 = vector.load %arg0[%c0_290, %c0_291, %c2_292, %c2_293] : memref<2x4x18x18xf32, #tpu.memory_space<vmem>>, vector<2x1x16x16xf32>
    %371 = vector.shape_cast %370 : vector<2x1x16x16xf32> to vector<2x16x16xf32>
    %372 = arith.subf %1, %371 : vector<2x16x16xf32>
    %c0_294 = arith.constant 0 : index
    %c0_295 = arith.constant 0 : index
    %c2_296 = arith.constant 2 : index
    %c2_297 = arith.constant 2 : index
    %373 = vector.load %arg1[%c0_294, %c0_295, %c2_296, %c2_297] : memref<2x4x18x18xf32, #tpu.memory_space<vmem>>, vector<2x1x16x16xf32>
    %374 = vector.shape_cast %373 : vector<2x1x16x16xf32> to vector<2x16x16xf32>
    %375 = arith.subf %9, %374 : vector<2x16x16xf32>
    %376 = arith.mulf %372, %372 : vector<2x16x16xf32>
    %377 = arith.addf %368, %376 : vector<2x16x16xf32>
    %378 = arith.mulf %375, %375 : vector<2x16x16xf32>
    %379 = arith.addf %369, %378 : vector<2x16x16xf32>
    %c0_298 = arith.constant 0 : index
    %c1_299 = arith.constant 1 : index
    %c2_300 = arith.constant 2 : index
    %c2_301 = arith.constant 2 : index
    %380 = vector.load %arg0[%c0_298, %c1_299, %c2_300, %c2_301] : memref<2x4x18x18xf32, #tpu.memory_space<vmem>>, vector<2x1x16x16xf32>
    %381 = vector.shape_cast %380 : vector<2x1x16x16xf32> to vector<2x16x16xf32>
    %382 = arith.subf %3, %381 : vector<2x16x16xf32>
    %c0_302 = arith.constant 0 : index
    %c1_303 = arith.constant 1 : index
    %c2_304 = arith.constant 2 : index
    %c2_305 = arith.constant 2 : index
    %383 = vector.load %arg1[%c0_302, %c1_303, %c2_304, %c2_305] : memref<2x4x18x18xf32, #tpu.memory_space<vmem>>, vector<2x1x16x16xf32>
    %384 = vector.shape_cast %383 : vector<2x1x16x16xf32> to vector<2x16x16xf32>
    %385 = arith.subf %11, %384 : vector<2x16x16xf32>
    %386 = arith.mulf %382, %382 : vector<2x16x16xf32>
    %387 = arith.addf %377, %386 : vector<2x16x16xf32>
    %388 = arith.mulf %385, %385 : vector<2x16x16xf32>
    %389 = arith.addf %379, %388 : vector<2x16x16xf32>
    %c0_306 = arith.constant 0 : index
    %c2_307 = arith.constant 2 : index
    %c2_308 = arith.constant 2 : index
    %c2_309 = arith.constant 2 : index
    %390 = vector.load %arg0[%c0_306, %c2_307, %c2_308, %c2_309] : memref<2x4x18x18xf32, #tpu.memory_space<vmem>>, vector<2x1x16x16xf32>
    %391 = vector.shape_cast %390 : vector<2x1x16x16xf32> to vector<2x16x16xf32>
    %392 = arith.subf %5, %391 : vector<2x16x16xf32>
    %c0_310 = arith.constant 0 : index
    %c2_311 = arith.constant 2 : index
    %c2_312 = arith.constant 2 : index
    %c2_313 = arith.constant 2 : index
    %393 = vector.load %arg1[%c0_310, %c2_311, %c2_312, %c2_313] : memref<2x4x18x18xf32, #tpu.memory_space<vmem>>, vector<2x1x16x16xf32>
    %394 = vector.shape_cast %393 : vector<2x1x16x16xf32> to vector<2x16x16xf32>
    %395 = arith.subf %13, %394 : vector<2x16x16xf32>
    %396 = arith.mulf %392, %392 : vector<2x16x16xf32>
    %397 = arith.addf %387, %396 : vector<2x16x16xf32>
    %398 = arith.mulf %395, %395 : vector<2x16x16xf32>
    %399 = arith.addf %389, %398 : vector<2x16x16xf32>
    %c0_314 = arith.constant 0 : index
    %c3_315 = arith.constant 3 : index
    %c2_316 = arith.constant 2 : index
    %c2_317 = arith.constant 2 : index
    %400 = vector.load %arg0[%c0_314, %c3_315, %c2_316, %c2_317] : memref<2x4x18x18xf32, #tpu.memory_space<vmem>>, vector<2x1x16x16xf32>
    %401 = vector.shape_cast %400 : vector<2x1x16x16xf32> to vector<2x16x16xf32>
    %402 = arith.subf %7, %401 : vector<2x16x16xf32>
    %c0_318 = arith.constant 0 : index
    %c3_319 = arith.constant 3 : index
    %c2_320 = arith.constant 2 : index
    %c2_321 = arith.constant 2 : index
    %403 = vector.load %arg1[%c0_318, %c3_319, %c2_320, %c2_321] : memref<2x4x18x18xf32, #tpu.memory_space<vmem>>, vector<2x1x16x16xf32>
    %404 = vector.shape_cast %403 : vector<2x1x16x16xf32> to vector<2x16x16xf32>
    %405 = arith.subf %15, %404 : vector<2x16x16xf32>
    %406 = arith.mulf %402, %402 : vector<2x16x16xf32>
    %407 = arith.addf %397, %406 : vector<2x16x16xf32>
    %408 = arith.mulf %405, %405 : vector<2x16x16xf32>
    %409 = arith.addf %399, %408 : vector<2x16x16xf32>
    %cst_322 = arith.constant 5.000000e-01 : f32
    %410 = vector.broadcast %cst_322 : f32 to vector<2x16x16xf32>
    %411 = arith.cmpf ogt, %409, %410 : vector<2x16x16xf32>
    %cst_323 = arith.constant 0xFF800000 : f32
    %412 = vector.broadcast %cst_323 : f32 to vector<2x16x16xf32>
    %413 = arith.select %411, %412, %407 : vector<2x16x16xi1>, vector<2x16x16xf32>
    %414 = arith.maximumf %364, %413 : vector<2x16x16xf32>
    %cst_324 = arith.constant 0x7F800000 : f32
    %415 = vector.broadcast %cst_324 : f32 to vector<2x16x16xf32>
    %416 = arith.select %411, %407, %415 : vector<2x16x16xi1>, vector<2x16x16xf32>
    %417 = arith.minimumf %367, %416 : vector<2x16x16xf32>
    %418 = vector.shape_cast %414 : vector<2x16x16xf32> to vector<1x2x16x16xf32>
    %cst_325 = arith.constant dense<0xFF800000> : vector<1xf32>
    %419 = vector.multi_reduction <maximumf>, %418, %cst_325 [1, 2, 3] : vector<1x2x16x16xf32> to vector<1xf32>
    %420 = vector.shape_cast %419 : vector<1xf32> to vector<1x1x1x1xf32>
    %421 = vector.extract %420[0, 0, 0, 0] : f32 from vector<1x1x1x1xf32>
    %cst_326 = arith.constant 1.000000e+01 : f32
    %422 = arith.addf %cst_326, %421 : f32
    %423 = vector.shape_cast %417 : vector<2x16x16xf32> to vector<1x2x16x16xf32>
    %cst_327 = arith.constant dense<0x7F800000> : vector<1xf32>
    %424 = vector.multi_reduction <minimumf>, %423, %cst_327 [1, 2, 3] : vector<1x2x16x16xf32> to vector<1xf32>
    %425 = vector.shape_cast %424 : vector<1xf32> to vector<1x1x1x1xf32>
    %426 = vector.extract %425[0, 0, 0, 0] : f32 from vector<1x1x1x1xf32>
    %427 = arith.subf %422, %426 : f32
    %cst_328 = arith.constant 0.000000e+00 : f32
    %428 = arith.maximumf %427, %cst_328 : f32
    %429 = vector.broadcast %428 : f32 to vector<1x1xf32>
    %c0_329 = arith.constant 0 : index
    %c0_330 = arith.constant 0 : index
    %430 = vector.load %arg2[%c0_329, %c0_330] : memref<1x1xf32, #tpu.memory_space<vmem>>, vector<1x1xf32>
    tpu.vector_store %arg2[%c0_329, %c0_330], %429 {strides = array<i32>} : memref<1x1xf32, #tpu.memory_space<vmem>>, vector<1x1xf32>,
    return
  }
}

</mosaic_0001>

<bundles_post_ra>
// kernel: tpu_custom_call.1
= control target key start
LH: loop header
LB: loop body
LE: loop exit
PB: predicated region body
PF: predicated region fallthrough
CT: control target
= control target key end

     0   :  { %s1949_s13 = smov 1   ;;  %s4290_s0 = inlined_call_operand.vmem [shape: f32[2,4,18,18], index: 0, kind: input, shape index: {}]   ;;  %s4291_s1 = inlined_call_operand.vmem [shape: f32[2,4,18,18], index: 1, kind: input, shape index: {}]   ;;  %s4292_s2 = inlined_call_operand.hbm [shape: f32[1,1], index: 2, kind: output, shape index: {}]  }
   0x1   :  { %v1971_v0 = vld [vmem:[%s4290_s0 + $0x60] sm:$0xff]  ;;  %v1985_v2 = vld [vmem:[%s4290_s0 + $0x68] sm:$0xff]  ;;  %v2032_v9 = vld [vmem:[%s4290_s0 + $0x18] sm:$0xff] }
   0x2   :  { %v1976_v1 = vld [vmem:[%s4290_s0] sm:$0xff]  ;;  %62 = vrot.lane.b32.xlu1 %v1971_v0, %s1949_s13  ;;  %v1990_v3 = vld [vmem:[%s4290_s0 + $0x8] sm:$0xff]  ;;  %v2046_v11 = vld [vmem:[%s4290_s0 + $0x78] sm:$0xff] }
   0x3   :  { %58 = vrot.lane.b32.xlu0 %v1976_v1, %s1949_s13  ;;  %v1999_v4 = vld [vmem:[%s4291_s1 + $0x8] sm:$0xff]  ;;  %v2004_v5 = vld [vmem:[%s4291_s1] sm:$0xff]  ;;  %v2060_v13 = vld [vmem:[%s4291_s1 + $0x18] sm:$0xff] }
   0x4   :  { %v2013_v6 = vld [vmem:[%s4291_s1 + $0x68] sm:$0xff]  ;;  %v2018_v7 = vld [vmem:[%s4291_s1 + $0x60] sm:$0xff] }
   0x5   :  { %v2027_v8 = vld [vmem:[%s4290_s0 + $0x20] sm:$0xff] }
   0x6   :  { %64 = vrot.lane.b32.xlu1 %v1985_v2, %s1949_s13  ;;  %v2041_v10 = vld [vmem:[%s4290_s0 + $0x80] sm:$0xff] }
   0x7   :  { %60 = vrot.lane.b32.xlu0 %v1990_v3, %s1949_s13  ;;  %v2055_v12 = vld [vmem:[%s4291_s1 + $0x20] sm:$0xff] }
   0xa   :  { %84 = vrot.lane.b32.xlu1 %v1999_v4, %s1949_s13 }
   0xb   :  { %82 = vrot.lane.b32.xlu0 %v2004_v5, %s1949_s13 }
   0xe   :  { %88 = vrot.lane.b32.xlu1 %v2013_v6, %s1949_s13 }
   0xf   :  { %86 = vrot.lane.b32.xlu0 %v2018_v7, %s1949_s13 }
  0x12   :  { %124 = vrot.lane.b32.xlu1 %v2027_v8, %s1949_s13 }
  0x13   :  { %122 = vrot.lane.b32.xlu0 %v2032_v9, %s1949_s13 }
  0x16   :  { %128 = vrot.lane.b32.xlu1 %v2041_v10, %s1949_s13 }
  0x17   :  { %126 = vrot.lane.b32.xlu0 %v2046_v11, %s1949_s13 }
  0x18   :  { %7 = vsyncpa [#allocation3], 0  ;;  %v2069_v14 = vld [vmem:[%s4291_s1 + $0x80] sm:$0xff]  ;;  %v2074_v15 = vld [vmem:[%s4291_s1 + $0x78] sm:$0xff]  ;;  %s1950_s20 = smov 127   ;;  %s1951_s24 = smov [#allocation2]  }
  0x19   :  { %v2083_v16 = vld [vmem:[%s4290_s0 + $0x38] sm:$0xff]  ;;  %v2088_v17 = vld [vmem:[%s4290_s0 + $0x30] sm:$0xff]  ;;  %v2144_v25 = vld [vmem:[%s4290_s0 + $0x48] sm:$0xff]  ;;  %s1751_s25 = sshll.u32 %s1951_s24, 4  ;;  %s1952_s27 = smov 0.0   ;;  %s1752_s25 = int_to_ptr.vmem [resolvable:$true] %s1751_s25 }
  0x1a   :  { %148 = vrot.lane.b32.xlu1 %v2055_v12, %s1949_s13  ;;  %v2097_v18 = vld [vmem:[%s4290_s0 + $0x98] sm:$0xff]  ;;  %v2102_v19 = vld [vmem:[%s4290_s0 + $0x90] sm:$0xff]  ;;  %4408 = vst [vmem:[#allocation5_spill] sm:$0xff] %v2144_v25  ;;  %v2158_v27 = vld [vmem:[%s4290_s0 + $0xa8] sm:$0xff]  ;;  %s1925_s29 = scalar_lea.vmem %s1752_s25, 16  ;;  %s1929_s30 = scalar_lea.vmem %s1752_s25, 32 }
  0x1b   :  { %146 = vrot.lane.b32.xlu0 %v2060_v13, %s1949_s13  ;;  %v2111_v20 = vld [vmem:[%s4291_s1 + $0x38] sm:$0xff]  ;;  %v2116_v21 = vld [vmem:[%s4291_s1 + $0x30] sm:$0xff]  ;;  %4410 = vst [vmem:[#allocation7_spill] sm:$0xff] %v2158_v27  ;;  %v2172_v29 = vld [vmem:[%s4291_s1 + $0x48] sm:$0xff]  ;;  %p1926_p0 = scmp.ne.s32.totalorder %s1752_s25, %s1925_s29  ;;  %p1930_p1 = scmp.lt.s32.totalorder %s1752_s25, %s1752_s25 }
  0x1c   :  { %v2125_v22 = vld [vmem:[%s4291_s1 + $0x98] sm:$0xff]  ;;  %v2130_v23 = vld [vmem:[%s4291_s1 + $0x90] sm:$0xff]  ;;  %v2186_v31 = vld [vmem:[%s4291_s1 + $0xa8] sm:$0xff]  ;;  %p1931_p2 = scmp.lt.s32.totalorder %s1929_s30, %s1925_s29 }
  0x1d   :  { %v2139_v24 = vld [vmem:[%s4290_s0 + $0x50] sm:$0xff]  ;;  %4411 = vst [vmem:[#allocation8_spill] sm:$0xff] %v2186_v31  ;;  %v2275_v40 = vld [vmem:[%s4290_s0 + $0x1] sm:$0xff]  ;;  %v2352_v57 = vld [vmem:[%s4290_s0 + $0x19] sm:$0xff] }
  0x1e   :  { %152 = vrot.lane.b32.xlu1 %v2069_v14, %s1949_s13  ;;  %v2153_v26 = vld [vmem:[%s4290_s0 + $0xb0] sm:$0xff]  ;;  %4420 = vst [vmem:[#allocation17_spill] sm:$0xff] %v2275_v40  ;;  %v2293_v44 = vld [vmem:[%s4290_s0 + $0x61] sm:$0xff]  ;;  %v2370_v61 = vld [vmem:[%s4290_s0 + $0x79] sm:$0xff]  ;;  %p1932_p3 = por %p1931_p2, %p1930_p1 }
  0x1f   :  { %150 = vrot.lane.b32.xlu0 %v2074_v15, %s1949_s13  ;;  %4409 = vst [vmem:[#allocation6_spill] sm:$0xff] %v2153_v26  ;;  %v2167_v28 = vld [vmem:[%s4291_s1 + $0x50] sm:$0xff]  ;;  %v2316_v49 = vld [vmem:[%s4291_s1 + $0x1] sm:$0xff]  ;;  %4434 = vst [vmem:[#allocation31_spill] sm:$0xff] %v2370_v61 }
  0x20   :  { %v2181_v30 = vld [vmem:[%s4291_s1 + $0xb0] sm:$0xff]  ;;  %v2334_v53 = vld [vmem:[%s4291_s1 + $0x61] sm:$0xff]  ;;  %p1933_p4 = pnand %p1932_p3, %p1926_p0 }
  0x21   :  { %v2280_v41 = vld [vmem:[%s4290_s0 + $0x9] sm:$0xff]  ;;  %4428 = vst [vmem:[#allocation25_spill] sm:$0xff] %v2334_v53  ;;  %v2347_v56 = vld [vmem:[%s4290_s0 + $0x21] sm:$0xff] }
  0x22   :  { %188 = vrot.lane.b32.xlu1 %v2083_v16, %s1949_s13  ;;  %4421 = vst [vmem:[#allocation18_spill] sm:$0xff] %v2280_v41  ;;  %v2298_v45 = vld [vmem:[%s4290_s0 + $0x69] sm:$0xff]  ;;  %v2365_v60 = vld [vmem:[%s4290_s0 + $0x81] sm:$0xff] }
  0x23   :  { %186 = vrot.lane.b32.xlu0 %v2088_v17, %s1949_s13  ;;  %v2311_v48 = vld [vmem:[%s4291_s1 + $0x9] sm:$0xff]  ;;  %4433 = vst [vmem:[#allocation30_spill] sm:$0xff] %v2365_v60 }
  0x24   :  { %v2329_v52 = vld [vmem:[%s4291_s1 + $0x69] sm:$0xff] }
  0x26   :  { %192 = vrot.lane.b32.xlu1 %v2097_v18, %s1949_s13 }
  0x27   :  { %190 = vrot.lane.b32.xlu0 %v2102_v19, %s1949_s13 }
  0x2a   :  { %212 = vrot.lane.b32.xlu1 %v2111_v20, %s1949_s13 }
  0x2b   :  { %210 = vrot.lane.b32.xlu0 %v2116_v21, %s1949_s13 }
  0x2e   :  { %216 = vrot.lane.b32.xlu1 %v2125_v22, %s1949_s13 }
  0x2f   :  { %214 = vrot.lane.b32.xlu0 %v2130_v23, %s1949_s13 }
  0x32   :  { %252 = vrot.lane.b32.xlu1 %v2139_v24, %s1949_s13 }
  0x33   :  { %250 = vrot.lane.b32.xlu0 %v2144_v25, %s1949_s13 }
  0x36   :  { %256 = vrot.lane.b32.xlu1 %v2153_v26, %s1949_s13 }
  0x37   :  { %254 = vrot.lane.b32.xlu0 %v2158_v27, %s1949_s13 }
  0x3a   :  { %276 = vrot.lane.b32.xlu1 %v2167_v28, %s1949_s13 }
  0x3b   :  { %274 = vrot.lane.b32.xlu0 %v2172_v29, %s1949_s13 }
  0x3e   :  { %280 = vrot.lane.b32.xlu1 %v2181_v30, %s1949_s13 }
  0x3f   :  { %278 = vrot.lane.b32.xlu0 %v2186_v31, %s1949_s13 }
  0x42   :  { %436 = vrot.lane.b32.xlu1 %v1990_v3, %s1950_s20 }
  0x43   :  { %434 = vrot.lane.b32.xlu0 %v1976_v1, %s1950_s20 }
  0x46   :  { %440 = vrot.lane.b32.xlu1 %v1985_v2, %s1950_s20 }
  0x47   :  { %438 = vrot.lane.b32.xlu0 %v1971_v0, %s1950_s20 }
  0x4a   :  { %452 = vrot.lane.b32.xlu1 %v1999_v4, %s1950_s20 }
  0x4b   :  { %450 = vrot.lane.b32.xlu0 %v2004_v5, %s1950_s20 }
  0x4e   :  { %456 = vrot.lane.b32.xlu1 %v2013_v6, %s1950_s20 }
  0x4f   :  { %454 = vrot.lane.b32.xlu0 %v2018_v7, %s1950_s20 }
  0x52   :  { %484 = vrot.lane.b32.xlu1 %v2027_v8, %s1950_s20 }
  0x53   :  { %482 = vrot.lane.b32.xlu0 %v2032_v9, %s1950_s20 }
  0x56   :  { %488 = vrot.lane.b32.xlu1 %v2041_v10, %s1950_s20 }
  0x57   :  { %486 = vrot.lane.b32.xlu0 %v2046_v11, %s1950_s20 }
  0x5a   :  { %500 = vrot.lane.b32.xlu1 %v2055_v12, %s1950_s20 }
  0x5b   :  { %498 = vrot.lane.b32.xlu0 %v2060_v13, %s1950_s20 }
  0x5e   :  { %504 = vrot.lane.b32.xlu1 %v2069_v14, %s1950_s20 }
  0x5f   :  { %502 = vrot.lane.b32.xlu0 %v2074_v15, %s1950_s20 }
  0x62   :  { %532 = vrot.lane.b32.xlu1 %v2083_v16, %s1950_s20 }
  0x63   :  { %530 = vrot.lane.b32.xlu0 %v2088_v17, %s1950_s20 }
  0x66   :  { %536 = vrot.lane.b32.xlu1 %v2097_v18, %s1950_s20 }
  0x67   :  { %534 = vrot.lane.b32.xlu0 %v2102_v19, %s1950_s20 }
  0x6a   :  { %548 = vrot.lane.b32.xlu1 %v2111_v20, %s1950_s20 }
  0x6b   :  { %546 = vrot.lane.b32.xlu0 %v2116_v21, %s1950_s20 }
  0x6e   :  { %552 = vrot.lane.b32.xlu1 %v2125_v22, %s1950_s20 }
  0x6f   :  { %550 = vrot.lane.b32.xlu0 %v2130_v23, %s1950_s20 }
  0x72   :  { %580 = vrot.lane.b32.xlu1 %v2139_v24, %s1950_s20 }
  0x73   :  { %578 = vrot.lane.b32.xlu0 %v2144_v25, %s1950_s20 }
  0x74   :  { %v2244_v32 = vpop.permute.xlu1 %62 }
  0x75   :  { %4412 = vst [vmem:[#allocation9_spill] sm:$0xff] %v2244_v32  ;;  %v2246_v33 = vpop.permute.xlu0 %58 }
  0x76   :  { %4413 = vst [vmem:[#allocation10_spill] sm:$0xff] %v2246_v33  ;;  %584 = vrot.lane.b32.xlu1 %v2153_v26, %s1950_s20 }
  0x77   :  { %582 = vrot.lane.b32.xlu0 %v2158_v27, %s1950_s20 }
  0x78   :  { %v2252_v34 = vpop.permute.xlu1 %64 }
  0x79   :  { %4414 = vst [vmem:[#allocation11_spill] sm:$0xff] %v2252_v34  ;;  %v2254_v35 = vpop.permute.xlu0 %60 }
  0x7a   :  { %4415 = vst [vmem:[#allocation12_spill] sm:$0xff] %v2254_v35  ;;  %596 = vrot.lane.b32.xlu1 %v2167_v28, %s1950_s20  ;;  %v2478_v35 = vld [vmem:[%s4291_s1 + $0x91] sm:$0xff] }
  0x7b   :  { %594 = vrot.lane.b32.xlu0 %v2172_v29, %s1950_s20 }
  0x7c   :  { %v2260_v36 = vpop.permute.xlu1 %84 }
  0x7d   :  { %4416 = vst [vmem:[#allocation13_spill] sm:$0xff] %v2260_v36  ;;  %v2262_v37 = vpop.permute.xlu0 %82 }
  0x7e   :  { %4417 = vst [vmem:[#allocation14_spill] sm:$0xff] %v2262_v37  ;;  %600 = vrot.lane.b32.xlu1 %v2181_v30, %s1950_s20 }
  0x7f   :  { %598 = vrot.lane.b32.xlu0 %v2186_v31, %s1950_s20 }
  0x80   :  { %v2268_v38 = vpop.permute.xlu1 %88 }
  0x81   :  { %4418 = vst [vmem:[#allocation15_spill] sm:$0xff] %v2268_v38  ;;  %v2270_v39 = vpop.permute.xlu0 %86  ;;  %v2419_v38 = vld [vmem:[%s4290_s0 + $0x39] sm:$0xff] }
  0x82   :  { %4419 = vst [vmem:[#allocation16_spill] sm:$0xff] %v2270_v39  ;;  %652 = vrot.lane.b32.xlu1 %v2280_v41, %s1949_s13 }
  0x83   :  { %650 = vrot.lane.b32.xlu0 %v2275_v40, %s1949_s13 }
  0x84   :  { %v2286_v42 = vpop.permute.xlu1 %124 }
  0x85   :  { %4422 = vst [vmem:[#allocation19_spill] sm:$0xff] %v2286_v42  ;;  %v2288_v43 = vpop.permute.xlu0 %122 }
  0x86   :  { %4423 = vst [vmem:[#allocation20_spill] sm:$0xff] %v2288_v43  ;;  %656 = vrot.lane.b32.xlu1 %v2298_v45, %s1949_s13 }
  0x87   :  { %654 = vrot.lane.b32.xlu0 %v2293_v44, %s1949_s13 }
  0x88   :  { %v2304_v46 = vpop.permute.xlu1 %128 }
  0x89   :  { %4424 = vst [vmem:[#allocation21_spill] sm:$0xff] %v2304_v46  ;;  %v2306_v47 = vpop.permute.xlu0 %126  ;;  %v2406_v46 = vld [vmem:[%s4291_s1 + $0x79] sm:$0xff] }
  0x8a   :  { %4425 = vst [vmem:[#allocation22_spill] sm:$0xff] %v2306_v47  ;;  %672 = vrot.lane.b32.xlu1 %v2311_v48, %s1949_s13 }
  0x8b   :  { %670 = vrot.lane.b32.xlu0 %v2316_v49, %s1949_s13 }
  0x8c   :  { %v2322_v50 = vpop.permute.xlu1 %148 }
  0x8d   :  { %4426 = vst [vmem:[#allocation23_spill] sm:$0xff] %v2322_v50  ;;  %v2324_v51 = vpop.permute.xlu0 %146  ;;  %v2460_v50 = vld [vmem:[%s4291_s1 + $0x31] sm:$0xff] }
  0x8e   :  { %4427 = vst [vmem:[#allocation24_spill] sm:$0xff] %v2324_v51  ;;  %676 = vrot.lane.b32.xlu1 %v2329_v52, %s1949_s13 }
  0x8f   :  { %674 = vrot.lane.b32.xlu0 %v2334_v53, %s1949_s13 }
  0x90   :  { %v2340_v54 = vpop.permute.xlu1 %152 }
  0x91   :  { %4429 = vst [vmem:[#allocation26_spill] sm:$0xff] %v2340_v54  ;;  %v2342_v55 = vpop.permute.xlu0 %150  ;;  %v2388_v54 = vld [vmem:[%s4291_s1 + $0x19] sm:$0xff] }
  0x92   :  { %4430 = vst [vmem:[#allocation27_spill] sm:$0xff] %v2342_v55  ;;  %708 = vrot.lane.b32.xlu1 %v2347_v56, %s1949_s13  ;;  %v2383_v55 = vld [vmem:[%s4291_s1 + $0x21] sm:$0xff] }
  0x93   :  { %706 = vrot.lane.b32.xlu0 %v2352_v57, %s1949_s13 }
  0x94   :  { %v2358_v58 = vpop.permute.xlu1 %188 }
  0x95   :  { %4431 = vst [vmem:[#allocation28_spill] sm:$0xff] %v2358_v58  ;;  %v2360_v59 = vpop.permute.xlu0 %186 }
  0x96   :  { %4432 = vst [vmem:[#allocation29_spill] sm:$0xff] %v2360_v59  ;;  %712 = vrot.lane.b32.xlu1 %v2365_v60, %s1949_s13  ;;  %v2424_v59 = vld [vmem:[%s4290_s0 + $0x31] sm:$0xff] }
  0x97   :  { %710 = vrot.lane.b32.xlu0 %v2370_v61, %s1949_s13 }
  0x98   :  { %v2376_v62 = vpop.permute.xlu1 %192 }
  0x99   :  { %4435 = vst [vmem:[#allocation32_spill] sm:$0xff] %v2376_v62  ;;  %v2378_v63 = vpop.permute.xlu0 %190 }
  0x9a   :  { %4436 = vst [vmem:[#allocation33_spill] sm:$0xff] %v2378_v63  ;;  %728 = vrot.lane.b32.xlu1 %v2383_v55, %s1949_s13  ;;  %v2401_v63 = vld [vmem:[%s4291_s1 + $0x81] sm:$0xff] }
  0x9b   :  { %726 = vrot.lane.b32.xlu0 %v2388_v54, %s1949_s13  ;;  %4439 = vst [vmem:[#allocation36_spill] sm:$0xff] %v2401_v63 }
  0x9c   :  { %v2394_v47 = vpop.permute.xlu1 %212 }
  0x9d   :  { %4437 = vst [vmem:[#allocation34_spill] sm:$0xff] %v2394_v47  ;;  %v2396_v62 = vpop.permute.xlu0 %210 }
  0x9e   :  { %4438 = vst [vmem:[#allocation35_spill] sm:$0xff] %v2396_v62  ;;  %732 = vrot.lane.b32.xlu1 %v2401_v63, %s1949_s13  ;;  %v2442_v62 = vld [vmem:[%s4290_s0 + $0x91] sm:$0xff] }
  0x9f   :  { %730 = vrot.lane.b32.xlu0 %v2406_v46, %s1949_s13 }
  0xa0   :  { %v2412_v39 = vpop.permute.xlu1 %216 }
  0xa1   :  { %4440 = vst [vmem:[#allocation37_spill] sm:$0xff] %v2412_v39  ;;  %v2414_v47 = vpop.permute.xlu0 %214 }
  0xa2   :  { %4441 = vst [vmem:[#allocation38_spill] sm:$0xff] %v2414_v47  ;;  %764 = vrot.lane.b32.xlu1 %v2419_v38, %s1949_s13  ;;  %v2437_v47 = vld [vmem:[%s4290_s0 + $0x99] sm:$0xff] }
  0xa3   :  { %762 = vrot.lane.b32.xlu0 %v2424_v59, %s1949_s13 }
  0xa4   :  { %v2430_v58 = vpop.permute.xlu1 %252 }
  0xa5   :  { %4442 = vst [vmem:[#allocation39_spill] sm:$0xff] %v2430_v58  ;;  %v2432_v39 = vpop.permute.xlu0 %250 }
  0xa6   :  { %4443 = vst [vmem:[#allocation40_spill] sm:$0xff] %v2432_v39  ;;  %768 = vrot.lane.b32.xlu1 %v2437_v47, %s1949_s13  ;;  %v2455_v39 = vld [vmem:[%s4291_s1 + $0x39] sm:$0xff] }
  0xa7   :  { %766 = vrot.lane.b32.xlu0 %v2442_v62, %s1949_s13 }
  0xa8   :  { %v2448_v37 = vpop.permute.xlu1 %256 }
  0xa9   :  { %4444 = vst [vmem:[#allocation41_spill] sm:$0xff] %v2448_v37  ;;  %v2450_v58 = vpop.permute.xlu0 %254 }
  0xaa   :  { %4445 = vst [vmem:[#allocation42_spill] sm:$0xff] %v2450_v58  ;;  %784 = vrot.lane.b32.xlu1 %v2455_v39, %s1949_s13  ;;  %v2473_v58 = vld [vmem:[%s4291_s1 + $0x99] sm:$0xff] }
  0xab   :  { %782 = vrot.lane.b32.xlu0 %v2460_v50, %s1949_s13  ;;  %4448 = vst [vmem:[#allocation45_spill] sm:$0xff] %v2473_v58 }
  0xac   :  { %v2466_v36 = vpop.permute.xlu1 %276 }
  0xad   :  { %4446 = vst [vmem:[#allocation43_spill] sm:$0xff] %v2466_v36  ;;  %v2468_v37 = vpop.permute.xlu0 %274 }
  0xae   :  { %4447 = vst [vmem:[#allocation44_spill] sm:$0xff] %v2468_v37  ;;  %788 = vrot.lane.b32.xlu1 %v2473_v58, %s1949_s13  ;;  %v2491_v37 = vld [vmem:[%s4290_s0 + $0x49] sm:$0xff] }
  0xaf   :  { %786 = vrot.lane.b32.xlu0 %v2478_v35, %s1949_s13  ;;  %4451 = vst [vmem:[#allocation48_spill] sm:$0xff] %v2491_v37 }
  0xb0   :  { %v2484_v34 = vpop.permute.xlu1 %280 }
  0xb1   :  { %4449 = vst [vmem:[#allocation46_spill] sm:$0xff] %v2484_v34  ;;  %v2486_v36 = vpop.permute.xlu0 %278 }
  0xb2   :  { %4450 = vst [vmem:[#allocation47_spill] sm:$0xff] %v2486_v36  ;;  %906 = vrot.lane.b32.xlu1 %v2316_v49, %s1950_s20 }
  0xb3   :  { %818 = vrot.lane.b32.xlu0 %v2491_v37, %s1949_s13 }
  0xb4   :  { %v2497_v51 = vpop.permute.xlu1 %436 }
  0xb5   :  { %4452 = vst [vmem:[#allocation49_spill] sm:$0xff] %v2497_v51  ;;  %v2499_v33 = vpop.permute.xlu0 %434 }
  0xb6   :  { %4453 = vst [vmem:[#allocation50_spill] sm:$0xff] %v2499_v33  ;;  %910 = vrot.lane.b32.xlu1 %v2334_v53, %s1950_s20 }
  0xb7   :  { %908 = vrot.lane.b32.xlu0 %v2311_v48, %s1950_s20 }
  0xb8   :  { %v2505_v36 = vpop.permute.xlu1 %440 }
  0xb9   :  { %4454 = vst [vmem:[#allocation51_spill] sm:$0xff] %v2505_v36  ;;  %v2507_v34 = vpop.permute.xlu0 %438 }
  0xba   :  { %4455 = vst [vmem:[#allocation52_spill] sm:$0xff] %v2507_v34  ;;  %954 = vrot.lane.b32.xlu1 %v2388_v54, %s1950_s20 }
  0xbb   :  { %912 = vrot.lane.b32.xlu0 %v2329_v52, %s1950_s20 }
  0xbc   :  { %v2513_v43 = vpop.permute.xlu1 %452 }
  0xbd   :  { %4456 = vst [vmem:[#allocation53_spill] sm:$0xff] %v2513_v43  ;;  %v2515_v51 = vpop.permute.xlu0 %450 }
  0xbe   :  { %4457 = vst [vmem:[#allocation54_spill] sm:$0xff] %v2515_v51  ;;  %958 = vrot.lane.b32.xlu1 %v2406_v46, %s1950_s20 }
  0xbf   :  { %956 = vrot.lane.b32.xlu0 %v2383_v55, %s1950_s20 }
  0xc0   :  { %v2521_v33 = vpop.permute.xlu1 %456 }
  0xc1   :  { %4458 = vst [vmem:[#allocation55_spill] sm:$0xff] %v2521_v33  ;;  %v2523_v36 = vpop.permute.xlu0 %454 }
  0xc2   :  { %4459 = vst [vmem:[#allocation56_spill] sm:$0xff] %v2523_v36  ;;  %890 = vrot.lane.b32.xlu1 %v2275_v40, %s1950_s20 }
  0xc3   :  { %960 = vrot.lane.b32.xlu0 %v2401_v63, %s1950_s20 }
  0xc4   :  { %v2529_v34 = vpop.permute.xlu1 %484 }
  0xc5   :  { %4460 = vst [vmem:[#allocation57_spill] sm:$0xff] %v2529_v34  ;;  %v2531_v43 = vpop.permute.xlu0 %482 }
  0xc6   :  { %4461 = vst [vmem:[#allocation58_spill] sm:$0xff] %v2531_v43  ;;  %894 = vrot.lane.b32.xlu1 %v2293_v44, %s1950_s20 }
  0xc7   :  { %892 = vrot.lane.b32.xlu0 %v2280_v41, %s1950_s20 }
  0xc8   :  { %v2537_v51 = vpop.permute.xlu1 %488 }
  0xc9   :  { %4462 = vst [vmem:[#allocation59_spill] sm:$0xff] %v2537_v51  ;;  %v2539_v33 = vpop.permute.xlu0 %486 }
  0xca   :  { %4463 = vst [vmem:[#allocation60_spill] sm:$0xff] %v2539_v33  ;;  %938 = vrot.lane.b32.xlu1 %v2352_v57, %s1950_s20  ;;  %v2560_v33 = vld [vmem:[%s4291_s1 + $0x49] sm:$0xff] }
  0xcb   :  { %896 = vrot.lane.b32.xlu0 %v2298_v45, %s1950_s20 }
  0xcc   :  { %v2545_v36 = vpop.permute.xlu1 %500 }
  0xcd   :  { %4464 = vst [vmem:[#allocation61_spill] sm:$0xff] %v2545_v36  ;;  %v2547_v34 = vpop.permute.xlu0 %498 }
  0xce   :  { %4465 = vst [vmem:[#allocation62_spill] sm:$0xff] %v2547_v34  ;;  %942 = vrot.lane.b32.xlu1 %v2370_v61, %s1950_s20 }
  0xcf   :  { %940 = vrot.lane.b32.xlu0 %v2347_v56, %s1950_s20 }
  0xd0   :  { %v2553_v43 = vpop.permute.xlu1 %504 }
  0xd1   :  { %4466 = vst [vmem:[#allocation63_spill] sm:$0xff] %v2553_v43  ;;  %v2555_v51 = vpop.permute.xlu0 %502  ;;  %v2573_v43 = vld [vmem:[%s4291_s1 + $0xa9] sm:$0xff] }
  0xd2   :  { %4467 = vst [vmem:[#allocation64_spill] sm:$0xff] %v2555_v51  ;;  %838 = vrot.lane.b32.xlu1 %v2560_v33, %s1949_s13  ;;  %v2578_v51 = vld [vmem:[%s4291_s1 + $0x51] sm:$0xff] }
  0xd3   :  { %944 = vrot.lane.b32.xlu0 %v2365_v60, %s1950_s20 }
  0xd4   :  { %v2566_v36 = vpop.permute.xlu1 %532 }
  0xd5   :  { %4468 = vst [vmem:[#allocation65_spill] sm:$0xff] %v2566_v36  ;;  %v2568_v34 = vpop.permute.xlu0 %530 }
  0xd6   :  { %4469 = vst [vmem:[#allocation66_spill] sm:$0xff] %v2568_v34  ;;  %842 = vrot.lane.b32.xlu1 %v2573_v43, %s1949_s13  ;;  %v2591_v34 = vld [vmem:[%s4291_s1 + $0xb1] sm:$0xff] }
  0xd7   :  { %840 = vrot.lane.b32.xlu0 %v2578_v51, %s1949_s13  ;;  %4472 = vst [vmem:[#allocation69_spill] sm:$0xff] %v2591_v34 }
  0xd8   :  { %v2584_v42 = vpop.permute.xlu1 %536 }
  0xd9   :  { %4470 = vst [vmem:[#allocation67_spill] sm:$0xff] %v2584_v42  ;;  %v2586_v36 = vpop.permute.xlu0 %534 }
  0xda   :  { %4471 = vst [vmem:[#allocation68_spill] sm:$0xff] %v2586_v36  ;;  %1002 = vrot.lane.b32.xlu1 %v2460_v50, %s1950_s20  ;;  %v2608_v36 = vld [vmem:[%s4291_s1 + $0x2] sm:$0xff] }
  0xdb   :  { %844 = vrot.lane.b32.xlu0 %v2591_v34, %s1949_s13  ;;  %4475 = vst [vmem:[#allocation72_spill] sm:$0xff] %v2608_v36 }
  0xdc   :  { %v2597_v32 = vpop.permute.xlu1 %548 }
  0xdd   :  { %4473 = vst [vmem:[#allocation70_spill] sm:$0xff] %v2597_v32  ;;  %v2599_v31 = vpop.permute.xlu0 %546  ;;  %v2621_v32 = vld [vmem:[%s4291_s1 + $0x62] sm:$0xff] }
  0xde   :  { %4474 = vst [vmem:[#allocation71_spill] sm:$0xff] %v2599_v31  ;;  %1006 = vrot.lane.b32.xlu1 %v2478_v35, %s1950_s20  ;;  %4478 = vst [vmem:[#allocation75_spill] sm:$0xff] %v2621_v32 }
  0xdf   :  { %1004 = vrot.lane.b32.xlu0 %v2455_v39, %s1950_s20 }
  0xe0   :  { %v2610_v42 = vpop.permute.xlu1 %552 }
  0xe1   :  { %4476 = vst [vmem:[#allocation73_spill] sm:$0xff] %v2610_v42  ;;  %v2612_v27 = vpop.permute.xlu0 %550  ;;  %v2630_v42 = vld [vmem:[%s4291_s1 + $0xa] sm:$0xff] }
  0xe2   :  { %4477 = vst [vmem:[#allocation74_spill] sm:$0xff] %v2612_v27  ;;  %1134 = vrot.lane.b32.xlu1 %v2608_v36, %s1949_s13  ;;  %4481 = vst [vmem:[#allocation78_spill] sm:$0xff] %v2630_v42  ;;  %v2639_v27 = vld [vmem:[%s4291_s1 + $0x1a] sm:$0xff] }
  0xe3   :  { %1008 = vrot.lane.b32.xlu0 %v2473_v58, %s1950_s20  ;;  %4482 = vst [vmem:[#allocation79_spill] sm:$0xff] %v2639_v27 }
  0xe4   :  { %v2623_v31 = vpop.permute.xlu1 %580 }
  0xe5   :  { %4479 = vst [vmem:[#allocation76_spill] sm:$0xff] %v2623_v31  ;;  %v2625_v26 = vpop.permute.xlu0 %578 }
  0xe6   :  { %4480 = vst [vmem:[#allocation77_spill] sm:$0xff] %v2625_v26  ;;  %1138 = vrot.lane.b32.xlu1 %v2621_v32, %s1949_s13  ;;  %v2648_v26 = vld [vmem:[%s4291_s1 + $0x6a] sm:$0xff]  ;;  %v2657_v32 = vld [vmem:[%s4291_s1 + $0x7a] sm:$0xff] }
  0xe7   :  { %1136 = vrot.lane.b32.xlu0 %v2630_v42, %s1949_s13  ;;  %4485 = vst [vmem:[#allocation82_spill] sm:$0xff] %v2648_v26  ;;  %4486 = vst [vmem:[#allocation83_spill] sm:$0xff] %v2657_v32 }
  0xe8   :  { %v2641_v36 = vpop.permute.xlu1 %584 }
  0xe9   :  { %4483 = vst [vmem:[#allocation80_spill] sm:$0xff] %v2641_v36  ;;  %v2643_v31 = vpop.permute.xlu0 %582 }
  0xea   :  { %4484 = vst [vmem:[#allocation81_spill] sm:$0xff] %v2643_v31  ;;  %1198 = vrot.lane.b32.xlu1 %v2639_v27, %s1949_s13  ;;  %v2666_v31 = vld [vmem:[%s4291_s1 + $0x22] sm:$0xff] }
  0xeb   :  { %1140 = vrot.lane.b32.xlu0 %v2648_v26, %s1949_s13  ;;  %4489 = vst [vmem:[#allocation86_spill] sm:$0xff] %v2666_v31 }
  0xec   :  { %v2659_v42 = vpop.permute.xlu1 %596 }
  0xed   :  { %4487 = vst [vmem:[#allocation84_spill] sm:$0xff] %v2659_v42  ;;  %v2661_v36 = vpop.permute.xlu0 %594  ;;  %v2679_v42 = vld [vmem:[%s4291_s1 + $0x82] sm:$0xff] }
  0xee   :  { %4488 = vst [vmem:[#allocation85_spill] sm:$0xff] %v2661_v36  ;;  %1202 = vrot.lane.b32.xlu1 %v2657_v32, %s1949_s13  ;;  %4492 = vst [vmem:[#allocation89_spill] sm:$0xff] %v2679_v42  ;;  %v2684_v36 = vld [vmem:[%s4290_s0 + $0x51] sm:$0xff] }
  0xef   :  { %1200 = vrot.lane.b32.xlu0 %v2666_v31, %s1949_s13  ;;  %v2702_v31 = vld [vmem:[%s4290_s0 + $0xa9] sm:$0xff] }
  0xf0   :  { %v2672_v27 = vpop.permute.xlu1 %600  ;;  %4496 = vst [vmem:[#allocation93_spill] sm:$0xff] %v2702_v31 }
  0xf1   :  { %4490 = vst [vmem:[#allocation87_spill] sm:$0xff] %v2672_v27  ;;  %v2674_v26 = vpop.permute.xlu0 %598 }
  0xf2   :  { %4491 = vst [vmem:[#allocation88_spill] sm:$0xff] %v2674_v26  ;;  %820 = vrot.lane.b32.xlu1 %v2684_v36, %s1949_s13  ;;  %v2697_v26 = vld [vmem:[%s4290_s0 + $0xb1] sm:$0xff] }
  0xf3   :  { %1204 = vrot.lane.b32.xlu0 %v2679_v42, %s1949_s13  ;;  %4495 = vst [vmem:[#allocation92_spill] sm:$0xff] %v2697_v26 }
  0xf4   :  { %v2690_v32 = vpop.permute.xlu1 %652 }
  0xf5   :  { %4493 = vst [vmem:[#allocation90_spill] sm:$0xff] %v2690_v32  ;;  %v2692_v27 = vpop.permute.xlu0 %650 }
  0xf6   :  { %4494 = vst [vmem:[#allocation91_spill] sm:$0xff] %v2692_v27  ;;  %824 = vrot.lane.b32.xlu1 %v2697_v26, %s1949_s13 }
  0xf7   :  { %822 = vrot.lane.b32.xlu0 %v2702_v31, %s1949_s13 }
  0xf8   :  { %v2708_v42 = vpop.permute.xlu1 %656 }
  0xf9   :  { %4497 = vst [vmem:[#allocation94_spill] sm:$0xff] %v2708_v42  ;;  %v2710_v32 = vpop.permute.xlu0 %654 }
  0xfa   :  { %4498 = vst [vmem:[#allocation95_spill] sm:$0xff] %v2710_v32  ;;  %988 = vrot.lane.b32.xlu1 %v2419_v38, %s1950_s20  ;;  %v2727_v32 = vld [vmem:[%s4290_s0 + $0xa] sm:$0xff] }
  0xfb   :  { %986 = vrot.lane.b32.xlu0 %v2424_v59, %s1950_s20  ;;  %4501 = vst [vmem:[#allocation98_spill] sm:$0xff] %v2727_v32 }
  0xfc   :  { %v2716_v27 = vpop.permute.xlu1 %672 }
  0xfd   :  { %4499 = vst [vmem:[#allocation96_spill] sm:$0xff] %v2716_v27  ;;  %v2718_v37 = vpop.permute.xlu0 %670  ;;  %v2736_v27 = vld [vmem:[%s4290_s0 + $0x2] sm:$0xff] }
  0xfe   :  { %4500 = vst [vmem:[#allocation97_spill] sm:$0xff] %v2718_v37  ;;  %992 = vrot.lane.b32.xlu1 %v2437_v47, %s1950_s20  ;;  %4504 = vst [vmem:[#allocation101_spill] sm:$0xff] %v2736_v27  ;;  %v2745_v37 = vld [vmem:[%s4290_s0 + $0x6a] sm:$0xff] }
  0xff   :  { %990 = vrot.lane.b32.xlu0 %v2442_v62, %s1950_s20  ;;  %4505 = vst [vmem:[#allocation102_spill] sm:$0xff] %v2745_v37 }
 0x100   :  { %v2729_v42 = vpop.permute.xlu1 %676 }
 0x101   :  { %4502 = vst [vmem:[#allocation99_spill] sm:$0xff] %v2729_v42  ;;  %v2731_v31 = vpop.permute.xlu0 %674 }
 0x102   :  { %4503 = vst [vmem:[#allocation100_spill] sm:$0xff] %v2731_v31  ;;  %1112 = vrot.lane.b32.xlu1 %v2727_v32, %s1949_s13  ;;  %v2754_v31 = vld [vmem:[%s4290_s0 + $0x62] sm:$0xff] }
 0x103   :  { %1110 = vrot.lane.b32.xlu0 %v2736_v27, %s1949_s13  ;;  %4508 = vst [vmem:[#allocation105_spill] sm:$0xff] %v2754_v31  ;;  %v2763_v27 = vld [vmem:[%s4290_s0 + $0x22] sm:$0xff] }
 0x104   :  { %v2747_v26 = vpop.permute.xlu1 %708  ;;  %4509 = vst [vmem:[#allocation106_spill] sm:$0xff] %v2763_v27 }
 0x105   :  { %4506 = vst [vmem:[#allocation103_spill] sm:$0xff] %v2747_v26  ;;  %v2749_v42 = vpop.permute.xlu0 %706 }
 0x106   :  { %4507 = vst [vmem:[#allocation104_spill] sm:$0xff] %v2749_v42  ;;  %1116 = vrot.lane.b32.xlu1 %v2745_v37, %s1949_s13  ;;  %v2772_v42 = vld [vmem:[%s4290_s0 + $0x1a] sm:$0xff]  ;;  %v2783_v37 = vld [vmem:[%s4290_s0 + $0x82] sm:$0xff] }
 0x107   :  { %1114 = vrot.lane.b32.xlu0 %v2754_v31, %s1949_s13  ;;  %4512 = vst [vmem:[#allocation109_spill] sm:$0xff] %v2772_v42  ;;  %v318_v31 = vsub.f32 %v2275_v40, %v1976_v1  ;;  %4513 = vst [vmem:[#allocation110_spill] sm:$0xff] %v2783_v37  ;;  %v321_v40 = vsub.f32 %v2298_v45, %v1985_v2  ;;  %v325_v2 = vsub.f32 %v2329_v52, %v2013_v6 }
 0x108   :  { %v2765_v32 = vpop.permute.xlu1 %712 }
 0x109   :  { %4510 = vst [vmem:[#allocation107_spill] sm:$0xff] %v2765_v32  ;;  %v2767_v26 = vpop.permute.xlu0 %710  ;;  %v343_v32 = vsub.f32 %v2347_v56, %v2027_v8  ;;  %v320_v8 = vsub.f32 %v2293_v44, %v1971_v0  ;;  %v347_v0 = vsub.f32 %v2383_v55, %v2055_v12  ;;  %v329_v6 = vmul.f32 %v321_v40, %v321_v40 }
 0x10a   :  { %4511 = vst [vmem:[#allocation108_spill] sm:$0xff] %v2767_v26  ;;  %1176 = vrot.lane.b32.xlu1 %v2763_v27, %s1949_s13  ;;  %v319_v26 = vsub.f32 %v2280_v41, %v1990_v3  ;;  %v342_v27 = vsub.f32 %v2352_v57, %v2032_v9  ;;  %v345_v3 = vsub.f32 %v2365_v60, %v2041_v10 }
 0x10b   :  { %1174 = vrot.lane.b32.xlu0 %v2772_v42, %s1949_s13  ;;  %v2798_v42 = vld [vmem:[%s4290_s0 + $0x7a] sm:$0xff]  ;;  %v323_v9 = vsub.f32 %v2311_v48, %v1999_v4  ;;  %v326_v41 = vmul.f32 %v318_v31, %v318_v31  ;;  %v324_v10 = vsub.f32 %v2334_v53, %v2018_v7  ;;  %v349_v7 = vsub.f32 %v2401_v63, %v2069_v14 }
 0x10c   :  { %v2791_v25 = vpop.permute.xlu1 %728  ;;  %4516 = vst [vmem:[#allocation113_spill] sm:$0xff] %v2798_v42  ;;  %v327_v4 = vmul.f32 %v319_v26, %v319_v26  ;;  %v350_v60 = vmul.f32 %v342_v27, %v342_v27  ;;  %v348_v12 = vsub.f32 %v2406_v46, %v2074_v15  ;;  %v328_v53 = vmul.f32 %v320_v8, %v320_v8 }
 0x10d   :  { %4514 = vst [vmem:[#allocation111_spill] sm:$0xff] %v2791_v25  ;;  %v2793_v1 = vpop.permute.xlu0 %726  ;;  %v322_v25 = vsub.f32 %v2316_v49, %v2004_v5  ;;  %v351_v5 = vmul.f32 %v343_v32, %v343_v32  ;;  %v336_v27 = vmul.f32 %v324_v10, %v324_v10  ;;  %v371_v40 = vsub.f32 %v2455_v39, %v2111_v20 }
 0x10e   :  { %4515 = vst [vmem:[#allocation112_spill] sm:$0xff] %v2793_v1  ;;  %v344_v1 = vsub.f32 %v2370_v61, %v2046_v11  ;;  %1180 = vrot.lane.b32.xlu1 %v2783_v37, %s1949_s13  ;;  %v346_v11 = vsub.f32 %v2388_v54, %v2060_v13  ;;  %v353_v61 = vmul.f32 %v345_v3, %v345_v3 }
 0x10f   :  { %1178 = vrot.lane.b32.xlu0 %v2798_v42, %s1949_s13  ;;  %v335_v42 = vmul.f32 %v323_v9, %v323_v9  ;;  %v334_v26 = vmul.f32 %v322_v25, %v322_v25  ;;  %v337_v13 = vmul.f32 %v325_v2, %v325_v2  ;;  %v355_v14 = vadd.f32 %v351_v5, %v327_v4 }
 0x110   :  { %v2824_v37 = vpop.permute.xlu1 %732  ;;  %v352_v32 = vmul.f32 %v344_v1, %v344_v1  ;;  %v354_v3 = vadd.f32 %v350_v60, %v326_v41  ;;  %v370_v15 = vsub.f32 %v2460_v50, %v2116_v21  ;;  %v357_v8 = vadd.f32 %v353_v61, %v329_v6 }
 0x111   :  { %4517 = vst [vmem:[#allocation114_spill] sm:$0xff] %v2824_v37  ;;  %v2826_v31 = vpop.permute.xlu0 %730  ;;  %v359_v37 = vmul.f32 %v347_v0, %v347_v0  ;;  %v361_v9 = vmul.f32 %v349_v7, %v349_v7  ;;  %v360_v2 = vmul.f32 %v348_v12, %v348_v12  ;;  %v373_v10 = vsub.f32 %v2473_v58, %v2125_v22 }
 0x112   :  { %4518 = vst [vmem:[#allocation115_spill] sm:$0xff] %v2826_v31  ;;  %1052 = vrot.lane.b32.xlu1 %v2578_v51, %s1950_s20  ;;  %v358_v31 = vmul.f32 %v346_v11, %v346_v11  ;;  %v356_v20 = vadd.f32 %v352_v32, %v328_v53  ;;  %v367_v0 = vsub.f32 %v2419_v38, %v2083_v16  ;;  %v2863_v16 = vld [vmem:[%s4291_s1 + $0x3a] sm:$0xff]  ;;  %v4524_v32 = vld [vmem:[#allocation5_spill] sm:$0xff] }
 0x113   :  { %1050 = vrot.lane.b32.xlu0 %v2560_v33, %s1950_s20  ;;  %v366_v41 = vsub.f32 %v2424_v59, %v2088_v17  ;;  %v369_v21 = vsub.f32 %v2437_v47, %v2097_v18  ;;  %v363_v60 = vadd.f32 %v359_v37, %v335_v42  ;;  %v368_v61 = vsub.f32 %v2442_v62, %v2102_v19 }
 0x114   :  { %v2840_v25 = vpop.permute.xlu1 %764  ;;  %v383_v4 = vmul.f32 %v371_v40, %v371_v40  ;;  %v395_v22 = vsub.f32 %v2578_v51, %v2167_v28  ;;  %4520 = vst [vmem:[#allocation117_spill] sm:$0xff] %v2863_v16  ;;  %v362_v17 = vadd.f32 %v358_v31, %v334_v26  ;;  %v382_v18 = vmul.f32 %v370_v15, %v370_v15  ;;  %v2876_v28 = vld [vmem:[%s4291_s1 + $0x32] sm:$0xff]  ;;  %v4525_v40 = vld [vmem:[#allocation48_spill] sm:$0xff] }
 0x115   :  { %4519 = vst [vmem:[#allocation116_spill] sm:$0xff] %v2840_v25  ;;  %v2842_v1 = vpop.permute.xlu0 %762  ;;  %v372_v37 = vsub.f32 %v2478_v35, %v2130_v23  ;;  %v394_v19 = vsub.f32 %v2560_v33, %v2172_v29  ;;  %4523 = vst [vmem:[#allocation120_spill] sm:$0xff] %v2876_v28  ;;  %v365_v5 = vadd.f32 %v361_v9, %v337_v13  ;;  %v4576_v25 = vld [vmem:[#allocation30_spill] sm:$0xff] }
 0x116   :  { %1056 = vrot.lane.b32.xlu1 %v2591_v34, %s1950_s20  ;;  %v364_v11 = vadd.f32 %v360_v2, %v336_v27  ;;  %v385_v6 = vmul.f32 %v373_v10, %v373_v10  ;;  %v397_v31 = vsub.f32 %v2591_v34, %v2181_v30  ;;  %v375_v7 = vmul.f32 %v367_v0, %v367_v0  ;;  %v2891_v30 = vld [vmem:[%s4291_s1 + $0x9a] sm:$0xff] }
 0x117   :  { %1054 = vrot.lane.b32.xlu0 %v2573_v43, %s1950_s20  ;;  %v374_v23 = vmul.f32 %v366_v41, %v366_v41  ;;  %v377_v35 = vmul.f32 %v369_v21, %v369_v21  ;;  %v391_v29 = vsub.f32 %v2684_v36, %v2139_v24  ;;  %v376_v12 = vmul.f32 %v368_v61, %v368_v61  ;;  %v4527_v24 = vld [vmem:[#allocation6_spill] sm:$0xff]  ;;  %v4528_v2 = vld [vmem:[#allocation92_spill] sm:$0xff] }
 0x118   :  { %v2869_v42 = vpop.permute.xlu1 %768  ;;  %v387_v26 = vadd.f32 %v383_v4, %v363_v60  ;;  %v390_v15 = vsub.f32 %v4525_v40, %v4524_v32  ;;  %v407_v13 = vmul.f32 %v395_v22, %v395_v22  ;;  %4526 = vst [vmem:[#allocation5_spill] sm:$0xff] %v2891_v30  ;;  %v386_v27 = vadd.f32 %v382_v18, %v362_v17  ;;  %v2902_v60 = vld [vmem:[%s4291_s1 + $0x92] sm:$0xff]  ;;  %v4532_v22 = vld [vmem:[#allocation93_spill] sm:$0xff]  ;;  %v4533_v17 = vld [vmem:[#allocation8_spill] sm:$0xff] }
 0x119   :  { %4521 = vst [vmem:[#allocation118_spill] sm:$0xff] %v2869_v42  ;;  %v2871_v53 = vpop.permute.xlu0 %766  ;;  %v384_v9 = vmul.f32 %v372_v37, %v372_v37  ;;  %v393_v10 = vsub.f32 %v4528_v2, %v4527_v24  ;;  %v406_v0 = vmul.f32 %v394_v19, %v394_v19  ;;  %4530 = vst [vmem:[#allocation6_spill] sm:$0xff] %v2902_v60  ;;  %v4531_v4 = vld [vmem:[#allocation7_spill] sm:$0xff] }
 0x11a   :  { %4522 = vst [vmem:[#allocation119_spill] sm:$0xff] %v2871_v53  ;;  %1264 = vrot.lane.b32.xlu1 %v2863_v16, %s1949_s13  ;;  %v389_v61 = vadd.f32 %v385_v6, %v365_v5  ;;  %v392_v32 = vsub.f32 %v4532_v22, %v4531_v4  ;;  %v396_v18 = vsub.f32 %v2573_v43, %v4533_v17 }
 0x11b   :  { %1262 = vrot.lane.b32.xlu0 %v2876_v28, %s1949_s13  ;;  %v409_v28 = vmul.f32 %v397_v31, %v397_v31  ;;  %v379_v37 = vadd.f32 %v375_v7, %v355_v14  ;;  %v399_v24 = vmul.f32 %v391_v29, %v391_v29  ;;  %v378_v19 = vadd.f32 %v374_v23, %v354_v3 }
 0x11c   :  { %v2895_v41 = vpop.permute.xlu1 %784  ;;  %v398_v16 = vmul.f32 %v390_v15, %v390_v15  ;;  %v411_v34 = vadd.f32 %v407_v13, %v387_v26  ;;  %v381_v53 = vadd.f32 %v377_v35, %v357_v8  ;;  %v380_v5 = vadd.f32 %v376_v12, %v356_v20  ;;  %v4541_v35 = vld [vmem:[#allocation9_spill] sm:$0xff]  ;;  %v4542_v12 = vld [vmem:[#allocation19_spill] sm:$0xff]  ;;  %v4543_v15 = vld [vmem:[#allocation20_spill] sm:$0xff] }
 0x11d   :  { %4529 = vst [vmem:[#allocation48_spill] sm:$0xff] %v2895_v41  ;;  %v2897_v21 = vpop.permute.xlu0 %782  ;;  %v388_v6 = vadd.f32 %v384_v9, %v364_v11  ;;  %v410_v42 = vadd.f32 %v406_v0, %v386_v27  ;;  %v401_v43 = vmul.f32 %v393_v10, %v393_v10  ;;  %v400_v14 = vmul.f32 %v392_v32, %v392_v32  ;;  %v4546_v9 = vld [vmem:[#allocation17_spill] sm:$0xff]  ;;  %v4547_v0 = vld [vmem:[#allocation24_spill] sm:$0xff] }
 0x11e   :  { %1268 = vrot.lane.b32.xlu1 %v2891_v30, %s1949_s13  ;;  %v2916_v7 = vadd.f32 %v409_v28, %v389_v61  ;;  %v408_v29 = vmul.f32 %v396_v18, %v396_v18  ;;  %v403_v17 = vadd.f32 %v399_v24, %v379_v37  ;;  %v402_v3 = vadd.f32 %v398_v16, %v378_v19  ;;  %v2959_v37 = vld [vmem:[%s4290_s0 + $0x3a] sm:$0xff]  ;;  %v4550_v24 = vld [vmem:[#allocation11_spill] sm:$0xff] }
 0x11f   :  { %1266 = vrot.lane.b32.xlu0 %v2902_v60, %s1949_s13  ;;  %vm415_vm0 = vcmp.gt.f32.partialorder %v411_v34, 0.5  ;;  %vm414_vm1 = vcmp.gt.f32.partialorder %v410_v42, 0.5  ;;  %v2926_v11 = vadd.f32 %v401_v43, %v381_v53  ;;  %v2928_v23 = vadd.f32 %v400_v14, %v380_v5  ;;  %v4545_v53 = vld [vmem:[#allocation10_spill] sm:$0xff]  ;;  %4549 = vst [vmem:[#allocation20_spill] sm:$0xff] %v2959_v37  ;;  %v4551_v5 = vld [vmem:[#allocation12_spill] sm:$0xff]  ;;  %v4553_v34 = vld [vmem:[#allocation13_spill] sm:$0xff] }
 0x120   :  { %v2912_v4 = vpop.permute.xlu1 %788  ;;  %4536 = vst [vmem:[#allocation121_spill] sm:$0xff] %v2916_v7  ;;  %vm417_vm2 = vcmp.gt.f32.partialorder %v2916_v7, 0.5  ;;  %v2931_v28 = vadd.f32 %v408_v29, %v388_v6  ;;  %v72_v16 = vsub.f32 %v2293_v44, %v4541_v35  ;;  %v135_v26 = vsub.f32 %v2347_v56, %v4542_v12  ;;  %v4552_v6 = vld [vmem:[#allocation18_spill] sm:$0xff]  ;;  %v4554_v29 = vld [vmem:[#allocation23_spill] sm:$0xff]  ;;  %v4571_v60 = vld [vmem:[#allocation25_spill] sm:$0xff] }
 0x121   :  { %4534 = vst [vmem:[#allocation7_spill] sm:$0xff] %v2912_v4  ;;  %v2914_v31 = vpop.permute.xlu0 %786  ;;  %4538 = vst [vmem:[#allocation123_spill] sm:$0xff] %v2926_v11  ;;  %v134_v13 = vsub.f32 %v2352_v57, %v4543_v15  ;;  %v2940_v27 = vsel %vm415_vm0, -inf, %v403_v17  ;;  %v70_v10 = vsub.f32 %v4546_v9, %v4545_v53  ;;  %v158_v61 = vsub.f32 %v2388_v54, %v4547_v0  ;;  %v2974_v12 = vld [vmem:[%s4290_s0 + $0x32] sm:$0xff]  ;;  %v4557_v15 = vld [vmem:[#allocation14_spill] sm:$0xff] }
 0x122   :  { %4535 = vst [vmem:[#allocation8_spill] sm:$0xff] %v2914_v31  ;;  %1036 = vrot.lane.b32.xlu1 %v2684_v36, %s1950_s20  ;;  %4539 = vst [vmem:[#allocation124_spill] sm:$0xff] %v2928_v23  ;;  %v2949_v32 = vsel %vm415_vm0, %v403_v17, inf  ;;  %v2952_v18 = vsel %vm414_vm1, -inf, %v402_v3  ;;  %v73_v19 = vsub.f32 %v2298_v45, %v4550_v24  ;;  %v71_v43 = vsub.f32 %v4552_v6, %v4551_v5  ;;  %v4558_v0 = vld [vmem:[#allocation35_spill] sm:$0xff]  ;;  %v4574_v31 = vld [vmem:[#allocation34_spill] sm:$0xff] }
 0x123   :  { %1034 = vrot.lane.b32.xlu0 %v4525_v40, %s1950_s20  ;;  %4540 = vst [vmem:[#allocation125_spill] sm:$0xff] %v2931_v28  ;;  %4544 = vst [vmem:[#allocation9_spill] sm:$0xff] %v2940_v27  ;;  %v95_v14 = vsub.f32 %v2311_v48, %v4553_v34  ;;  %v159_v17 = vsub.f32 %v2383_v55, %v4554_v29  ;;  %v94_v53 = vsub.f32 %v2316_v49, %v4557_v15  ;;  %v4562_v28 = vld [vmem:[#allocation28_spill] sm:$0xff]  ;;  %v4589_v27 = vld [vmem:[#allocation58_spill] sm:$0xff] }
 0x124   :  { %v2922_v8 = vpop.permute.xlu1 %906  ;;  %4548 = vst [vmem:[#allocation19_spill] sm:$0xff] %v2949_v32  ;;  %4556 = vst [vmem:[#allocation17_spill] sm:$0xff] %v2974_v12  ;;  %v222_v24 = vsub.f32 %v2460_v50, %v4558_v0  ;;  %v2981_v5 = vsel %vm414_vm1, %v402_v3, inf  ;;  %v2986_v34 = vsel %vm417_vm2, -inf, %v2926_v11  ;;  %v162_v23 = vmul.f32 %v134_v13, %v134_v13  ;;  %v4563_v0 = vld [vmem:[#allocation29_spill] sm:$0xff]  ;;  %v4588_v32 = vld [vmem:[#allocation39_spill] sm:$0xff] }
 0x125   :  { %4537 = vst [vmem:[#allocation122_spill] sm:$0xff] %v2922_v8  ;;  %v2924_v20 = vpop.permute.xlu0 %818  ;;  %4559 = vst [vmem:[#allocation24_spill] sm:$0xff] %v2986_v34  ;;  %v163_v8 = vmul.f32 %v135_v26, %v135_v26  ;;  %v199_v15 = vsub.f32 %v2419_v38, %v4562_v28  ;;  %v98_v42 = vmul.f32 %v70_v10, %v70_v10 }
 0x126   :  { %1040 = vrot.lane.b32.xlu1 %v4528_v2, %s1950_s20  ;;  %v170_v3 = vmul.f32 %v158_v61, %v158_v61  ;;  %v4564_v2 = vld [vmem:[#allocation44_spill] sm:$0xff]  ;;  %v3007_v28 = vmul.f32 %v73_v19, %v73_v19  ;;  %v99_v26 = vmul.f32 %v71_v43, %v71_v43  ;;  %v107_v13 = vmul.f32 %v95_v14, %v95_v14 }
 0x127   :  { %1038 = vrot.lane.b32.xlu0 %v4532_v22, %s1950_s20  ;;  %v198_v22 = vsub.f32 %v2424_v59, %v4563_v0  ;;  %v286_v34 = vsub.f32 %v2560_v33, %v4564_v2  ;;  %v171_v10 = vmul.f32 %v159_v17, %v159_v17  ;;  %v3014_v0 = vld [vmem:[%s4290_s0 + $0x92] sm:$0xff]  ;;  %v106_v2 = vmul.f32 %v94_v53, %v94_v53  ;;  %v4575_v53 = vld [vmem:[#allocation21_spill] sm:$0xff] }
 0x128   :  { %v2969_v35 = vpop.permute.xlu1 %910  ;;  %4566 = vst [vmem:[#allocation13_spill] sm:$0xff] %v3007_v28  ;;  %4568 = vst [vmem:[#allocation14_spill] sm:$0xff] %v3014_v0  ;;  %v234_v19 = vmul.f32 %v222_v24, %v222_v24  ;;  %v167_v14 = vadd.f32 %v163_v8, %v99_v26  ;;  %v166_v17 = vadd.f32 %v162_v23, %v98_v42  ;;  %v3039_v8 = vld [vmem:[%s4291_s1 + $0x52] sm:$0xff]  ;;  %v4578_v23 = vld [vmem:[#allocation22_spill] sm:$0xff] }
 0x129   :  { %4555 = vst [vmem:[#allocation10_spill] sm:$0xff] %v2969_v35  ;;  %v2988_v29 = vpop.permute.xlu0 %908  ;;  %v2990_v35 = vmul.f32 %v72_v16, %v72_v16  ;;  %v3005_v16 = vld [vmem:[%s4290_s0 + $0x9a] sm:$0xff]  ;;  %v223_v4 = vsub.f32 %v2455_v39, %v4574_v31  ;;  %v226_v41 = vmul.f32 %v198_v22, %v198_v22  ;;  %4577 = vst [vmem:[#allocation29_spill] sm:$0xff] %v3039_v8  ;;  %v4579_v31 = vld [vmem:[#allocation31_spill] sm:$0xff] }
 0x12a   :  { %4560 = vst [vmem:[#allocation11_spill] sm:$0xff] %v2988_v29  ;;  %1240 = vrot.lane.b32.xlu1 %v2959_v37, %s1949_s13  ;;  %4565 = vst [vmem:[#allocation18_spill] sm:$0xff] %v3005_v16  ;;  %v4569_v29 = vld [vmem:[#allocation15_spill] sm:$0xff]  ;;  %v4570_v37 = vld [vmem:[#allocation16_spill] sm:$0xff]  ;;  %v175_v24 = vadd.f32 %v171_v10, %v107_v13  ;;  %v263_v58 = vsub.f32 %v2684_v36, %v4588_v32 }
 0x12b   :  { %4561 = vst [vmem:[#allocation12_spill] sm:$0xff] %v2990_v35  ;;  %1238 = vrot.lane.b32.xlu0 %v2974_v12, %s1949_s13  ;;  %v3018_v12 = vsub.f32 %v2329_v52, %v4569_v29  ;;  %v3022_v30 = vsub.f32 %v4571_v60, %v4570_v37  ;;  %v3032_v52 = vsub.f32 %v4576_v25, %v4575_v53  ;;  %v3056_v26 = vld [vmem:[%s4291_s1 + $0x4a] sm:$0xff]  ;;  %v4585_v13 = vld [vmem:[#allocation43_spill] sm:$0xff] }
 0x12c   :  { %v3009_v61 = vpop.permute.xlu1 %954  ;;  %v174_v29 = vadd.f32 %v170_v3, %v106_v2  ;;  %v298_v60 = vmul.f32 %v286_v34, %v286_v34  ;;  %v3043_v37 = vsub.f32 %v4579_v31, %v4578_v23  ;;  %v4581_v3 = vld [vmem:[#allocation40_spill] sm:$0xff]  ;;  %4583 = vst [vmem:[#allocation15_spill] sm:$0xff] %v3056_v26  ;;  %v4584_v2 = vld [vmem:[#allocation27_spill] sm:$0xff]  ;;  %v287_v10 = vsub.f32 %v2578_v51, %v4585_v13  ;;  %v4593_v32 = vld [vmem:[#allocation50_spill] sm:$0xff] }
 0x12d   :  { %4567 = vst [vmem:[#allocation23_spill] sm:$0xff] %v3009_v61  ;;  %4572 = vst [vmem:[#allocation35_spill] sm:$0xff] %v3022_v30  ;;  %v3024_v43 = vpop.permute.xlu0 %912  ;;  %v227_v61 = vmul.f32 %v199_v15, %v199_v15  ;;  %v4580_v15 = vld [vmem:[#allocation26_spill] sm:$0xff]  ;;  %v262_v22 = vsub.f32 %v4525_v40, %v4581_v3  ;;  %v3060_v53 = vsub.f32 %v2406_v46, %v4584_v2  ;;  %v4591_v13 = vld [vmem:[#allocation71_spill] sm:$0xff] }
 0x12e   :  { %4573 = vst [vmem:[#allocation28_spill] sm:$0xff] %v3024_v43  ;;  %1244 = vrot.lane.b32.xlu1 %v3005_v16, %s1949_s13  ;;  %v3047_v42 = vsub.f32 %v2401_v63, %v4580_v15  ;;  %v238_v23 = vadd.f32 %v234_v19, %v174_v29  ;;  %v4586_v15 = vld [vmem:[#allocation62_spill] sm:$0xff]  ;;  %v494_v43 = vsub.f32 %v2352_v57, %v4589_v27 }
 0x12f   :  { %1242 = vrot.lane.b32.xlu0 %v3014_v0, %s1949_s13  ;;  %v510_v0 = vsub.f32 %v2388_v54, %v4586_v15  ;;  %v3068_v3 = vadd.f32 %v227_v61, %v167_v14  ;;  %v230_v46 = vadd.f32 %v226_v41, %v166_v17  ;;  %v4590_v29 = vld [vmem:[#allocation54_spill] sm:$0xff]  ;;  %v558_v15 = vsub.f32 %v2460_v50, %v4591_v13  ;;  %v4594_v41 = vld [vmem:[#allocation61_spill] sm:$0xff]  ;;  %v4596_v13 = vld [vmem:[#allocation32_spill] sm:$0xff] }
 0x130   :  { %v3051_v34 = vpop.permute.xlu1 %958  ;;  %v302_v19 = vadd.f32 %v298_v60, %v238_v23  ;;  %v462_v2 = vsub.f32 %v2316_v49, %v4590_v29  ;;  %v290_v27 = vmul.f32 %v262_v22, %v262_v22  ;;  %v446_v61 = vsub.f32 %v4546_v9, %v4593_v32  ;;  %v4595_v17 = vld [vmem:[#allocation66_spill] sm:$0xff] }
 0x131   :  { %4582 = vst [vmem:[#allocation44_spill] sm:$0xff] %v3051_v34  ;;  %v3066_v16 = vpop.permute.xlu0 %956  ;;  %v235_v34 = vmul.f32 %v223_v4, %v223_v4  ;;  %v3085_v4 = vld [vmem:[%s4291_s1 + $0xb2] sm:$0xff]  ;;  %v511_v14 = vsub.f32 %v2383_v55, %v4594_v41  ;;  %v542_v60 = vsub.f32 %v2424_v59, %v4595_v17  ;;  %v3096_v29 = vld [vmem:[%s4291_s1 + $0xaa] sm:$0xff]  ;;  %v299_v22 = vmul.f32 %v287_v10, %v287_v10  ;;  %v4598_v17 = vld [vmem:[#allocation53_spill] sm:$0xff] }
 0x132   :  { %4587 = vst [vmem:[#allocation16_spill] sm:$0xff] %v3066_v16  ;;  %1328 = vrot.lane.b32.xlu1 %v3039_v8, %s1949_s13  ;;  %4592 = vst [vmem:[#allocation25_spill] sm:$0xff] %v3085_v4  ;;  %v3100_v16 = vsub.f32 %v2437_v47, %v4596_v13  ;;  %v4597_v8 = vld [vmem:[#allocation85_spill] sm:$0xff]  ;;  %v3106_v41 = vmul.f32 %v263_v58, %v263_v58  ;;  %v463_v7 = vsub.f32 %v2311_v48, %v4598_v17 }
 0x133   :  { %1326 = vrot.lane.b32.xlu0 %v3056_v26, %s1949_s13  ;;  %v522_v26 = vmul.f32 %v510_v0, %v510_v0  ;;  %v606_v32 = vsub.f32 %v2560_v33, %v4597_v8  ;;  %v239_v55 = vadd.f32 %v235_v34, %v175_v24  ;;  %v514_v11 = vmul.f32 %v494_v43, %v494_v43  ;;  %v4599_v13 = vld [vmem:[#allocation57_spill] sm:$0xff]  ;;  %v4600_v43 = vld [vmem:[#allocation70_spill] sm:$0xff] }
 0x134   :  { %v891_v23 = vpop.permute.xlu1 %890  ;;  %vm306_vm3 = vcmp.gt.f32.partialorder %v302_v19, 0.5  ;;  %v474_v47 = vmul.f32 %v462_v2, %v462_v2  ;;  %v495_v0 = vsub.f32 %v2347_v56, %v4599_v13  ;;  %v570_v10 = vmul.f32 %v558_v15, %v558_v15 }
 0x135   :  { %v3104_v35 = vpop.permute.xlu0 %960  ;;  %v294_v8 = vadd.f32 %v290_v27, %v230_v46  ;;  %v466_v24 = vmul.f32 %v446_v61, %v446_v61  ;;  %v523_v58 = vmul.f32 %v511_v14, %v511_v14  ;;  %v562_v34 = vmul.f32 %v542_v60, %v542_v60  ;;  %v4601_v27 = vld [vmem:[#allocation78_spill] sm:$0xff]  ;;  %v4602_v61 = vld [vmem:[#allocation49_spill] sm:$0xff] }
 0x136   :  { %1332 = vrot.lane.b32.xlu1 %v3085_v4, %s1949_s13  ;;  %v3116_v30 = vadd.f32 %v299_v22, %v239_v55  ;;  %v526_v48 = vadd.f32 %v522_v26, %v474_v47  ;;  %v559_v17 = vsub.f32 %v2455_v39, %v4600_v43  ;;  %v618_v4 = vmul.f32 %v606_v32, %v606_v32  ;;  %v4603_v22 = vld [vmem:[#allocation72_spill] sm:$0xff]  ;;  %v4604_v32 = vld [vmem:[#allocation65_spill] sm:$0xff] }
 0x137   :  { %1330 = vrot.lane.b32.xlu0 %v3096_v29, %s1949_s13  ;;  %v3121_v63 = vsel %vm306_vm3, -inf, %v294_v8  ;;  %v3124_v15 = vsel %vm306_vm3, %v294_v8, inf  ;;  %v475_v13 = vmul.f32 %v463_v7, %v463_v7  ;;  %v518_v46 = vadd.f32 %v514_v11, %v466_v24  ;;  %v4605_v55 = vld [vmem:[#allocation77_spill] sm:$0xff] }
 0x138   :  { %v895_v28 = vpop.permute.xlu1 %894  ;;  %v3130_v14 = vsub.f32 %v4552_v6, %v4602_v61  ;;  %v3132_v26 = vmul.f32 %v495_v0, %v495_v0  ;;  %v574_v39 = vadd.f32 %v570_v10, %v526_v48  ;;  %v902_v60 = vsub.f32 %v4546_v9, %v891_v23  ;;  %v4606_v10 = vld [vmem:[#allocation112_spill] sm:$0xff] }
 0x139   :  { %v893_v2 = vpop.permute.xlu0 %892  ;;  %v3137_v19 = vadd.f32 %v523_v58, %v475_v13  ;;  %v3141_v7 = vsub.f32 %v2419_v38, %v4604_v32  ;;  %v566_v11 = vadd.f32 %v562_v34, %v518_v46  ;;  %v590_v47 = vsub.f32 %v4525_v40, %v4605_v55  ;;  %v4607_v58 = vld [vmem:[#allocation76_spill] sm:$0xff]  ;;  %v4608_v38 = vld [vmem:[#allocation91_spill] sm:$0xff]  ;;  %v4609_v46 = vld [vmem:[#allocation97_spill] sm:$0xff] }
 0x13a   :  { %1512 = vrot.lane.b32.xlu1 %v4601_v27, %s1950_s20  ;;  %v3145_v24 = vmul.f32 %v559_v17, %v559_v17  ;;  %v622_v0 = vadd.f32 %v618_v4, %v574_v39  ;;  %v738_v23 = vsub.f32 %v2388_v54, %v4606_v10  ;;  %v3152_v13 = vsub.f32 %v2684_v36, %v4607_v58  ;;  %v4610_v61 = vld [vmem:[#allocation104_spill] sm:$0xff]  ;;  %v4611_v4 = vld [vmem:[#allocation82_spill] sm:$0xff]  ;;  %v4612_v55 = vld [vmem:[#allocation75_spill] sm:$0xff] }
 0x13b   :  { %1510 = vrot.lane.b32.xlu0 %v4603_v22, %s1950_s20  ;;  %v662_v34 = vsub.f32 %v4546_v9, %v4608_v38  ;;  %v682_v27 = vsub.f32 %v2316_v49, %v4609_v46  ;;  %v718_v17 = vsub.f32 %v2352_v57, %v4610_v61  ;;  %v794_v54 = vsub.f32 %v2460_v50, %v2897_v21  ;;  %v4614_v46 = vld [vmem:[#allocation86_spill] sm:$0xff] }
 0x13c   :  { %v939_v8 = vpop.permute.xlu1 %938  ;;  %v922_v39 = vmul.f32 %v902_v60, %v902_v60  ;;  %v904_v22 = vsub.f32 %v2293_v44, %v895_v28  ;;  %v610_v9 = vmul.f32 %v590_v47, %v590_v47  ;;  %v903_v10 = vsub.f32 %v4552_v6, %v893_v2 }
 0x13d   :  { %v950_v48 = vsub.f32 %v2352_v57, %v939_v8  ;;  %v897_v43 = vpop.permute.xlu0 %896  ;;  %v4613_v8 = vld [vmem:[#allocation84_spill] sm:$0xff]  ;;  %v774_v57 = vsub.f32 %v2424_v59, %v2842_v1  ;;  %vm626_vm4 = vcmp.gt.f32.partialorder %v622_v0, 0.5  ;;  %v750_v38 = vmul.f32 %v738_v23, %v738_v23  ;;  %v4615_v23 = vld [vmem:[#allocation79_spill] sm:$0xff] }
 0x13e   :  { %1516 = vrot.lane.b32.xlu1 %v4611_v4, %s1950_s20  ;;  %v607_v49 = vsub.f32 %v2578_v51, %v4613_v8  ;;  %v686_v28 = vmul.f32 %v662_v34, %v662_v34  ;;  %v742_v60 = vmul.f32 %v718_v17, %v718_v17  ;;  %v830_v47 = vsub.f32 %v4525_v40, %v2924_v20  ;;  %v4616_v8 = vld [vmem:[#allocation89_spill] sm:$0xff] }
 0x13f   :  { %v970_v32 = vmul.f32 %v950_v48, %v950_v48  ;;  %1514 = vrot.lane.b32.xlu0 %v4612_v55, %s1950_s20  ;;  %v694_v59 = vmul.f32 %v682_v27, %v682_v27  ;;  %v806_v1 = vmul.f32 %v794_v54, %v794_v54  ;;  %v924_v6 = vmul.f32 %v904_v22, %v904_v22 }
 0x140   :  { %v943_v58 = vpop.permute.xlu1 %942  ;;  %v798_v61 = vmul.f32 %v774_v57, %v774_v57  ;;  %v905_v34 = vsub.f32 %v2298_v45, %v897_v43  ;;  %v746_v27 = vadd.f32 %v742_v60, %v686_v28  ;;  %v854_v54 = vmul.f32 %v830_v47, %v830_v47 }
 0x141   :  { %v3172_v50 = vadd.f32 %v970_v32, %v922_v39  ;;  %v952_v44 = vsub.f32 %v4579_v31, %v943_v58  ;;  %v941_v21 = vpop.permute.xlu0 %940  ;;  %v923_v31 = vmul.f32 %v903_v10, %v903_v10  ;;  %v614_v39 = vadd.f32 %v610_v9, %v566_v11  ;;  %v4617_v9 = vld [vmem:[#allocation83_spill] sm:$0xff] }
 0x142   :  { %v951_v48 = vsub.f32 %v2347_v56, %v941_v21  ;;  %1560 = vrot.lane.b32.xlu1 %v4614_v46, %s1950_s20  ;;  %v754_v40 = vadd.f32 %v750_v38, %v694_v59  ;;  %v619_v57 = vmul.f32 %v607_v49, %v607_v49  ;;  %v802_v58 = vadd.f32 %v798_v61, %v746_v27  ;;  %v3205_v49 = vld [vmem:[%s4290_s0 + $0x4a] sm:$0xff] }
 0x143   :  { %v972_v2 = vmul.f32 %v952_v44, %v952_v44  ;;  %1558 = vrot.lane.b32.xlu0 %v4615_v23, %s1950_s20  ;;  %v630_v45 = vsel %vm626_vm4, -inf, %v614_v39  ;;  %v638_v10 = vsel %vm626_vm4, %v614_v39, inf  ;;  %4618 = vst [vmem:[#allocation34_spill] sm:$0xff] %v3205_v49  ;;  %v422_v21 = vmax.f32 %v3121_v63, %v2952_v18 }
 0x144   :  { %v971_v17 = vmul.f32 %v951_v48, %v951_v48  ;;  %v839_v4 = vpop.permute.xlu1 %838  ;;  %v810_v43 = vadd.f32 %v806_v1, %v754_v40  ;;  %v430_v28 = vmin.f32 %v3124_v15, %v2981_v5  ;;  %v575_v0 = vadd.f32 %v3145_v24, %v3137_v19  ;;  %v3232_v15 = vld [vmem:[%s4290_s0 + $0xb2] sm:$0xff]  ;;  %v4626_v40 = vld [vmem:[#allocation33_spill] sm:$0xff] }
 0x145   :  { %v3183_v20 = vadd.f32 %v972_v2, %v924_v6  ;;  %v850_v56 = vsub.f32 %v2560_v33, %v839_v4  ;;  %v945_v32 = vpop.permute.xlu0 %944  ;;  %v3197_v33 = vld [vmem:[%s4290_s0 + $0x52] sm:$0xff]  ;;  %v467_v48 = vmul.f32 %v3130_v14, %v3130_v14  ;;  %v563_v46 = vmul.f32 %v3141_v7, %v3141_v7  ;;  %4621 = vst [vmem:[#allocation22_spill] sm:$0xff] %v3232_v15  ;;  %v3246_v2 = vld [vmem:[%s4290_s0 + $0xaa] sm:$0xff] }
 0x146   :  { %v3186_v22 = vadd.f32 %v971_v17, %v923_v31  ;;  %v953_v55 = vsub.f32 %v4576_v25, %v945_v32  ;;  %1564 = vrot.lane.b32.xlu1 %v4616_v8, %s1950_s20  ;;  %v925_v25 = vmul.f32 %v905_v34, %v905_v34  ;;  %v858_v59 = vadd.f32 %v854_v54, %v802_v58  ;;  %v4631_v8 = vld [vmem:[#allocation123_spill] sm:$0xff] }
 0x147   :  { %v862_v11 = vmul.f32 %v850_v56, %v850_v56  ;;  %1562 = vrot.lane.b32.xlu0 %v4617_v9, %s1950_s20  ;;  %v623_v63 = vadd.f32 %v619_v57, %v575_v0  ;;  %v3223_v18 = vmax.f32 %v422_v21, %v630_v45  ;;  %v3225_v5 = vmin.f32 %v430_v28, %v638_v10  ;;  %v3302_v10 = vld [vmem:[%s4291_s1 + $0x69] sm:$0xff] }
 0x148   :  { %v973_v38 = vmul.f32 %v953_v55, %v953_v55  ;;  %v3200_v44 = vpop.permute.xlu1 %842  ;;  %v519_v14 = vadd.f32 %v3132_v26, %v467_v48  ;;  %v611_v19 = vmul.f32 %v3152_v13, %v3152_v13  ;;  %4625 = vst [vmem:[#allocation27_spill] sm:$0xff] %v3246_v2  ;;  %v165_v23 = vmul.f32 %v3032_v52, %v3032_v52  ;;  %v4639_v0 = vld [vmem:[#allocation9_spill] sm:$0xff] }
 0x149   :  { %v866_v60 = vadd.f32 %v862_v11, %v810_v43  ;;  %v3213_v47 = vpop.permute.xlu0 %840  ;;  %4619 = vst [vmem:[#allocation21_spill] sm:$0xff] %v3223_v18  ;;  %4620 = vst [vmem:[#allocation30_spill] sm:$0xff] %v3225_v5  ;;  %vm307_vm6 = vcmp.gt.f32.partialorder %v3116_v30, 0.5  ;;  %v164_v31 = vmul.f32 %v3043_v37, %v3043_v37  ;;  %v173_v34 = vmul.f32 %v3047_v42, %v3047_v42  ;;  %v4635_v43 = vld [vmem:[#allocation12_spill] sm:$0xff]  ;;  %v4640_v48 = vld [vmem:[#allocation101_spill] sm:$0xff] }
 0x14a   :  { %v3219_v1 = vadd.f32 %v973_v38, %v925_v25  ;;  %1304 = vrot.lane.b32.xlu1 %v3197_v33, %s1949_s13  ;;  %v295_v17 = vadd.f32 %v3106_v41, %v3068_v3  ;;  %v567_v52 = vadd.f32 %v563_v46, %v519_v14  ;;  %v172_v4 = vmul.f32 %v3060_v53, %v3060_v53  ;;  %v4627_v41 = vld [vmem:[#allocation36_spill] sm:$0xff]  ;;  %v4638_v25 = vld [vmem:[#allocation98_spill] sm:$0xff]  ;;  %v4641_v46 = vld [vmem:[#allocation37_spill] sm:$0xff] }
 0x14b   :  { %vm870_vm5 = vcmp.gt.f32.partialorder %v866_v60, 0.5  ;;  %1302 = vrot.lane.b32.xlu0 %v3205_v49, %s1949_s13  ;;  %v229_v39 = vmul.f32 %v3100_v16, %v3100_v16  ;;  %v200_v56 = vsub.f32 %v2442_v62, %v4626_v40  ;;  %vm627_vm7 = vcmp.gt.f32.partialorder %v623_v63, 0.5  ;;  %v4629_v16 = vld [vmem:[#allocation35_spill] sm:$0xff]  ;;  %v4630_v62 = vld [vmem:[#allocation13_spill] sm:$0xff]  ;;  %4636 = vst [vmem:[#allocation58_spill] sm:$0xff] %v3302_v10  ;;  %v4637_v30 = vld [vmem:[#allocation28_spill] sm:$0xff] }
 0x14c   :  { %v3237_v7 = vsel %vm870_vm5, -inf, %v858_v59  ;;  %v3239_v24 = vsel %vm870_vm5, %v858_v59, inf  ;;  %v3241_v6 = vpop.permute.xlu1 %1002  ;;  %v109_v37 = vmul.f32 %v3018_v12, %v3018_v12  ;;  %v311_v42 = vsel %vm307_vm6, -inf, %v295_v17  ;;  %v4642_v59 = vld [vmem:[#allocation45_spill] sm:$0xff] }
 0x14d   :  { %4622 = vst [vmem:[#allocation31_spill] sm:$0xff] %v3237_v7  ;;  %4623 = vst [vmem:[#allocation26_spill] sm:$0xff] %v3239_v24  ;;  %v3255_v61 = vpop.permute.xlu0 %844  ;;  %v615_v3 = vadd.f32 %v611_v19, %v567_v52  ;;  %v969_v53 = vsub.f32 %v4627_v41, %v3104_v35  ;;  %v108_v27 = vmul.f32 %v4629_v16, %v4629_v16  ;;  %v315_v55 = vsel %vm307_vm6, %v295_v17, inf  ;;  %v4643_v19 = vld [vmem:[#allocation19_spill] sm:$0xff] }
 0x14e   :  { %4624 = vst [vmem:[#allocation40_spill] sm:$0xff] %v3241_v6  ;;  %1308 = vrot.lane.b32.xlu1 %v3232_v15, %s1949_s13  ;;  %v169_v54 = vadd.f32 %v165_v23, %v4630_v62  ;;  %v3289_v12 = vsel %vm417_vm2, %v4631_v8, inf  ;;  %v3294_v11 = vadd.f32 %v164_v31, %v4635_v43  ;;  %v3296_v35 = vadd.f32 %v173_v34, %v109_v37  ;;  %v4648_v37 = vld [vmem:[#allocation103_spill] sm:$0xff] }
 0x14f   :  { %1306 = vrot.lane.b32.xlu0 %v3246_v2, %s1949_s13  ;;  %4633 = vst [vmem:[#allocation62_spill] sm:$0xff] %v3289_v12  ;;  %v631_v9 = vsel %vm627_vm7, -inf, %v615_v3  ;;  %v921_v58 = vsub.f32 %v3302_v10, %v4637_v30  ;;  %v3308_v38 = vadd.f32 %v172_v4, %v108_v27  ;;  %v3312_v28 = vmul.f32 %v200_v56, %v200_v56  ;;  %v3328_v4 = vld [vmem:[%s4290_s0 + $0x9] sm:$0xff]  ;;  %v3335_v56 = vld [vmem:[%s4290_s0 + $0x21] sm:$0xff]  ;;  %v3349_v16 = vld [vmem:[%s4290_s0 + $0x79] sm:$0xff] }
 0x150   :  { %v3279_v32 = vpop.permute.xlu1 %1006  ;;  %v3310_v21 = vadd.f32 %v229_v39, %v169_v54  ;;  %v423_v60 = vmax.f32 %v311_v42, %v4639_v0  ;;  %v3319_v14 = vsub.f32 %v4642_v59, %v4641_v46  ;;  %v431_v23 = vmin.f32 %v315_v55, %v4643_v19  ;;  %4645 = vst [vmem:[#allocation71_spill] sm:$0xff] %v3328_v4  ;;  %v4646_v39 = vld [vmem:[#allocation90_spill] sm:$0xff]  ;;  %v3342_v42 = vld [vmem:[%s4290_s0 + $0x81] sm:$0xff]  ;;  %v4654_v55 = vld [vmem:[#allocation111_spill] sm:$0xff] }
 0x151   :  { %4628 = vst [vmem:[#allocation43_spill] sm:$0xff] %v3279_v32  ;;  %v3291_v45 = vpop.permute.xlu0 %1004  ;;  %v639_v31 = vsel %vm627_vm7, %v615_v3, inf  ;;  %v981_v34 = vmul.f32 %v969_v53, %v969_v53  ;;  %v663_v40 = vsub.f32 %v3328_v4, %v4646_v39  ;;  %4647 = vst [vmem:[#allocation50_spill] sm:$0xff] %v3335_v56  ;;  %v719_v63 = vsub.f32 %v3335_v56, %v4648_v37  ;;  %v4650_v3 = vld [vmem:[#allocation107_spill] sm:$0xff]  ;;  %v4652_v27 = vld [vmem:[#allocation108_spill] sm:$0xff] }
 0x152   :  { %4634 = vst [vmem:[#allocation39_spill] sm:$0xff] %v3291_v45  ;;  %1496 = vrot.lane.b32.xlu1 %v4638_v25, %s1950_s20  ;;  %v3323_v52 = vmax.f32 %v423_v60, %v631_v9  ;;  %4649 = vst [vmem:[#allocation61_spill] sm:$0xff] %v3342_v42  ;;  %v721_v41 = vsub.f32 %v3342_v42, %v4650_v3  ;;  %v720_v62 = vsub.f32 %v3349_v16, %v4652_v27  ;;  %v3356_v54 = vld [vmem:[%s4291_s1 + $0x21] sm:$0xff]  ;;  %v4655_v9 = vld [vmem:[#allocation102_spill] sm:$0xff] }
 0x153   :  { %1494 = vrot.lane.b32.xlu0 %v4640_v48, %s1950_s20  ;;  %4651 = vst [vmem:[#allocation66_spill] sm:$0xff] %v3349_v16  ;;  %4653 = vst [vmem:[#allocation32_spill] sm:$0xff] %v3356_v54  ;;  %v739_v8 = vsub.f32 %v3356_v54, %v4654_v55  ;;  %v933_v57 = vmul.f32 %v921_v58, %v921_v58  ;;  %v3363_v30 = vmin.f32 %v431_v23, %v639_v31  ;;  %v3368_v25 = vld [vmem:[%s4290_s0 + $0x69] sm:$0xff]  ;;  %v3375_v48 = vld [vmem:[%s4290_s0 + $0x61] sm:$0xff] }
 0x154   :  { %v1135_v17 = vpop.permute.xlu1 %1134  ;;  %4644 = vst [vmem:[#allocation54_spill] sm:$0xff] %v3323_v52  ;;  %4657 = vst [vmem:[#allocation53_spill] sm:$0xff] %v3368_v25  ;;  %v4658_v0 = vld [vmem:[#allocation94_spill] sm:$0xff]  ;;  %v4660_v58 = vld [vmem:[#allocation95_spill] sm:$0xff]  ;;  %v743_v13 = vmul.f32 %v719_v63, %v719_v63  ;;  %v745_v26 = vmul.f32 %v721_v41, %v721_v41  ;;  %v744_v5 = vmul.f32 %v720_v62, %v720_v62 }
 0x155   :  { %v1009_v53 = vpop.permute.xlu0 %1008  ;;  %4656 = vst [vmem:[#allocation85_spill] sm:$0xff] %v3363_v30  ;;  %v665_v60 = vsub.f32 %v3368_v25, %v4658_v0  ;;  %4659 = vst [vmem:[#allocation57_spill] sm:$0xff] %v3375_v48  ;;  %v664_v46 = vsub.f32 %v3375_v48, %v4660_v58  ;;  %v4662_v19 = vld [vmem:[#allocation96_spill] sm:$0xff]  ;;  %v4663_v31 = vld [vmem:[#allocation105_spill] sm:$0xff]  ;;  %v985_v55 = vadd.f32 %v981_v34, %v933_v57 }
 0x156   :  { %v1017_v43 = vsub.f32 %v4642_v59, %v1009_v53  ;;  %1500 = vrot.lane.b32.xlu1 %v4655_v9, %s1950_s20  ;;  %v3382_v59 = vld [vmem:[%s4291_s1 + $0x9] sm:$0xff]  ;;  %v4664_v39 = vld [vmem:[#allocation99_spill] sm:$0xff]  ;;  %v3393_v3 = vld [vmem:[%s4291_s1 + $0x81] sm:$0xff]  ;;  %v687_v58 = vmul.f32 %v663_v40, %v663_v40  ;;  %v751_v7 = vmul.f32 %v739_v8, %v739_v8 }
 0x157   :  { %4661 = vst [vmem:[#allocation70_spill] sm:$0xff] %v3382_v59  ;;  %v683_v23 = vsub.f32 %v3382_v59, %v4662_v19  ;;  %1498 = vrot.lane.b32.xlu0 %v4663_v31, %s1950_s20  ;;  %v685_v37 = vsub.f32 %v3302_v10, %v4664_v39  ;;  %4665 = vst [vmem:[#allocation78_spill] sm:$0xff] %v3393_v3  ;;  %v4666_v53 = vld [vmem:[#allocation114_spill] sm:$0xff]  ;;  %v3400_v19 = vld [vmem:[%s4291_s1 + $0x61] sm:$0xff]  ;;  %v689_v18 = vmul.f32 %v665_v60, %v665_v60 }
 0x158   :  { %v741_v27 = vsub.f32 %v3393_v3, %v4666_v53  ;;  %v1029_v9 = vmul.f32 %v1017_v43, %v1017_v43  ;;  %v1139_v0 = vpop.permute.xlu1 %1138  ;;  %4667 = vst [vmem:[#allocation49_spill] sm:$0xff] %v3400_v19  ;;  %v4668_v31 = vld [vmem:[#allocation100_spill] sm:$0xff]  ;;  %v4670_v57 = vld [vmem:[#allocation115_spill] sm:$0xff]  ;;  %v4672_v53 = vld [vmem:[#allocation106_spill] sm:$0xff]  ;;  %v747_v6 = vadd.f32 %v743_v13, %v687_v58 }
 0x159   :  { %v684_v39 = vsub.f32 %v3400_v19, %v4668_v31  ;;  %v1137_v24 = vpop.permute.xlu0 %1136  ;;  %v3407_v34 = vld [vmem:[%s4291_s1 + $0x79] sm:$0xff]  ;;  %v688_v31 = vmul.f32 %v664_v46, %v664_v46  ;;  %v3425_v8 = vld [vmem:[%s4291_s1 + $0x1] sm:$0xff]  ;;  %v695_v60 = vmul.f32 %v683_v23, %v683_v23  ;;  %v697_v46 = vmul.f32 %v685_v37, %v685_v37 }
 0x15a   :  { %4669 = vst [vmem:[#allocation72_spill] sm:$0xff] %v3407_v34  ;;  %v740_v40 = vsub.f32 %v3407_v34, %v4670_v57  ;;  %v3411_v43 = vadd.f32 %v1029_v9, %v985_v55  ;;  %1544 = vrot.lane.b32.xlu1 %v4672_v53, %s1950_s20  ;;  %v3418_v63 = vld [vmem:[%s4291_s1 + $0x39] sm:$0xff]  ;;  %4675 = vst [vmem:[#allocation112_spill] sm:$0xff] %v3425_v8  ;;  %v1146_v55 = vsub.f32 %v3425_v8, %v1135_v17  ;;  %v4676_v9 = vld [vmem:[#allocation109_spill] sm:$0xff] }
 0x15b   :  { %4673 = vst [vmem:[#allocation77_spill] sm:$0xff] %v3418_v63  ;;  %v4674_v41 = vld [vmem:[#allocation48_spill] sm:$0xff]  ;;  %1542 = vrot.lane.b32.xlu0 %v4676_v9, %s1950_s20  ;;  %v753_v57 = vmul.f32 %v741_v27, %v741_v27  ;;  %v696_v32 = vmul.f32 %v684_v39, %v684_v39  ;;  %v3437_v2 = vadd.f32 %v745_v26, %v689_v18  ;;  %v4680_v39 = vld [vmem:[#allocation110_spill] sm:$0xff]  ;;  %v4681_v45 = vld [vmem:[#allocation113_spill] sm:$0xff] }
 0x15c   :  { %4671 = vst [vmem:[#allocation65_spill] sm:$0xff] %v3411_v43  ;;  %v795_v62 = vsub.f32 %v3418_v63, %v4674_v41  ;;  %v3433_v53 = vld [vmem:[%s4290_s0 + $0x39] sm:$0xff]  ;;  %v1199_v43 = vpop.permute.xlu1 %1198  ;;  %v3445_v27 = vadd.f32 %v744_v5, %v688_v31  ;;  %v755_v9 = vadd.f32 %v751_v7, %v695_v60  ;;  %v752_v63 = vmul.f32 %v740_v40, %v740_v40  ;;  %v4685_v31 = vld [vmem:[#allocation118_spill] sm:$0xff] }
 0x15d   :  { %4677 = vst [vmem:[#allocation76_spill] sm:$0xff] %v3433_v53  ;;  %v4678_v12 = vld [vmem:[#allocation116_spill] sm:$0xff]  ;;  %v1141_v37 = vpop.permute.xlu0 %1140  ;;  %v1158_v26 = vmul.f32 %v1146_v55, %v1146_v55  ;;  %v1148_v13 = vsub.f32 %v3400_v19, %v1139_v0  ;;  %v4683_v7 = vld [vmem:[#allocation7_spill] sm:$0xff] }
 0x15e   :  { %v775_v41 = vsub.f32 %v3433_v53, %v4678_v12  ;;  %v3442_v17 = vld [vmem:[%s4291_s1 + $0x19] sm:$0xff]  ;;  %v851_v12 = vsub.f32 %v2578_v51, %v3213_v47  ;;  %1548 = vrot.lane.b32.xlu1 %v4680_v39, %s1950_s20  ;;  %v807_v18 = vmul.f32 %v795_v62, %v795_v62  ;;  %v1147_v47 = vsub.f32 %v3382_v59, %v1137_v24  ;;  %v3472_v62 = vld [vmem:[%s4291_s1 + $0x91] sm:$0xff] }
 0x15f   :  { %4679 = vst [vmem:[#allocation91_spill] sm:$0xff] %v3442_v17  ;;  %v1210_v23 = vsub.f32 %v3442_v17, %v1199_v43  ;;  %1546 = vrot.lane.b32.xlu0 %v4681_v45, %s1950_s20  ;;  %v757_v43 = vadd.f32 %v753_v57, %v697_v46  ;;  %v3457_v5 = vld [vmem:[%s4291_s1 + $0x99] sm:$0xff] }
 0x160   :  { %v799_v15 = vmul.f32 %v775_v41, %v775_v41  ;;  %4682 = vst [vmem:[#allocation97_spill] sm:$0xff] %v3457_v5  ;;  %v797_v51 = vsub.f32 %v3457_v5, %v4683_v7  ;;  %v1203_v40 = vpop.permute.xlu1 %1202  ;;  %v3465_v0 = vld [vmem:[%s4290_s0 + $0x99] sm:$0xff]  ;;  %v3482_v41 = vld [vmem:[%s4290_s0 + $0x91] sm:$0xff]  ;;  %v863_v7 = vmul.f32 %v851_v12, %v851_v12 }
 0x161   :  { %v1222_v58 = vmul.f32 %v1210_v23, %v1210_v23  ;;  %4684 = vst [vmem:[#allocation104_spill] sm:$0xff] %v3465_v0  ;;  %v777_v45 = vsub.f32 %v3465_v0, %v4685_v31  ;;  %v4686_v55 = vld [vmem:[#allocation8_spill] sm:$0xff]  ;;  %v1212_v24 = vsub.f32 %v3407_v34, %v1203_v40  ;;  %v1201_v57 = vpop.permute.xlu0 %1200  ;;  %4688 = vst [vmem:[#allocation75_spill] sm:$0xff] %v3482_v41  ;;  %v4689_v23 = vld [vmem:[#allocation119_spill] sm:$0xff] }
 0x162   :  { %v796_v60 = vsub.f32 %v3472_v62, %v4686_v55  ;;  %v776_v39 = vsub.f32 %v3482_v41, %v4689_v23  ;;  %v4690_v31 = vld [vmem:[#allocation69_spill] sm:$0xff]  ;;  %v1211_v59 = vsub.f32 %v3356_v54, %v1201_v57  ;;  %v4692_v12 = vld [vmem:[#allocation120_spill] sm:$0xff]  ;;  %v1149_v57 = vsub.f32 %v3302_v10, %v1141_v37 }
 0x163   :  { %v3476_v46 = vadd.f32 %v1222_v58, %v1158_v26  ;;  %v853_v17 = vsub.f32 %v4690_v31, %v3255_v61  ;;  %v4691_v26 = vld [vmem:[#allocation117_spill] sm:$0xff]  ;;  %v811_v58 = vadd.f32 %v807_v18, %v755_v9  ;;  %v1224_v23 = vmul.f32 %v1212_v24, %v1212_v24  ;;  %1606 = vrot.lane.b32.xlu0 %v4692_v12, %s1950_s20 }
 0x164   :  { %1608 = vrot.lane.b32.xlu1 %v4691_v26, %s1950_s20  ;;  %v3494_v40 = vld [vmem:[%s4291_s1 + $0xa9] sm:$0xff]  ;;  %v809_v61 = vmul.f32 %v797_v51, %v797_v51  ;;  %v1159_v31 = vmul.f32 %v1147_v47, %v1147_v47  ;;  %v1223_v56 = vmul.f32 %v1211_v59, %v1211_v59  ;;  %v821_v26 = vpop.permute.xlu1 %820  ;;  %v801_v9 = vmul.f32 %v777_v45, %v777_v45 }
 0x165   :  { %4687 = vst [vmem:[#allocation82_spill] sm:$0xff] %v3476_v46  ;;  %v852_v55 = vsub.f32 %v3494_v40, %v3200_v44  ;;  %v1160_v46 = vmul.f32 %v1148_v13, %v1148_v13  ;;  %v808_v18 = vmul.f32 %v796_v60, %v796_v60  ;;  %v831_v5 = vsub.f32 %v2684_v36, %v821_v26  ;;  %v1205_v49 = vpop.permute.xlu0 %1204  ;;  %v4693_v51 = vld [vmem:[#allocation5_spill] sm:$0xff]  ;;  %v4694_v45 = vld [vmem:[#allocation6_spill] sm:$0xff] }
 0x166   :  { %v867_v4 = vadd.f32 %v863_v7, %v811_v58  ;;  %v865_v44 = vmul.f32 %v853_v17, %v853_v17  ;;  %v3504_v13 = vadd.f32 %v1223_v56, %v1159_v31  ;;  %v1213_v24 = vsub.f32 %v3393_v3, %v1205_v49  ;;  %v4695_v49 = vld [vmem:[#allocation92_spill] sm:$0xff] }
 0x167   :  { %v3501_v54 = vadd.f32 %v1224_v23, %v1160_v46  ;;  %v756_v47 = vadd.f32 %v752_v63, %v696_v32  ;;  %v803_v37 = vadd.f32 %v799_v15, %v747_v6  ;;  %v864_v59 = vmul.f32 %v852_v55, %v852_v55  ;;  %1610 = vrot.lane.b32.xlu0 %v4694_v45, %s1950_s20  ;;  %v4696_v6 = vld [vmem:[#allocation93_spill] sm:$0xff]  ;;  %v3538_v45 = vld [vmem:[%s4290_s0 + $0xb1] sm:$0xff] }
 0x168   :  { %1612 = vrot.lane.b32.xlu1 %v4693_v51, %s1950_s20  ;;  %v855_v12 = vmul.f32 %v831_v5, %v831_v5  ;;  %v800_v60 = vmul.f32 %v776_v39, %v776_v39  ;;  %v813_v46 = vadd.f32 %v809_v61, %v757_v43  ;;  %v1161_v36 = vmul.f32 %v1149_v57, %v1149_v57  ;;  %v825_v7 = vpop.permute.xlu1 %824  ;;  %v4697_v5 = vld [vmem:[#allocation20_spill] sm:$0xff]  ;;  %v4700_v61 = vld [vmem:[#allocation17_spill] sm:$0xff] }
 0x169   :  { %v1225_v23 = vmul.f32 %v1213_v24, %v1213_v24  ;;  %v805_v56 = vadd.f32 %v801_v9, %v3437_v2  ;;  %v812_v17 = vadd.f32 %v808_v18, %v756_v47  ;;  %v833_v31 = vsub.f32 %v4695_v49, %v825_v7  ;;  %v823_v26 = vpop.permute.xlu0 %822  ;;  %v4701_v24 = vld [vmem:[#allocation125_spill] sm:$0xff]  ;;  %v4702_v47 = vld [vmem:[#allocation38_spill] sm:$0xff]  ;;  %v4718_v9 = vld [vmem:[#allocation55_spill] sm:$0xff] }
 0x16a   :  { %v859_v58 = vadd.f32 %v855_v12, %v803_v37  ;;  %vm871_vm8 = vcmp.gt.f32.partialorder %v867_v4, 0.5  ;;  %v869_v32 = vadd.f32 %v865_v44, %v813_v46  ;;  %v832_v63 = vsub.f32 %v4696_v6, %v823_v26  ;;  %v4705_v7 = vld [vmem:[#allocation18_spill] sm:$0xff]  ;;  %v4719_v4 = vld [vmem:[#allocation56_spill] sm:$0xff] }
 0x16b   :  { %v3513_v15 = vadd.f32 %v1225_v23, %v1161_v36  ;;  %v868_v43 = vadd.f32 %v864_v59, %v812_v17  ;;  %v857_v2 = vmul.f32 %v833_v31, %v833_v31  ;;  %1590 = vrot.lane.b32.xlu0 %v4700_v61, %s1950_s20  ;;  %v804_v57 = vadd.f32 %v800_v60, %v3445_v27  ;;  %v4703_v60 = vld [vmem:[#allocation41_spill] sm:$0xff]  ;;  %v4706_v49 = vld [vmem:[#allocation14_spill] sm:$0xff] }
 0x16c   :  { %1592 = vrot.lane.b32.xlu1 %v4697_v5, %s1950_s20  ;;  %v3518_v39 = vsel %vm871_vm8, -inf, %v859_v58  ;;  %v3520_v55 = vsel %vm871_vm8, %v859_v58, inf  ;;  %v856_v18 = vmul.f32 %v832_v63, %v832_v63  ;;  %v989_v44 = vpop.permute.xlu1 %988  ;;  %vm416_vm9 = vcmp.gt.f32.partialorder %v4701_v24, 0.5  ;;  %v3559_v31 = vld [vmem:[%s4290_s0 + $0xa9] sm:$0xff]  ;;  %v3566_v6 = vld [vmem:[%s4291_s1 + $0xb1] sm:$0xff] }
 0x16d   :  { %4698 = vst [vmem:[#allocation84_spill] sm:$0xff] %v3518_v39  ;;  %4699 = vst [vmem:[#allocation86_spill] sm:$0xff] %v3520_v55  ;;  %v237_v51 = vmul.f32 %v3319_v14, %v3319_v14  ;;  %v224_v37 = vsub.f32 %v3472_v62, %v4702_v47  ;;  %v861_v59 = vadd.f32 %v857_v2, %v805_v56  ;;  %v987_v27 = vpop.permute.xlu0 %986  ;;  %vm873_vm10 = vcmp.gt.f32.partialorder %v869_v32, 0.5  ;;  %v3545_v14 = vld [vmem:[%s4290_s0 + $0x31] sm:$0xff]  ;;  %v4751_v39 = vld [vmem:[#allocation44_spill] sm:$0xff] }
 0x16e   :  { %v999_v12 = vsub.f32 %v3433_v53, %v989_v44  ;;  %v265_v46 = vsub.f32 %v3538_v45, %v4703_v60  ;;  %v860_v36 = vadd.f32 %v856_v18, %v804_v57  ;;  %4704 = vst [vmem:[#allocation79_spill] sm:$0xff] %v3545_v14  ;;  %v998_v23 = vsub.f32 %v3545_v14, %v987_v27  ;;  %v4707_v26 = vld [vmem:[#allocation42_spill] sm:$0xff]  ;;  %v4711_v18 = vld [vmem:[#allocation47_spill] sm:$0xff] }
 0x16f   :  { %vm872_vm11 = vcmp.gt.f32.partialorder %v868_v43, 0.5  ;;  %v3550_v56 = vsel %vm873_vm10, -inf, %v861_v59  ;;  %v3552_v17 = vsel %vm873_vm10, %v861_v59, inf  ;;  %1594 = vrot.lane.b32.xlu0 %v4706_v49, %s1950_s20  ;;  %v264_v32 = vsub.f32 %v3559_v31, %v4707_v26  ;;  %4708 = vst [vmem:[#allocation89_spill] sm:$0xff] %v3566_v6  ;;  %v4709_v63 = vld [vmem:[#allocation46_spill] sm:$0xff]  ;;  %v4712_v49 = vld [vmem:[#allocation29_spill] sm:$0xff] }
 0x170   :  { %1596 = vrot.lane.b32.xlu1 %v4705_v7, %s1950_s20  ;;  %v1019_v58 = vmul.f32 %v999_v12, %v999_v12  ;;  %v289_v5 = vsub.f32 %v3566_v6, %v4709_v63  ;;  %v3570_v43 = vsel %vm872_vm11, -inf, %v860_v36  ;;  %v3572_v2 = vsel %vm872_vm11, %v860_v36, inf  ;;  %v993_v61 = vpop.permute.xlu1 %992  ;;  %v4714_v63 = vld [vmem:[#allocation64_spill] sm:$0xff]  ;;  %v4742_v53 = vld [vmem:[#allocation23_spill] sm:$0xff] }
 0x171   :  { %4710 = vst [vmem:[#allocation83_spill] sm:$0xff] %v3572_v2  ;;  %v232_v57 = vadd.f32 %v3312_v28, %v3294_v11  ;;  %v288_v44 = vsub.f32 %v3494_v40, %v4711_v18  ;;  %v1018_v59 = vmul.f32 %v998_v23, %v998_v23  ;;  %v991_v12 = vpop.permute.xlu0 %990  ;;  %v241_v27 = vadd.f32 %v237_v51, %v3296_v35  ;;  %v4713_v11 = vld [vmem:[#allocation63_spill] sm:$0xff] }
 0x172   :  { %v3579_v47 = vadd.f32 %v1019_v58, %v3186_v22  ;;  %v236_v60 = vmul.f32 %v224_v37, %v224_v37  ;;  %v1001_v7 = vsub.f32 %v3465_v0, %v993_v61  ;;  %v1000_v36 = vsub.f32 %v3482_v41, %v991_v12  ;;  %v4716_v35 = vld [vmem:[#allocation15_spill] sm:$0xff] }
 0x173   :  { %v293_v26 = vmul.f32 %v265_v46, %v265_v46  ;;  %v513_v28 = vsub.f32 %v3393_v3, %v4713_v11  ;;  %v512_v22 = vsub.f32 %v3407_v34, %v4714_v63  ;;  %v3591_v23 = vadd.f32 %v1018_v59, %v3172_v50  ;;  %1654 = vrot.lane.b32.xlu0 %v4716_v35, %s1950_s20  ;;  %v4720_v59 = vld [vmem:[#allocation52_spill] sm:$0xff]  ;;  %v4721_v35 = vld [vmem:[#allocation59_spill] sm:$0xff] }
 0x174   :  { %1656 = vrot.lane.b32.xlu1 %v4712_v49, %s1950_s20  ;;  %v292_v51 = vmul.f32 %v264_v32, %v264_v32  ;;  %v301_v37 = vmul.f32 %v289_v5, %v289_v5  ;;  %v1021_v58 = vmul.f32 %v1001_v7, %v1001_v7  ;;  %v1020_v61 = vmul.f32 %v1000_v36, %v1000_v36  ;;  %v1113_v18 = vpop.permute.xlu1 %1112  ;;  %v4717_v49 = vld [vmem:[#allocation51_spill] sm:$0xff]  ;;  %v4724_v7 = vld [vmem:[#allocation25_spill] sm:$0xff]  ;;  %v4725_v36 = vld [vmem:[#allocation60_spill] sm:$0xff] }
 0x175   :  { %4715 = vst [vmem:[#allocation33_spill] sm:$0xff] %v3591_v23  ;;  %v300_v12 = vmul.f32 %v288_v44, %v288_v44  ;;  %v449_v46 = vsub.f32 %v3368_v25, %v4717_v49  ;;  %v465_v11 = vsub.f32 %v3302_v10, %v4718_v9  ;;  %v464_v63 = vsub.f32 %v3400_v19, %v4719_v4  ;;  %v1111_v50 = vpop.permute.xlu0 %1110  ;;  %v4743_v2 = vld [vmem:[#allocation91_spill] sm:$0xff] }
 0x176   :  { %v448_v3 = vsub.f32 %v3375_v48, %v4720_v59  ;;  %v497_v32 = vsub.f32 %v3342_v42, %v4721_v35  ;;  %v3606_v5 = vadd.f32 %v1021_v58, %v3219_v1  ;;  %v3609_v44 = vadd.f32 %v1020_v61, %v3183_v20  ;;  %v4726_v20 = vld [vmem:[#allocation124_spill] sm:$0xff]  ;;  %v4727_v35 = vld [vmem:[#allocation122_spill] sm:$0xff] }
 0x177   :  { %v240_v9 = vadd.f32 %v236_v60, %v3308_v38  ;;  %v496_v4 = vsub.f32 %v3349_v16, %v4725_v36  ;;  %v525_v49 = vmul.f32 %v513_v28, %v513_v28  ;;  %v524_v10 = vmul.f32 %v512_v22, %v512_v22  ;;  %1658 = vrot.lane.b32.xlu0 %v3096_v29, %s1950_s20  ;;  %v4733_v36 = vld [vmem:[#allocation97_spill] sm:$0xff] }
 0x178   :  { %4722 = vst [vmem:[#allocation36_spill] sm:$0xff] %v3606_v5  ;;  %4723 = vst [vmem:[#allocation35_spill] sm:$0xff] %v3609_v44  ;;  %1660 = vrot.lane.b32.xlu1 %v4724_v7, %s1950_s20  ;;  %v3619_v59 = vadd.f32 %v293_v26, %v3310_v21  ;;  %v3621_v1 = vadd.f32 %v292_v51, %v232_v57  ;;  %v3626_v58 = vsel %vm416_vm9, -inf, %v4726_v20  ;;  %v3631_v38 = vsel %vm416_vm9, %v4726_v20, inf  ;;  %v1117_v60 = vpop.permute.xlu1 %1116  ;;  %v4735_v20 = vld [vmem:[#allocation74_spill] sm:$0xff] }
 0x179   :  { %v3633_v28 = vadd.f32 %v301_v37, %v241_v27  ;;  %v3635_v22 = vadd.f32 %v300_v12, %v240_v9  ;;  %v477_v29 = vmul.f32 %v465_v11, %v465_v11  ;;  %v476_v21 = vmul.f32 %v464_v63, %v464_v63  ;;  %v1115_v26 = vpop.permute.xlu0 %1114  ;;  %v4728_v12 = vld [vmem:[#allocation71_spill] sm:$0xff]  ;;  %v4741_v44 = vld [vmem:[#allocation70_spill] sm:$0xff] }
 0x17a   :  { %v3637_v57 = vmul.f32 %v449_v46, %v449_v46  ;;  %v3639_v51 = vmul.f32 %v448_v3, %v448_v3  ;;  %v3641_v61 = vmul.f32 %v497_v32, %v497_v32  ;;  %v918_v7 = vsub.f32 %v3425_v8, %v4727_v35  ;;  %v4729_v46 = vld [vmem:[#allocation34_spill] sm:$0xff]  ;;  %v4730_v3 = vld [vmem:[#allocation67_spill] sm:$0xff]  ;;  %v4731_v32 = vld [vmem:[#allocation68_spill] sm:$0xff] }
 0x17b   :  { %v3647_v24 = vmul.f32 %v496_v4, %v496_v4  ;;  %v3649_v27 = vadd.f32 %v525_v49, %v477_v29  ;;  %v3651_v37 = vadd.f32 %v524_v10, %v476_v21  ;;  %v1123_v11 = vsub.f32 %v4728_v12, %v1113_v18  ;;  %1638 = vrot.lane.b32.xlu0 %v4729_v46, %s1950_s20  ;;  %v3669_v10 = vld [vmem:[%s4290_s0 + $0x1] sm:$0xff]  ;;  %v4736_v21 = vld [vmem:[#allocation87_spill] sm:$0xff]  ;;  %v4739_v12 = vld [vmem:[#allocation50_spill] sm:$0xff] }
 0x17c   :  { %1640 = vrot.lane.b32.xlu1 %v3197_v33, %s1950_s20  ;;  %v3658_v63 = vsub.f32 %v3465_v0, %v4730_v3  ;;  %v3662_v9 = vsub.f32 %v3482_v41, %v4731_v32  ;;  %v4732_v33 = vld [vmem:[#allocation73_spill] sm:$0xff]  ;;  %4734 = vst [vmem:[#allocation13_spill] sm:$0xff] %v3669_v10  ;;  %v1122_v18 = vsub.f32 %v3669_v10, %v1111_v50  ;;  %v1177_v49 = vpop.permute.xlu1 %1176  ;;  %v4737_v46 = vld [vmem:[#allocation16_spill] sm:$0xff]  ;;  %v4740_v0 = vld [vmem:[#allocation11_spill] sm:$0xff]  ;;  %vm309_vm12 = vcmp.gt.f32.partialorder %v3633_v28, 0.5 }
 0x17d   :  { %v561_v4 = vsub.f32 %v4733_v36, %v4732_v33  ;;  %v560_v29 = vsub.f32 %v3472_v62, %v4735_v20  ;;  %v609_v35 = vsub.f32 %v3566_v6, %v4736_v21  ;;  %v4738_v3 = vld [vmem:[#allocation32_spill] sm:$0xff]  ;;  %v1187_v8 = vsub.f32 %v4739_v12, %v1177_v49  ;;  %v1175_v33 = vpop.permute.xlu0 %1174  ;;  %v4745_v10 = vld [vmem:[#allocation22_spill] sm:$0xff]  ;;  %v4747_v49 = vld [vmem:[#allocation77_spill] sm:$0xff] }
 0x17e   :  { %v967_v32 = vsub.f32 %v4738_v3, %v4737_v46  ;;  %v930_v41 = vmul.f32 %v918_v7, %v918_v7  ;;  %v919_v14 = vsub.f32 %v4741_v44, %v4740_v0  ;;  %v966_v50 = vsub.f32 %v4743_v2, %v4742_v53  ;;  %v3686_v20 = vld [vmem:[%s4290_s0 + $0x19] sm:$0xff]  ;;  %v3699_v53 = vld [vmem:[%s4291_s1 + $0x31] sm:$0xff] }
 0x17f   :  { %4744 = vst [vmem:[#allocation123_spill] sm:$0xff] %v3686_v20  ;;  %v1186_v21 = vsub.f32 %v3686_v20, %v1175_v33  ;;  %v4746_v46 = vld [vmem:[#allocation39_spill] sm:$0xff]  ;;  %v1151_v7 = vmul.f32 %v1123_v11, %v1123_v11  ;;  %v1125_v3 = vsub.f32 %v3368_v25, %v1117_v60  ;;  %v1215_v0 = vmul.f32 %v1187_v8, %v1187_v8  ;;  %v4749_v2 = vld [vmem:[#allocation40_spill] sm:$0xff]  ;;  %v4750_v11 = vld [vmem:[#allocation10_spill] sm:$0xff] }
 0x180   :  { %1644 = vrot.lane.b32.xlu1 %v4745_v10, %s1950_s20  ;;  %v1015_v12 = vsub.f32 %v4747_v49, %v4746_v46  ;;  %v4748_v44 = vld [vmem:[#allocation27_spill] sm:$0xff]  ;;  %v1014_v33 = vsub.f32 %v3699_v53, %v4749_v2  ;;  %v1150_v20 = vmul.f32 %v1122_v18, %v1122_v18  ;;  %v1124_v10 = vsub.f32 %v3375_v48, %v1115_v26  ;;  %v1181_v46 = vpop.permute.xlu1 %1180 }
 0x181   :  { %1642 = vrot.lane.b32.xlu0 %v4748_v44, %s1950_s20  ;;  %v1214_v5 = vmul.f32 %v1186_v21, %v1186_v21  ;;  %v920_v60 = vsub.f32 %v3400_v19, %v4750_v11  ;;  %v979_v8 = vmul.f32 %v967_v32, %v967_v32  ;;  %v3706_v25 = vadd.f32 %v1215_v0, %v1151_v7  ;;  %v1179_v55 = vpop.permute.xlu0 %1178  ;;  %v4752_v7 = vld [vmem:[#allocation43_spill] sm:$0xff] }
 0x182   :  { %v1189_v44 = vsub.f32 %v3342_v42, %v1181_v46  ;;  %v978_v30 = vmul.f32 %v966_v50, %v966_v50  ;;  %v968_v52 = vsub.f32 %v3407_v34, %v4751_v39  ;;  %v1188_v2 = vsub.f32 %v3349_v16, %v1179_v55  ;;  %v4753_v39 = vld [vmem:[#allocation88_spill] sm:$0xff] }
 0x183   :  { %v3711_v23 = vadd.f32 %v1214_v5, %v1150_v20  ;;  %v931_v26 = vmul.f32 %v919_v14, %v919_v14  ;;  %v1027_v18 = vmul.f32 %v1015_v12, %v1015_v12  ;;  %v1153_v21 = vmul.f32 %v1125_v3, %v1125_v3  ;;  %v3725_v14 = vld [vmem:[%s4291_s1 + $0x51] sm:$0xff] }
 0x184   :  { %v1217_v48 = vmul.f32 %v1189_v44, %v1189_v44  ;;  %v1026_v32 = vmul.f32 %v1014_v33, %v1014_v33  ;;  %v1016_v0 = vsub.f32 %v3472_v62, %v4752_v7  ;;  %v1152_v46 = vmul.f32 %v1124_v10, %v1124_v10  ;;  %v1053_v50 = vpop.permute.xlu1 %1052  ;;  %4754 = vst [vmem:[#allocation121_spill] sm:$0xff] %v3725_v14 }
 0x185   :  { %v1216_v11 = vmul.f32 %v1188_v2, %v1188_v2  ;;  %vm308_vm13 = vcmp.gt.f32.partialorder %v3635_v22, 0.5  ;;  %v608_v5 = vsub.f32 %v3494_v40, %v4753_v39  ;;  %v983_v20 = vadd.f32 %v979_v8, %v931_v26  ;;  %v1051_v3 = vpop.permute.xlu0 %1050  ;;  %v3733_v2 = vld [vmem:[%s4291_s1 + $0x49] sm:$0xff] }
 0x186   :  { %v3720_v55 = vadd.f32 %v1217_v48, %v1153_v21  ;;  %v1063_v12 = vsub.f32 %v3725_v14, %v1053_v50  ;;  %v982_v33 = vadd.f32 %v978_v30, %v930_v41  ;;  %v980_v10 = vmul.f32 %v968_v52, %v968_v52  ;;  %4756 = vst [vmem:[#allocation28_spill] sm:$0xff] %v3733_v2  ;;  %v4757_v30 = vld [vmem:[#allocation80_spill] sm:$0xff] }
 0x187   :  { %v3728_v44 = vadd.f32 %v1216_v11, %v1152_v46  ;;  %v1062_v48 = vsub.f32 %v3733_v2, %v1051_v3  ;;  %v573_v8 = vmul.f32 %v561_v4, %v561_v4  ;;  %v572_v26 = vmul.f32 %v560_v29, %v560_v29 }
 0x188   :  { %v1031_v21 = vadd.f32 %v1027_v18, %v983_v20  ;;  %v1075_v7 = vmul.f32 %v1063_v12, %v1063_v12  ;;  %v932_v39 = vmul.f32 %v920_v60, %v920_v60  ;;  %v1030_v16 = vadd.f32 %v1026_v32, %v982_v33  ;;  %v1057_v34 = vpop.permute.xlu1 %1056  ;;  %v4758_v32 = vld [vmem:[#allocation81_spill] sm:$0xff] }
 0x189   :  { %4755 = vst [vmem:[#allocation12_spill] sm:$0xff] %v3728_v44  ;;  %v1028_v42 = vmul.f32 %v1016_v0, %v1016_v0  ;;  %v1074_v50 = vmul.f32 %v1062_v48, %v1062_v48  ;;  %v593_v52 = vsub.f32 %v3538_v45, %v4757_v30  ;;  %v621_v41 = vmul.f32 %v609_v35, %v609_v35  ;;  %v1055_v19 = vpop.permute.xlu0 %1054 }
 0x18a   :  { %v3738_v46 = vadd.f32 %v1075_v7, %v1031_v21  ;;  %v1065_v11 = vsub.f32 %v3566_v6, %v1057_v34  ;;  %v620_v44 = vmul.f32 %v608_v5, %v608_v5  ;;  %v984_v3 = vadd.f32 %v980_v10, %v932_v39  ;;  %v4759_v10 = vld [vmem:[#allocation65_spill] sm:$0xff] }
 0x18b   :  { %v3741_v4 = vadd.f32 %v1074_v50, %v1030_v16  ;;  %v1064_v29 = vsub.f32 %v3494_v40, %v1055_v19  ;;  %v521_v60 = vadd.f32 %v3641_v61, %v3637_v57  ;;  %v577_v18 = vadd.f32 %v573_v8, %v3649_v27 }
 0x18c   :  { %v592_v0 = vsub.f32 %v3559_v31, %v4758_v32  ;;  %v1077_v35 = vmul.f32 %v1065_v11, %v1065_v11  ;;  %v565_v20 = vmul.f32 %v3658_v63, %v3658_v63  ;;  %v576_v34 = vadd.f32 %v572_v26, %v3651_v37  ;;  %v1265_v16 = vpop.permute.xlu1 %1264 }
 0x18d   :  { %v1032_v5 = vadd.f32 %v1028_v42, %v984_v3  ;;  %v1076_v12 = vmul.f32 %v1064_v29, %v1064_v29  ;;  %v564_v19 = vmul.f32 %v3662_v9, %v3662_v9  ;;  %v625_v33 = vadd.f32 %v621_v41, %v577_v18  ;;  %v1263_v27 = vpop.permute.xlu0 %1262  ;;  %v4760_v3 = vld [vmem:[#allocation82_spill] sm:$0xff]  ;;  %v4761_v29 = vld [vmem:[#allocation24_spill] sm:$0xff] }
 0x18e   :  { %v3755_v57 = vadd.f32 %v1077_v35, %v4759_v10  ;;  %v1275_v61 = vsub.f32 %v4747_v49, %v1265_v16  ;;  %v613_v48 = vmul.f32 %v593_v52, %v593_v52  ;;  %v624_v8 = vadd.f32 %v620_v44, %v576_v34  ;;  %v3791_v10 = vld [vmem:[%s4290_s0 + $0x51] sm:$0xff] }
 0x18f   :  { %v3758_v21 = vadd.f32 %v1076_v12, %v1032_v5  ;;  %v1274_v63 = vsub.f32 %v3699_v53, %v1263_v27  ;;  %v313_v42 = vsel %vm309_vm12, -inf, %v3619_v59  ;;  %v520_v37 = vadd.f32 %v3647_v24, %v3639_v51  ;;  %4763 = vst [vmem:[#allocation98_spill] sm:$0xff] %v3791_v10 }
 0x190   :  { %v612_v9 = vmul.f32 %v592_v0, %v592_v0  ;;  %v1287_v26 = vmul.f32 %v1275_v61, %v1275_v61  ;;  %v317_v7 = vsel %vm309_vm12, %v3619_v59, inf  ;;  %v312_v44 = vsel %vm308_vm13, -inf, %v3621_v1  ;;  %v1269_v30 = vpop.permute.xlu1 %1268 }
 0x191   :  { %v569_v39 = vadd.f32 %v565_v20, %v521_v60  ;;  %v1286_v50 = vmul.f32 %v1274_v63, %v1274_v63  ;;  %v568_v52 = vadd.f32 %v564_v19, %v520_v37  ;;  %vm629_vm14 = vcmp.gt.f32.partialorder %v625_v33, 0.5  ;;  %v1267_v24 = vpop.permute.xlu0 %1266 }
 0x192   :  { %v3773_v41 = vadd.f32 %v1287_v26, %v3504_v13  ;;  %v1277_v51 = vsub.f32 %v4733_v36, %v1269_v30  ;;  %vm628_vm15 = vcmp.gt.f32.partialorder %v624_v8, 0.5  ;;  %v1276_v59 = vsub.f32 %v3472_v62, %v1267_v24  ;;  %v4762_v13 = vld [vmem:[#allocation62_spill] sm:$0xff] }
 0x193   :  { %v617_v11 = vadd.f32 %v613_v48, %v569_v39  ;;  %v3777_v28 = vadd.f32 %v1286_v50, %v4760_v3  ;;  %v425_v18 = vmax.f32 %v313_v42, %v4761_v29  ;;  %v316_v60 = vsel %vm308_vm13, %v3621_v1, inf }
 0x194   :  { %v616_v32 = vadd.f32 %v612_v9, %v568_v52  ;;  %v1289_v0 = vmul.f32 %v1277_v51, %v1277_v51  ;;  %v433_v35 = vmin.f32 %v317_v7, %v4762_v13  ;;  %v1288_v5 = vmul.f32 %v1276_v59, %v1276_v59  ;;  %v1037_v12 = vpop.permute.xlu1 %1036  ;;  %v4765_v52 = vld [vmem:[#allocation33_spill] sm:$0xff]  ;;  %v4766_v59 = vld [vmem:[#allocation54_spill] sm:$0xff] }
 0x195   :  { %v633_v20 = vsel %vm629_vm14, -inf, %v617_v11  ;;  %v641_v34 = vsel %vm629_vm14, %v617_v11, inf  ;;  %v1047_v1 = vsub.f32 %v3791_v10, %v1037_v12  ;;  %v1035_v22 = vpop.permute.xlu0 %1034  ;;  %v424_v61 = vmax.f32 %v312_v44, %v3626_v58  ;;  %v4777_v12 = vld [vmem:[#allocation26_spill] sm:$0xff] }
 0x196   :  { %v632_v16 = vsel %vm628_vm15, -inf, %v616_v32  ;;  %v640_v19 = vsel %vm628_vm15, %v616_v32, inf  ;;  %v3786_v33 = vadd.f32 %v1289_v0, %v3513_v15  ;;  %v432_v27 = vmin.f32 %v316_v60, %v3631_v38  ;;  %v3802_v15 = vld [vmem:[%s4290_s0 + $0x49] sm:$0xff] }
 0x197   :  { %v3797_v48 = vadd.f32 %v1288_v5, %v3501_v54  ;;  %4764 = vst [vmem:[#allocation9_spill] sm:$0xff] %v3802_v15  ;;  %v1046_v8 = vsub.f32 %v3802_v15, %v1035_v22  ;;  %v637_v63 = vmax.f32 %v425_v18, %v633_v20  ;;  %v645_v42 = vmin.f32 %v433_v35, %v641_v34  ;;  %v4769_v18 = vld [vmem:[#allocation85_spill] sm:$0xff]  ;;  %v4770_v60 = vld [vmem:[#allocation86_spill] sm:$0xff]  ;;  %v4774_v20 = vld [vmem:[#allocation31_spill] sm:$0xff] }
 0x198   :  { %v1067_v37 = vmul.f32 %v1047_v1, %v1047_v1  ;;  %v636_v9 = vmax.f32 %v424_v61, %v632_v16  ;;  %v644_v26 = vmin.f32 %v432_v27, %v640_v19  ;;  %v1041_v39 = vpop.permute.xlu1 %1040  ;;  %vm1083_vm0 = vcmp.gt.f32.partialorder %v3738_v46, 0.5  ;;  %v4773_v35 = vld [vmem:[#allocation21_spill] sm:$0xff]  ;;  %v4776_v5 = vld [vmem:[#allocation30_spill] sm:$0xff]  ;;  %v4779_v1 = vld [vmem:[#allocation36_spill] sm:$0xff] }
 0x199   :  { %v1066_v7 = vmul.f32 %v1046_v8, %v1046_v8  ;;  %v881_v58 = vmax.f32 %v637_v63, %v3550_v56  ;;  %v889_v38 = vmin.f32 %v645_v42, %v3552_v17  ;;  %v1049_v44 = vsub.f32 %v3538_v45, %v1041_v39  ;;  %v1039_v50 = vpop.permute.xlu0 %1038  ;;  %v4767_v17 = vld [vmem:[#allocation84_spill] sm:$0xff]  ;;  %v4780_v8 = vld [vmem:[#allocation83_spill] sm:$0xff] }
 0x19a   :  { %v1071_v54 = vadd.f32 %v1067_v37, %v3579_v47  ;;  %v880_v30 = vmax.f32 %v636_v9, %v3570_v43  ;;  %v1048_v24 = vsub.f32 %v3559_v31, %v1039_v50  ;;  %vm1082_vm1 = vcmp.gt.f32.partialorder %v3741_v4, 0.5  ;;  %v4781_v42 = vld [vmem:[#allocation76_spill] sm:$0xff]  ;;  %v4782_v9 = vld [vmem:[#allocation79_spill] sm:$0xff] }
 0x19b   :  { %v1070_v51 = vadd.f32 %v1066_v7, %v4765_v52  ;;  %v1069_v56 = vmul.f32 %v1049_v44, %v1049_v44  ;;  %v4768_v29 = vmax.f32 %v4766_v59, %v4767_v17  ;;  %v4771_v32 = vmin.f32 %v4769_v18, %v4770_v60  ;;  %v4783_v44 = vld [vmem:[#allocation35_spill] sm:$0xff] }
 0x19c   :  { %v1087_v11 = vsel %vm1083_vm0, -inf, %v1071_v54  ;;  %v1095_v3 = vsel %vm1083_vm0, %v1071_v54, inf  ;;  %v1241_v13 = vpop.permute.xlu1 %1240  ;;  %v4775_v34 = vmax.f32 %v4773_v35, %v4774_v20  ;;  %v4778_v16 = vmin.f32 %v4776_v5, %v4777_v12  ;;  %v4787_v60 = vld [vmem:[#allocation75_spill] sm:$0xff] }
 0x19d   :  { %v3817_v47 = vmax.f32 %v4768_v29, %v1087_v11  ;;  %v3822_v43 = vmin.f32 %v4771_v32, %v1095_v3  ;;  %v1086_v46 = vsel %vm1082_vm1, -inf, %v1070_v51  ;;  %v1094_v0 = vsel %vm1082_vm1, %v1070_v51, inf  ;;  %v1239_v27 = vpop.permute.xlu0 %1238 }
 0x19e   :  { %v3827_v4 = vmax.f32 %v4775_v34, %v1086_v46  ;;  %v3832_v19 = vmin.f32 %v4778_v16, %v1094_v0  ;;  %v1073_v22 = vadd.f32 %v1069_v56, %v4779_v1  ;;  %v1068_v61 = vmul.f32 %v1048_v24, %v1048_v24  ;;  %v4788_v34 = vld [vmem:[#allocation12_spill] sm:$0xff] }
 0x19f   :  { %4772 = vst [vmem:[#allocation101_spill] sm:$0xff] %v3822_v43  ;;  %v888_v63 = vmin.f32 %v644_v26, %v4780_v8  ;;  %vm1085_vm2 = vcmp.gt.f32.partialorder %v3755_v57, 0.5  ;;  %v1251_v37 = vsub.f32 %v4781_v42, %v1241_v13  ;;  %v1250_v7 = vsub.f32 %v4782_v9, %v1239_v27  ;;  %v4784_v57 = vld [vmem:[#allocation104_spill] sm:$0xff] }
 0x1a0   :  { %vm1084_vm3 = vcmp.gt.f32.partialorder %v3758_v21, 0.5  ;;  %v1089_v39 = vsel %vm1085_vm2, -inf, %v1073_v22  ;;  %v1097_v54 = vsel %vm1085_vm2, %v1073_v22, inf  ;;  %v1072_v50 = vadd.f32 %v1068_v61, %v4783_v44  ;;  %v1245_v3 = vpop.permute.xlu1 %1244  ;;  %v1871_v44 = vld [vmem:[%s4291_s1 + $0x2] sm:$0xff] }
 0x1a1   :  { %v3841_v52 = vmax.f32 %v881_v58, %v1089_v39  ;;  %v3843_v51 = vmin.f32 %v889_v38, %v1097_v54  ;;  %v1279_v24 = vmul.f32 %v1251_v37, %v1251_v37  ;;  %v1278_v11 = vmul.f32 %v1250_v7, %v1250_v7  ;;  %v1243_v17 = vpop.permute.xlu0 %1242 }
 0x1a2   :  { %v1088_v26 = vsel %vm1084_vm3, -inf, %v1072_v50  ;;  %v1096_v56 = vsel %vm1084_vm3, %v1072_v50, inf  ;;  %v1253_v59 = vsub.f32 %v4784_v57, %v1245_v3  ;;  %v1252_v32 = vsub.f32 %v4787_v60, %v1243_v17  ;;  %v4791_v50 = vld [vmem:[#allocation112_spill] sm:$0xff] }
 0x1a3   :  { %v3846_v29 = vmax.f32 %v880_v30, %v1088_v26  ;;  %v3848_v18 = vmin.f32 %v888_v63, %v1096_v56  ;;  %v3851_v21 = vadd.f32 %v1279_v24, %v3706_v25  ;;  %v3854_v58 = vadd.f32 %v1278_v11, %v3711_v23  ;;  %v1873_v26 = vld [vmem:[%s4291_s1 + $0x1a] sm:$0xff]  ;;  %v4793_v56 = vld [vmem:[#allocation91_spill] sm:$0xff] }
 0x1a4   :  { %v1281_v38 = vmul.f32 %v1253_v59, %v1253_v59  ;;  %v1329_v46 = vpop.permute.xlu1 %1328  ;;  %v1280_v13 = vmul.f32 %v1252_v32, %v1252_v32  ;;  %v1382_v24 = vsub.f32 %v4791_v50, %v1871_v44  ;;  %v1406_v59 = vsub.f32 %v4793_v56, %v1873_v26  ;;  %v1874_v17 = vld [vmem:[%s4291_s1 + $0x7a] sm:$0xff]  ;;  %v4798_v26 = vld [vmem:[#allocation78_spill] sm:$0xff] }
 0x1a5   :  { %4785 = vst [vmem:[#allocation37_spill] sm:$0xff] %v3846_v29  ;;  %4786 = vst [vmem:[#allocation45_spill] sm:$0xff] %v3848_v18  ;;  %v1339_v35 = vsub.f32 %v3725_v14, %v1329_v46  ;;  %v1327_v30 = vpop.permute.xlu0 %1326  ;;  %v1875_v46 = vld [vmem:[%s4291_s1 + $0xa] sm:$0xff]  ;;  %vm1706_vm12 = vcmask 138248   ;;  %vm1743_vm1 = vcmask 0  }
 0x1a6   :  { %v3858_v0 = vadd.f32 %v1281_v38, %v3720_v55  ;;  %v1338_v20 = vsub.f32 %v3733_v2, %v1327_v30  ;;  %v3863_v5 = vadd.f32 %v1280_v13, %v4788_v34  ;;  %v4794_v38 = vld [vmem:[#allocation72_spill] sm:$0xff]  ;;  %v4795_v13 = vld [vmem:[#allocation70_spill] sm:$0xff]  ;;  %v1876_v30 = vld [vmem:[%s4291_s1 + $0x22] sm:$0xff] }
 0x1a7   :  { %v1351_v25 = vmul.f32 %v1339_v35, %v1339_v35  ;;  %v1408_v32 = vsub.f32 %v4794_v38, %v1874_v17  ;;  %v1383_v35 = vsub.f32 %v4795_v13, %v1875_v46  ;;  %v1880_v38 = vld [vmem:[%s4290_s0 + $0x2] sm:$0xff]  ;;  %v1881_v13 = vld [vmem:[%s4290_s0 + $0x6a] sm:$0xff] }
 0x1a8   :  { %v1350_v12 = vmul.f32 %v1338_v20, %v1338_v20  ;;  %v1333_v23 = vpop.permute.xlu1 %1332  ;;  %v4796_v20 = vld [vmem:[#allocation32_spill] sm:$0xff]  ;;  %v4800_v46 = vld [vmem:[#allocation13_spill] sm:$0xff] }
 0x1a9   :  { %v3866_v16 = vadd.f32 %v1351_v25, %v3773_v41  ;;  %v1341_v1 = vsub.f32 %v3566_v6, %v1333_v23  ;;  %v1331_v22 = vpop.permute.xlu0 %1330  ;;  %v1407_v34 = vsub.f32 %v4796_v20, %v1876_v30  ;;  %v1420_v44 = vmul.f32 %v1408_v32, %v1408_v32 }
 0x1aa   :  { %v3870_v55 = vadd.f32 %v1350_v12, %v3777_v28  ;;  %v1340_v61 = vsub.f32 %v3494_v40, %v1331_v22  ;;  %v1394_v12 = vmul.f32 %v1382_v24, %v1382_v24  ;;  %v1418_v22 = vmul.f32 %v1406_v59, %v1406_v59  ;;  %v1879_v24 = vld [vmem:[%s4290_s0 + $0xa] sm:$0xff] }
 0x1ab   :  { %v1353_v27 = vmul.f32 %v1341_v1, %v1341_v1  ;;  %v1395_v50 = vmul.f32 %v1383_v35, %v1383_v35  ;;  %v1378_v32 = vsub.f32 %v4800_v46, %v1880_v38  ;;  %v4801_v35 = vld [vmem:[#allocation53_spill] sm:$0xff]  ;;  %vm1359_vm4 = vcmp.gt.f32.partialorder %v3866_v16, 0.5 }
 0x1ac   :  { %v1352_v8 = vmul.f32 %v1340_v61, %v1340_v61  ;;  %v3873_v63 = vpop.permute.xlu1 %1512  ;;  %v1877_v61 = vld [vmem:[%s4291_s1 + $0x6a] sm:$0xff]  ;;  %v1381_v30 = vsub.f32 %v4801_v35, %v1881_v13  ;;  %vm1358_vm5 = vcmp.gt.f32.partialorder %v3870_v55, 0.5 }
 0x1ad   :  { %v3876_v37 = vadd.f32 %v1353_v27, %v3786_v33  ;;  %v3878_v7 = vpop.permute.xlu0 %1510  ;;  %v1872_v33 = vld [vmem:[%s4291_s1 + $0x62] sm:$0xff]  ;;  %v4797_v27 = vld [vmem:[#allocation58_spill] sm:$0xff] }
 0x1ae   :  { %v3881_v41 = vadd.f32 %v1352_v8, %v3797_v48  ;;  %v4792_v48 = vld [vmem:[#allocation49_spill] sm:$0xff]  ;;  %v1385_v8 = vsub.f32 %v4797_v27, %v1877_v61  ;;  %v3940_v27 = vadd.f32 %v1418_v22, %v1394_v12  ;;  %v3951_v13 = vmul.f32 %v1381_v30, %v1381_v30 }
 0x1af   :  { %v1384_v3 = vsub.f32 %v4792_v48, %v1872_v33  ;;  %v1419_v33 = vmul.f32 %v1407_v34, %v1407_v34  ;;  %v1878_v48 = vld [vmem:[%s4291_s1 + $0x82] sm:$0xff]  ;;  %vm1361_vm6 = vcmp.gt.f32.partialorder %v3876_v37, 0.5 }
 0x1b0   :  { %v3883_v39 = vpop.permute.xlu1 %1516  ;;  %v1409_v17 = vsub.f32 %v4798_v26, %v1878_v48  ;;  %v3942_v48 = vmul.f32 %v1385_v8, %v1385_v8  ;;  %v1882_v12 = vld [vmem:[%s4290_s0 + $0x62] sm:$0xff]  ;;  %vm1360_vm7 = vcmp.gt.f32.partialorder %v3881_v41, 0.5 }
 0x1b1   :  { %4789 = vst [vmem:[#allocation19_spill] sm:$0xff] %v3883_v39  ;;  %v3885_v54 = vpop.permute.xlu0 %1514  ;;  %v1396_v1 = vmul.f32 %v1384_v3, %v1384_v3  ;;  %v4799_v3 = vld [vmem:[#allocation71_spill] sm:$0xff]  ;;  %v3949_v39 = vmul.f32 %v1378_v32, %v1378_v32  ;;  %v4802_v22 = vld [vmem:[#allocation57_spill] sm:$0xff] }
 0x1b2   :  { %4790 = vst [vmem:[#allocation90_spill] sm:$0xff] %v3885_v54  ;;  %v1379_v59 = vsub.f32 %v4799_v3, %v1879_v24  ;;  %v3947_v3 = vadd.f32 %v1419_v33, %v1395_v50  ;;  %v1421_v38 = vmul.f32 %v1409_v17, %v1409_v17  ;;  %v1380_v8 = vsub.f32 %v4802_v22, %v1882_v12  ;;  %v4803_v50 = vld [vmem:[#allocation50_spill] sm:$0xff]  ;;  %v1884_v17 = vld [vmem:[%s4290_s0 + $0x1a] sm:$0xff] }
 0x1b3   :  { %v3944_v26 = vadd.f32 %v1420_v44, %v1396_v1  ;;  %v1883_v44 = vld [vmem:[%s4290_s0 + $0x22] sm:$0xff] }
 0x1b4   :  { %v3887_v28 = vpop.permute.xlu1 %1560  ;;  %v1387_v46 = vmul.f32 %v1379_v59, %v1379_v59  ;;  %v1403_v33 = vsub.f32 %v4803_v50, %v1883_v44  ;;  %v4804_v59 = vld [vmem:[#allocation123_spill] sm:$0xff] }
 0x1b5   :  { %v3893_v11 = vpop.permute.xlu0 %1558  ;;  %v1402_v32 = vsub.f32 %v4804_v59, %v1884_v17  ;;  %v4808_v17 = vld [vmem:[#allocation66_spill] sm:$0xff] }
 0x1b7   :  { %v1410_v43 = vmul.f32 %v1402_v32, %v1402_v32 }
 0x1b8   :  { %v3915_v25 = vpop.permute.xlu1 %1564 }
 0x1b9   :  { %v3917_v23 = vpop.permute.xlu0 %1562 }
 0x1bc   :  { %v1305_v20 = vpop.permute.xlu1 %1304 }
 0x1bd   :  { %v1315_v34 = vsub.f32 %v3791_v10, %v1305_v20  ;;  %v1303_v61 = vpop.permute.xlu0 %1302 }
 0x1be   :  { %v1314_v24 = vsub.f32 %v3802_v15, %v1303_v61  ;;  %v1885_v61 = vld [vmem:[%s4290_s0 + $0x82] sm:$0xff] }
 0x1bf   :  { %v1343_v54 = vmul.f32 %v1315_v34, %v1315_v34 }
 0x1c0   :  { %v1342_v35 = vmul.f32 %v1314_v24, %v1314_v24  ;;  %v1309_v1 = vpop.permute.xlu1 %1308  ;;  %v4805_v24 = vld [vmem:[#allocation61_spill] sm:$0xff] }
 0x1c1   :  { %v1347_v30 = vadd.f32 %v1343_v54, %v3851_v21  ;;  %v1317_v20 = vsub.f32 %v3538_v45, %v1309_v1  ;;  %v1307_v34 = vpop.permute.xlu0 %1306  ;;  %v1405_v12 = vsub.f32 %v4805_v24, %v1885_v61  ;;  %v1388_v24 = vmul.f32 %v1380_v8, %v1380_v8  ;;  %v1887_v8 = vld [vmem:[%s4291_s1 + $0x3a] sm:$0xff] }
 0x1c2   :  { %v1346_v22 = vadd.f32 %v1342_v35, %v3854_v58  ;;  %v1316_v44 = vsub.f32 %v3559_v31, %v1307_v34  ;;  %v1411_v1 = vmul.f32 %v1403_v33, %v1403_v33  ;;  %v1431_v33 = vsub.f32 %v4747_v49, %v1887_v8  ;;  %v1891_v35 = vld [vmem:[%s4290_s0 + $0x3a] sm:$0xff] }
 0x1c3   :  { %v3975_v50 = vsel %vm1359_vm4, -inf, %v1347_v30  ;;  %v3977_v21 = vsel %vm1359_vm4, %v1347_v30, inf  ;;  %v1345_v54 = vmul.f32 %v1317_v20, %v1317_v20 }
 0x1c4   :  { %4806 = vst [vmem:[#allocation103_spill] sm:$0xff] %v3977_v21  ;;  %v3983_v61 = vsel %vm1358_vm5, -inf, %v1346_v22  ;;  %v3985_v16 = vsel %vm1358_vm5, %v1346_v22, inf  ;;  %v3987_v58 = vpop.permute.xlu1 %1496  ;;  %v1344_v20 = vmul.f32 %v1316_v44, %v1316_v44  ;;  %v1886_v22 = vld [vmem:[%s4290_s0 + $0x7a] sm:$0xff]  ;;  %v1415_v44 = vadd.f32 %v1411_v1, %v1387_v46 }
 0x1c5   :  { %4807 = vst [vmem:[#allocation107_spill] sm:$0xff] %v3983_v61  ;;  %v1349_v30 = vadd.f32 %v1345_v54, %v3858_v0  ;;  %v3994_v34 = vpop.permute.xlu0 %1494  ;;  %v1404_v21 = vsub.f32 %v4808_v17, %v1886_v22  ;;  %v1413_v54 = vmul.f32 %v1405_v12, %v1405_v12  ;;  %v1889_v22 = vld [vmem:[%s4291_s1 + $0x9a] sm:$0xff]  ;;  %v1443_v12 = vmul.f32 %v1431_v33, %v1431_v33 }
 0x1c6   :  { %v1348_v0 = vadd.f32 %v1344_v20, %v3863_v5  ;;  %v1888_v5 = vld [vmem:[%s4291_s1 + $0x32] sm:$0xff]  ;;  %v1433_v8 = vsub.f32 %v4733_v36, %v1889_v22  ;;  %v1427_v36 = vsub.f32 %v4781_v42, %v1891_v35  ;;  %v1414_v22 = vadd.f32 %v1410_v43, %v3949_v39  ;;  %v1894_v43 = vld [vmem:[%s4290_s0 + $0x9a] sm:$0xff]  ;;  %v1895_v35 = vld [vmem:[%s4291_s1 + $0x4a] sm:$0xff] }
 0x1c7   :  { %v4001_v55 = vsel %vm1361_vm6, -inf, %v1349_v30  ;;  %v4003_v61 = vsel %vm1361_vm6, %v1349_v30, inf  ;;  %v1430_v17 = vsub.f32 %v3699_v53, %v1888_v5  ;;  %v1412_v20 = vmul.f32 %v1404_v21, %v1404_v21 }
 0x1c8   :  { %v4015_v32 = vpop.permute.xlu1 %1500  ;;  %v4021_v30 = vsel %vm1360_vm7, -inf, %v1348_v0  ;;  %v4023_v49 = vsel %vm1360_vm7, %v1348_v0, inf  ;;  %v1425_v5 = vadd.f32 %v1421_v38, %v3942_v48  ;;  %v1890_v0 = vld [vmem:[%s4291_s1 + $0x92] sm:$0xff]  ;;  %v1429_v39 = vsub.f32 %v4784_v57, %v1894_v43 }
 0x1c9   :  { %4809 = vst [vmem:[#allocation108_spill] sm:$0xff] %v4021_v30  ;;  %4810 = vst [vmem:[#allocation111_spill] sm:$0xff] %v4023_v49  ;;  %v4025_v41 = vpop.permute.xlu0 %1498  ;;  %v1432_v21 = vsub.f32 %v3472_v62, %v1890_v0  ;;  %v1892_v48 = vld [vmem:[%s4290_s0 + $0x32] sm:$0xff]  ;;  %v1417_v0 = vadd.f32 %v1413_v54, %v3951_v13  ;;  %v1442_v42 = vmul.f32 %v1430_v17, %v1430_v17 }
 0x1ca   :  { %v1426_v46 = vsub.f32 %v4782_v9, %v1892_v48  ;;  %v1893_v38 = vld [vmem:[%s4291_s1 + $0x52] sm:$0xff]  ;;  %v1454_v33 = vsub.f32 %v3733_v2, %v1895_v35  ;;  %v1445_v37 = vmul.f32 %v1433_v8, %v1433_v8  ;;  %v1435_v9 = vmul.f32 %v1427_v36, %v1427_v36  ;;  %v1898_v35 = vld [vmem:[%s4291_s1 + $0xaa] sm:$0xff] }
 0x1cb   :  { %v1455_v62 = vsub.f32 %v3725_v14, %v1893_v38  ;;  %v1416_v38 = vadd.f32 %v1412_v20, %v1388_v24  ;;  %v1896_v13 = vld [vmem:[%s4290_s0 + $0x92] sm:$0xff]  ;;  %v1444_v43 = vmul.f32 %v1432_v21, %v1432_v21  ;;  %v1456_v24 = vsub.f32 %v3494_v40, %v1898_v35  ;;  %v1900_v21 = vld [vmem:[%s4290_s0 + $0x4a] sm:$0xff] }
 0x1cc   :  { %v4053_v1 = vpop.permute.xlu1 %1544  ;;  %v1428_v54 = vsub.f32 %v4787_v60, %v1896_v13  ;;  %v1897_v57 = vld [vmem:[%s4291_s1 + $0xb2] sm:$0xff]  ;;  %v1447_v8 = vadd.f32 %v1443_v12, %v3947_v3  ;;  %v1434_v13 = vmul.f32 %v1426_v46, %v1426_v46  ;;  %v1450_v36 = vsub.f32 %v3802_v15, %v1900_v21  ;;  %v1902_v21 = vld [vmem:[%s4290_s0 + $0xaa] sm:$0xff] }
 0x1cd   :  { %v4064_v48 = vpop.permute.xlu0 %1542  ;;  %v1457_v17 = vsub.f32 %v3566_v6, %v1897_v57  ;;  %v1899_v20 = vld [vmem:[%s4290_s0 + $0x52] sm:$0xff]  ;;  %v1467_v2 = vmul.f32 %v1455_v62, %v1455_v62  ;;  %v1446_v40 = vadd.f32 %v1442_v42, %v3940_v27  ;;  %v1437_v35 = vmul.f32 %v1429_v39, %v1429_v39 }
 0x1ce   :  { %v1451_v60 = vsub.f32 %v3791_v10, %v1899_v20  ;;  %v1466_v6 = vmul.f32 %v1454_v33, %v1454_v33  ;;  %v1901_v20 = vld [vmem:[%s4290_s0 + $0xb2] sm:$0xff]  ;;  %v1449_v46 = vadd.f32 %v1445_v37, %v1425_v5  ;;  %v1436_v62 = vmul.f32 %v1428_v54, %v1428_v54 }
 0x1cf   :  { %v1453_v3 = vsub.f32 %v3538_v45, %v1901_v20  ;;  %v1469_v10 = vmul.f32 %v1457_v17, %v1457_v17  ;;  %v1452_v15 = vsub.f32 %v3559_v31, %v1902_v21  ;;  %v1448_v27 = vadd.f32 %v1444_v43, %v3944_v26  ;;  %v4812_v43 = vld [vmem:[#allocation19_spill] sm:$0xff] }
 0x1d0   :  { %v4087_v57 = vpop.permute.xlu1 %1548  ;;  %v1439_v42 = vadd.f32 %v1435_v9, %v1415_v44  ;;  %v1468_v39 = vmul.f32 %v1456_v24, %v1456_v24  ;;  %v1459_v33 = vmul.f32 %v1451_v60, %v1451_v60  ;;  %v1438_v49 = vadd.f32 %v1434_v13, %v1414_v22  ;;  %v1903_v9 = vld [vmem:[%s4291_s1 + $0x21] sm:$0xff] }
 0x1d1   :  { %v4094_v12 = vpop.permute.xlu0 %1546  ;;  %v1471_v18 = vadd.f32 %v1467_v2, %v1447_v8  ;;  %v1458_v30 = vmul.f32 %v1450_v36, %v1450_v36  ;;  %v1441_v20 = vadd.f32 %v1437_v35, %v1417_v0  ;;  %v1470_v37 = vadd.f32 %v1466_v6, %v1446_v40  ;;  %v1909_v60 = vld [vmem:[%s4291_s1 + $0x61] sm:$0xff]  ;;  %v4813_v8 = vld [vmem:[#allocation90_spill] sm:$0xff] }
 0x1d2   :  { %4811 = vst [vmem:[#allocation102_spill] sm:$0xff] %v4094_v12  ;;  %v1461_v5 = vmul.f32 %v1453_v3, %v1453_v3  ;;  %v1440_v17 = vadd.f32 %v1436_v62, %v1416_v38  ;;  %v1473_v29 = vadd.f32 %v1469_v10, %v1449_v46  ;;  %v1460_v12 = vmul.f32 %v1452_v15, %v1452_v15  ;;  %v1904_v10 = vld [vmem:[%s4291_s1 + $0x81] sm:$0xff] }
 0x1d3   :  { %v1472_v14 = vadd.f32 %v1468_v39, %v1448_v27  ;;  %v1463_v31 = vadd.f32 %v1459_v33, %v1439_v42  ;;  %vm1475_vm8 = vcmp.gt.f32.partialorder %v1471_v18, 0.5  ;;  %v1462_v26 = vadd.f32 %v1458_v30, %v1438_v49  ;;  %v1905_v30 = vld [vmem:[%s4291_s1 + $0x79] sm:$0xff]  ;;  %v1910_v18 = vld [vmem:[%s4290_s0 + $0x9] sm:$0xff] }
 0x1d4   :  { %v1571_v2 = vsub.f32 %v1903_v9, %v3887_v28  ;;  %v1570_v44 = vsub.f32 %v4793_v56, %v3893_v11  ;;  %vm1474_vm9 = vcmp.gt.f32.partialorder %v1470_v37, 0.5  ;;  %v1465_v22 = vadd.f32 %v1461_v5, %v1441_v20  ;;  %v1906_v56 = vld [vmem:[%s4291_s1 + $0x9] sm:$0xff] }
 0x1d5   :  { %v4103_v54 = vpop.permute.xlu0 %1606  ;;  %v1573_v15 = vsub.f32 %v1904_v10, %v3915_v25  ;;  %v1572_v49 = vsub.f32 %v1905_v30, %v3917_v23  ;;  %vm1477_vm10 = vcmp.gt.f32.partialorder %v1473_v29, 0.5  ;;  %v1464_v11 = vadd.f32 %v1460_v12, %v1440_v17  ;;  %v1907_v25 = vld [vmem:[%s4291_s1 + $0x1] sm:$0xff]  ;;  %v1908_v23 = vld [vmem:[%s4291_s1 + $0x69] sm:$0xff] }
 0x1d6   :  { %v4101_v45 = vpop.permute.xlu1 %1608  ;;  %v1523_v0 = vsub.f32 %v1906_v56, %v3873_v63  ;;  %v1522_v38 = vsub.f32 %v1907_v25, %v3878_v7  ;;  %vm1476_vm11 = vcmp.gt.f32.partialorder %v1472_v14, 0.5  ;;  %v1525_v24 = vsub.f32 %v1908_v23, %v4812_v43  ;;  %v4814_v9 = vld [vmem:[#allocation13_spill] sm:$0xff] }
 0x1d7   :  { %v1524_v13 = vsub.f32 %v1909_v60, %v4813_v8  ;;  %v1479_v63 = vsel %vm1475_vm8, -inf, %v1463_v31  ;;  %v1583_v36 = vmul.f32 %v1571_v2, %v1571_v2  ;;  %v1582_v40 = vmul.f32 %v1570_v44, %v1570_v44  ;;  %v1911_v29 = vld [vmem:[%s4290_s0 + $0x69] sm:$0xff] }
 0x1d8   :  { %v1487_v7 = vsel %vm1475_vm8, %v1463_v31, inf  ;;  %v1478_v3 = vsel %vm1474_vm9, -inf, %v1462_v26  ;;  %v1585_v12 = vmul.f32 %v1573_v15, %v1573_v15  ;;  %v1584_v46 = vmul.f32 %v1572_v49, %v1572_v49  ;;  %v1913_v49 = vld [vmem:[%s4290_s0 + $0x21] sm:$0xff] }
 0x1d9   :  { %v4121_v28 = vpop.permute.xlu0 %1610  ;;  %v1486_v21 = vsel %vm1474_vm9, %v1462_v26, inf  ;;  %v1481_v27 = vsel %vm1477_vm10, -inf, %v1465_v22  ;;  %v1535_v42 = vmul.f32 %v1523_v0, %v1523_v0  ;;  %v1534_v39 = vmul.f32 %v1522_v38, %v1522_v38  ;;  %v4816_v25 = vld [vmem:[#allocation101_spill] sm:$0xff]  ;;  %v4817_v38 = vld [vmem:[#allocation103_spill] sm:$0xff] }
 0x1da   :  { %v4111_v6 = vpop.permute.xlu1 %1612  ;;  %v1489_v33 = vsel %vm1477_vm10, %v1465_v22, inf  ;;  %v1480_v20 = vsel %vm1476_vm11, -inf, %v1464_v11  ;;  %v1537_v5 = vmul.f32 %v1525_v24, %v1525_v24  ;;  %v1536_v17 = vmul.f32 %v1524_v13, %v1524_v13 }
 0x1db   :  { %v1507_v31 = vsub.f32 %v1910_v18, %v3987_v58  ;;  %v1506_v37 = vsub.f32 %v4814_v9, %v3994_v34  ;;  %v1587_v26 = vadd.f32 %v1583_v36, %v1535_v42  ;;  %v4152_v2 = vadd.f32 %v1582_v40, %v1534_v39  ;;  %v1912_v58 = vld [vmem:[%s4290_s0 + $0x61] sm:$0xff] }
 0x1dc   :  { %v1509_v44 = vsub.f32 %v1911_v29, %v4015_v32  ;;  %v1488_v10 = vsel %vm1476_vm11, %v1464_v11, inf  ;;  %v4159_v15 = vadd.f32 %v1585_v12, %v1537_v5  ;;  %v4161_v30 = vadd.f32 %v1584_v46, %v1536_v17  ;;  %v4824_v46 = vld [vmem:[#allocation121_spill] sm:$0xff]  ;;  %v4827_v5 = vld [vmem:[#allocation108_spill] sm:$0xff]  ;;  %v4830_v17 = vld [vmem:[#allocation111_spill] sm:$0xff] }
 0x1dd   :  { %v1591_v62 = vpop.permute.xlu0 %1590  ;;  %v1508_v34 = vsub.f32 %v1912_v58, %v4025_v41  ;;  %v1555_v56 = vsub.f32 %v1913_v49, %v4053_v1  ;;  %v1554_v14 = vsub.f32 %v4804_v59, %v4064_v48  ;;  %v4815_v11 = vmax.f32 %v3817_v47, %v3975_v50  ;;  %v4819_v41 = vld [vmem:[#allocation107_spill] sm:$0xff]  ;;  %v4826_v39 = vld [vmem:[#allocation37_spill] sm:$0xff] }
 0x1de   :  { %v1593_v35 = vpop.permute.xlu1 %1592  ;;  %v4818_v23 = vmin.f32 %v4816_v25, %v4817_v38  ;;  %v4820_v24 = vmax.f32 %v3827_v4, %v4819_v41  ;;  %v1527_v1 = vmul.f32 %v1507_v31, %v1507_v31  ;;  %v1526_v8 = vmul.f32 %v1506_v37, %v1506_v37  ;;  %v1914_v59 = vld [vmem:[%s4291_s1 + $0x39] sm:$0xff]  ;;  %v1915_v4 = vld [vmem:[%s4290_s0 + $0x81] sm:$0xff] }
 0x1df   :  { %v4176_v0 = vmax.f32 %v4815_v11, %v1479_v63  ;;  %v1619_v47 = vsub.f32 %v1914_v59, %v4101_v45  ;;  %v4821_v50 = vmin.f32 %v3832_v19, %v3985_v16  ;;  %v1529_v13 = vmul.f32 %v1509_v44, %v1509_v44  ;;  %v1918_v37 = vld [vmem:[%s4290_s0 + $0x39] sm:$0xff] }
 0x1e0   :  { %v4181_v43 = vmin.f32 %v4818_v23, %v1487_v7  ;;  %v4186_v60 = vmax.f32 %v4820_v24, %v1478_v3  ;;  %v1557_v63 = vsub.f32 %v1915_v4, %v4087_v57  ;;  %v4822_v40 = vmax.f32 %v3841_v52, %v4001_v55  ;;  %v1916_v52 = vld [vmem:[%s4290_s0 + $0x79] sm:$0xff]  ;;  %v4825_v55 = vld [vmem:[#allocation102_spill] sm:$0xff] }
 0x1e1   :  { %v1595_v32 = vpop.permute.xlu0 %1594  ;;  %v4195_v48 = vmin.f32 %v4821_v50, %v1486_v21  ;;  %v4823_v45 = vmin.f32 %v3843_v51, %v4003_v61  ;;  %v1528_v19 = vmul.f32 %v1508_v34, %v1508_v34  ;;  %v1575_v16 = vmul.f32 %v1555_v56, %v1555_v56  ;;  %v4832_v44 = vld [vmem:[#allocation28_spill] sm:$0xff]  ;;  %v4833_v49 = vld [vmem:[#allocation79_spill] sm:$0xff] }
 0x1e2   :  { %v1597_v22 = vpop.permute.xlu1 %1596  ;;  %v4204_v7 = vmax.f32 %v4822_v40, %v1481_v27  ;;  %v1618_v12 = vsub.f32 %v3699_v53, %v4103_v54  ;;  %v1574_v57 = vmul.f32 %v1554_v14, %v1554_v14  ;;  %v1556_v27 = vsub.f32 %v1916_v52, %v4825_v55  ;;  %v1917_v54 = vld [vmem:[%s4291_s1 + $0x99] sm:$0xff] }
 0x1e3   :  { %v4209_v3 = vmin.f32 %v4823_v45, %v1489_v33  ;;  %v4828_v51 = vmax.f32 %v4826_v39, %v4827_v5  ;;  %v4829_v33 = vld [vmem:[#allocation45_spill] sm:$0xff]  ;;  %v1631_v53 = vmul.f32 %v1619_v47, %v1619_v47  ;;  %v1621_v9 = vsub.f32 %v1917_v54, %v4111_v6  ;;  %v1920_v6 = vld [vmem:[%s4290_s0 + $0x99] sm:$0xff] }
 0x1e4   :  { %v4831_v18 = vmin.f32 %v4829_v33, %v4830_v17  ;;  %v1603_v29 = vsub.f32 %v1918_v37, %v1593_v35  ;;  %v1577_v58 = vmul.f32 %v1557_v63, %v1557_v63  ;;  %v1602_v56 = vsub.f32 %v4833_v49, %v1591_v62  ;;  %v1921_v35 = vld [vmem:[%s4290_s0 + $0x91] sm:$0xff]  ;;  %v1922_v62 = vld [vmem:[%s4291_s1 + $0xa9] sm:$0xff] }
 0x1e5   :  { %v1655_v42 = vpop.permute.xlu0 %1654  ;;  %v4221_v61 = vmax.f32 %v4828_v51, %v1480_v20  ;;  %v1605_v14 = vsub.f32 %v1920_v6, %v1597_v22  ;;  %v1579_v25 = vadd.f32 %v1575_v16, %v1527_v1  ;;  %v1630_v38 = vmul.f32 %v1618_v12, %v1618_v12 }
 0x1e6   :  { %v1657_v36 = vpop.permute.xlu1 %1656  ;;  %v4226_v31 = vmin.f32 %v4831_v18, %v1488_v10  ;;  %v1666_v20 = vsub.f32 %v4832_v44, %v1655_v42  ;;  %v1919_v10 = vld [vmem:[%s4291_s1 + $0x91] sm:$0xff]  ;;  %v1604_v23 = vsub.f32 %v1921_v35, %v1595_v32  ;;  %v1578_v59 = vadd.f32 %v1574_v57, %v1526_v8 }
 0x1e7   :  { %v1667_v21 = vsub.f32 %v4824_v46, %v1657_v36  ;;  %v1620_v34 = vsub.f32 %v1919_v10, %v4121_v28  ;;  %v1576_v47 = vmul.f32 %v1556_v27, %v1556_v27  ;;  %v4834_v28 = vld [vmem:[#allocation89_spill] sm:$0xff]  ;;  %v1635_v22 = vadd.f32 %v1631_v53, %v1587_v26  ;;  %v4835_v42 = vld [vmem:[#allocation98_spill] sm:$0xff] }
 0x1e8   :  { %v1633_v63 = vmul.f32 %v1621_v9, %v1621_v9  ;;  %v1623_v1 = vmul.f32 %v1603_v29, %v1603_v29  ;;  %v1678_v36 = vmul.f32 %v1666_v20, %v1666_v20  ;;  %v1581_v40 = vadd.f32 %v1577_v58, %v1529_v13  ;;  %v4836_v26 = vld [vmem:[#allocation9_spill] sm:$0xff] }
 0x1e9   :  { %v1679_v41 = vmul.f32 %v1667_v21, %v1667_v21  ;;  %v1659_v24 = vpop.permute.xlu0 %1658  ;;  %v1632_v45 = vmul.f32 %v1620_v34, %v1620_v34  ;;  %v1622_v16 = vmul.f32 %v1602_v56, %v1602_v56  ;;  %v1625_v32 = vmul.f32 %v1605_v14, %v1605_v14 }
 0x1ea   :  { %v1661_v11 = vpop.permute.xlu1 %1660  ;;  %v1668_v4 = vsub.f32 %v1922_v62, %v1659_v24  ;;  %v1634_v8 = vadd.f32 %v1630_v38, %v4152_v2  ;;  %v1624_v46 = vmul.f32 %v1604_v23, %v1604_v23  ;;  %v1580_v55 = vadd.f32 %v1576_v47, %v1528_v19  ;;  %v1923_v19 = vld [vmem:[%s4290_s0 + $0xb1] sm:$0xff] }
 0x1eb   :  { %v1669_v50 = vsub.f32 %v4834_v28, %v1661_v11  ;;  %v1683_v21 = vadd.f32 %v1679_v41, %v1635_v22  ;;  %v1637_v51 = vadd.f32 %v1633_v63, %v4159_v15  ;;  %v1627_v33 = vadd.f32 %v1623_v1, %v1579_v25 }
 0x1ec   :  { %v1680_v39 = vmul.f32 %v1668_v4, %v1668_v4  ;;  %v1682_v13 = vadd.f32 %v1678_v36, %v1634_v8  ;;  %v1636_v18 = vadd.f32 %v1632_v45, %v4161_v30  ;;  %v1626_v53 = vadd.f32 %v1622_v16, %v1578_v59  ;;  %v1924_v30 = vld [vmem:[%s4290_s0 + $0xa9] sm:$0xff] }
 0x1ed   :  { %v1639_v52 = vpop.permute.xlu0 %1638  ;;  %v1681_v27 = vmul.f32 %v1669_v50, %v1669_v50  ;;  %v1629_v54 = vadd.f32 %v1625_v32, %v1581_v40  ;;  %v1628_v37 = vadd.f32 %v1624_v46, %v1580_v55  ;;  %vm1687_vm13 = vcmp.gt.f32.partialorder %v1683_v21, 0.5 }
 0x1ee   :  { %v1641_v12 = vpop.permute.xlu1 %1640  ;;  %v1650_v5 = vsub.f32 %v4836_v26, %v1639_v52  ;;  %v1684_v15 = vadd.f32 %v1680_v39, %v1636_v18  ;;  %vm1686_vm14 = vcmp.gt.f32.partialorder %v1682_v13, 0.5 }
 0x1ef   :  { %v1651_v57 = vsub.f32 %v4835_v42, %v1641_v12  ;;  %v1685_v58 = vadd.f32 %v1681_v27, %v1637_v51 }
 0x1f0   :  { %v1670_v2 = vmul.f32 %v1650_v5, %v1650_v5  ;;  %vm1688_vm0 = vcmp.gt.f32.partialorder %v1684_v15, 0.5 }
 0x1f1   :  { %v1671_v17 = vmul.f32 %v1651_v57, %v1651_v57  ;;  %vm1689_vm15 = vcmp.gt.f32.partialorder %v1685_v58, 0.5 }
 0x1f2   :  { %v1645_v9 = vpop.permute.xlu1 %1644  ;;  %v1674_v10 = vadd.f32 %v1670_v2, %v1626_v53 }
 0x1f3   :  { %v1675_v29 = vadd.f32 %v1671_v17, %v1627_v33  ;;  %v1653_v44 = vsub.f32 %v1923_v19, %v1645_v9  ;;  %v1643_v20 = vpop.permute.xlu0 %1642 }
 0x1f4   :  { %v1652_v34 = vsub.f32 %v1924_v30, %v1643_v20  ;;  %v1690_v25 = vsel %vm1686_vm14, -inf, %v1674_v10  ;;  %v1698_v38 = vsel %vm1686_vm14, %v1674_v10, inf }
 0x1f5   :  { %v1691_v49 = vsel %vm1687_vm13, -inf, %v1675_v29  ;;  %v1699_v56 = vsel %vm1687_vm13, %v1675_v29, inf  ;;  %v1673_v6 = vmul.f32 %v1653_v44, %v1653_v44  ;;  %v1694_v35 = vmax.f32 %v4186_v60, %v1690_v25 }
 0x1f6   :  { %v1695_v14 = vmax.f32 %v4176_v0, %v1691_v49  ;;  %v1703_v11 = vmin.f32 %v4181_v43, %v1699_v56  ;;  %v1702_v23 = vmin.f32 %v4195_v48, %v1698_v38  ;;  %v1672_v24 = vmul.f32 %v1652_v34, %v1652_v34 }
 0x1f7   :  { %v1677_v41 = vadd.f32 %v1673_v6, %v1629_v54  ;;  %v1707_v48 = vsel %vm1706_vm12, %v1694_v35, -inf }
 0x1f8   :  { %v1725_v59 = vsel %vm1706_vm12, %v1703_v11, inf  ;;  %v1708_v47 = vsel %vm1706_vm12, %v1695_v14, -inf  ;;  %v1676_v62 = vadd.f32 %v1672_v24, %v1628_v37  ;;  %v1724_v0 = vsel %vm1706_vm12, %v1702_v23, inf }
 0x1f9   :  { %v1693_v28 = vsel %vm1689_vm15, -inf, %v1677_v41  ;;  %v1701_v50 = vsel %vm1689_vm15, %v1677_v41, inf  ;;  %v1728_v60 = vmin.f32 %v1724_v0, %v1725_v59  ;;  %v1711_v1 = vmax.f32 %v1707_v48, %v1708_v47 }
 0x1fa   :  { %v1697_v43 = vmax.f32 %v4204_v7, %v1693_v28  ;;  %v1705_v4 = vmin.f32 %v4209_v3, %v1701_v50  ;;  %v1692_v22 = vsel %vm1688_vm0, -inf, %v1676_v62  ;;  %v1700_v63 = vsel %vm1688_vm0, %v1676_v62, inf }
 0x1fb   :  { %v1696_v36 = vmax.f32 %v4221_v61, %v1692_v22  ;;  %v1704_v40 = vmin.f32 %v4226_v31, %v1700_v63 }
 0x1fc   :  { %v1727_v45 = vsel %vm1706_vm12, %v1705_v4, inf  ;;  %v1710_v16 = vsel %vm1706_vm12, %v1697_v43, -inf }
 0x1fd   :  { %v1726_v32 = vsel %vm1706_vm12, %v1704_v40, inf  ;;  %v1709_v7 = vsel %vm1706_vm12, %v1696_v36, -inf }
 0x1fe   :  { %v1729_v12 = vmin.f32 %v1726_v32, %v1727_v45  ;;  %v1712_v3 = vmax.f32 %v1709_v7, %v1710_v16 }
 0x200   :  { %v1730_v8 = vmin.f32 %v1728_v60, %v1729_v12  ;;  %v1713_v46 = vmax.f32 %v1711_v1, %v1712_v3 }
 0x202   :  { %1731 = vmin.xlane.f32.xlu1 %v1730_v8  ;;  %1714 = vmax.xlane.f32.xlu0 %v1713_v46 }
 0x28f   :  { %v1732_v21 = vpop.xlane.xlu1 %1731  ;;  %v1715_v42 = vpop.xlane.xlu0 %1714 }
 0x290   :  { %v1733_v57 = vrot.slane %v1732_v21, 4  ;;  %v1716_v61 = vrot.slane %v1715_v42, 4 }
 0x292   :  { %v1734_v52 = vmin.f32 %v1732_v21, %v1733_v57  ;;  %v1717_v31 = vmax.f32 %v1715_v42, %v1716_v61 }
 0x294   :  { %v1735_v55 = vrot.slane %v1734_v52, 2  ;;  %v1718_v27 = vrot.slane %v1717_v31, 2 }
 0x296   :  { %v1736_v39 = vmin.f32 %v1734_v52, %v1735_v55  ;;  %v1719_v26 = vmax.f32 %v1717_v31, %v1718_v27 }
 0x298   :  { %v1720_v5 = vrot.slane %v1719_v26, 1  ;;  %v1737_v51 = vrot.slane %v1736_v39, 1 }
 0x29a   :  { %v1721_v33 = vmax.f32 %v1719_v26, %v1720_v5  ;;  %v1738_v13 = vmin.f32 %v1736_v39, %v1737_v51 }
 0x29c   :  { %1831 = vpush %v1721_v33 }
 0x29d   :  { %1833 = vpush %v1738_v13 }
 0x2cd   :  { %s1832_s0 = spop %1831 }
 0x2ce   :  { %s1723_s22 = sadd.f32 10.0, %s1832_s0  ;;  %s1834_s23 = spop %1833 }
 0x2d0   :  { %s1740_s26 = ssub.f32 %s1723_s22, %s1834_s23 }
 0x2d2   :  { %s1741_s28 = smax.f32 %s1952_s27, %s1740_s26 }
 0x2d3   :  { %v1742_v17 = vstv %s1741_s28 }
 0x2d4   :  { %1744 = vst.msk [vmem:[#allocation2] sm:$0x1] %vm1743_vm1, %v1742_v17 }
 0x2d5   :  { %1936 = shalt.err (!%p1933_p4)
}
 0x2d6   :  { %s1937_s5 = scalar_lea.hbm %s4292_s2, 16 }
 0x2d7   :  { %p1938_p5 = scmp.ne.s32.totalorder %s4292_s2, %s1937_s5  ;;  %p1941_p6 = scmp.lt.u32.totalorder %s1937_s5, %s4292_s2 }
 0x2d9   :  { %p1943_p7 = pnand %p1941_p6, %p1938_p5 }
 0x2db   :  { %1946 = shalt.err (!%p1943_p7)
}
 0x2dc   :  { %1754 = dma.vmem_to_hbm [thread:$0]  %s1752_s25, 16, %s4292_s2, [#allocation3]  }
 0x2dd   :  { %1947 = dma.done.wait [#allocation3], 16  }
 0x2de   :  { %1948 = vsyncadd [#allocation3], 4294967280 }
 0x2df   :  { %1758 = vsyncpa [#allocation3], 1 }

</bundles_post_ra>
